<compile_context>
chip_gen: v5e
topology: v5e:2x2
jax: 0.10.0
libtpu: 0.0.40
codegen_flags: <defaults>
</compile_context>

<pallas_src>
import functools

import jax
import jax.numpy as jnp
from jax import lax
from jax.experimental import pallas as pl
from jax.experimental.pallas import tpu as pltpu


def _attention_kernel(x_ref, wqkv_ref, wout_ref, bo_ref, o_ref, *, heads, dim_head):
    """One batch element, full (non-causal) attention over N spatial positions,
    computed entirely in channels-major (feature, position) orientation."""
    C, N = x_ref.shape[1], x_ref.shape[2]
    hidden = heads * dim_head
    x_t = x_ref[0]                                                   # (C, N)

    # Fused qkv 1x1 conv: one (3*hidden, C) @ (C, N) matmul (scale pre-folded into q rows).
    qkv_t = jnp.dot(wqkv_ref[...], x_t, preferred_element_type=jnp.float32)   # (3*hidden, N)
    qkv_b = qkv_t.astype(jnp.bfloat16)                               # bf16 operands for MXU

    ones_row = jnp.ones((1, N), jnp.bfloat16)                        # hoisted out of the head loop

    outs = []
    for h in range(heads):                                           # heads=4: static unroll is fine
        q_t = qkv_b[h * dim_head:(h + 1) * dim_head, :]                              # (dh, N)
        k_t = qkv_b[hidden + h * dim_head:hidden + (h + 1) * dim_head, :]            # (dh, N)
        v_t = qkv_b[2 * hidden + h * dim_head:2 * hidden + (h + 1) * dim_head, :]    # (dh, N)

        # sim[i, j] = sum_d q_t[d, i] * k_t[d, j]   (bf16 operands, f32 accumulate)
        sim = lax.dot_general(q_t, k_t, (((0,), (0,)), ((), ())),
                              preferred_element_type=jnp.float32)    # (N, N)

        # Unnormalized softmax numerator (row-max subtraction, as in the module).
        sim = sim - jnp.max(sim, axis=-1, keepdims=True)
        p = jnp.exp(sim).astype(jnp.bfloat16)                        # (N, N), values in (0, 1]

        # Row sums land lane-major directly: s_t[0, i] = sum_j p[i, j]
        s_t = lax.dot_general(ones_row, p, (((1,), (1,)), ((), ())),
                              preferred_element_type=jnp.float32)    # (1, N)

        # out_h_t[d, i] = sum_j v_t[d, j] * p[i, j]
        out_t = lax.dot_general(v_t, p, (((1,), (1,)), ((), ())),
                                preferred_element_type=jnp.float32)  # (dh, N)

        # Deferred normalization: per-query reciprocal on (dh, N) elements, EUP approx.
        outs.append(out_t * pl.reciprocal(s_t, approx=True))

    out_cat_t = jnp.concatenate(outs, axis=0)                        # (hidden, N), channel = h*dh + d

    # to_out 1x1 conv: (C, hidden) @ (hidden, N) + per-channel bias broadcast over lanes.
    o_ref[0] = (jnp.dot(wout_ref[...], out_cat_t,
                        preferred_element_type=jnp.float32) + bo_ref[...])


def attention_forward(x_nchw, params, *, heads, dim_head):
    """x_nchw: (B, C, H, W) float32. Returns (B, C, H, W), matching the nn.Module."""
    B, C, H, W = x_nchw.shape
    N = H * W
    hidden = heads * dim_head

    x_cn = x_nchw.reshape(B, C, N).astype(jnp.float32)               # free reshape (no transpose)
    w_qkv, w_out, b_out = params["w_qkv"], params["w_out"], params["b_out"]

    in_specs = [
        pl.BlockSpec((1, C, N), lambda b: (b, 0, 0)),                # x, channels-major
        pl.BlockSpec((3 * hidden, C), lambda b: (0, 0)),             # fused qkv weight (scale folded)
        pl.BlockSpec((C, hidden), lambda b: (0, 0)),                 # to_out weight
        pl.BlockSpec((C, 1), lambda b: (0, 0)),                      # to_out bias
    ]
    out_spec = pl.BlockSpec((1, C, N), lambda b: (b, 0, 0))          # lane-dense (last dim = N)

    flops = B * (2 * 3 * hidden * C * N
                 + heads * (4 * N * N * dim_head + 2 * N * N)
                 + 2 * C * hidden * N)
    cost = pl.CostEstimate(
        flops=flops,
        transcendentals=B * heads * (N * N + N),
        bytes_accessed=4 * (2 * B * C * N + 3 * hidden * C + C * hidden + C))

    out_cn = pl.pallas_call(
        functools.partial(_attention_kernel, heads=heads, dim_head=dim_head),
        out_shape=jax.ShapeDtypeStruct((B, C, N), jnp.float32),
        grid_spec=pltpu.PrefetchScalarGridSpec(
            num_scalar_prefetch=0,
            grid=(B,),
            in_specs=in_specs,
            out_specs=out_spec,
        ),
        compiler_params=pltpu.CompilerParams(
            dimension_semantics=("parallel",),                       # batch fully independent
            vmem_limit_bytes=32 * 1024 * 1024),
        cost_estimate=cost,
    )(x_cn, w_qkv, w_out, b_out)

    return out_cn.reshape(B, C, H, W)                                # free reshape back to NCHW


def attention_reference(x_nchw, raw, *, heads, dim_head):
    """Pure-JAX reference mirroring the PyTorch module, using raw (unfolded) weights."""
    B, C, H, W = x_nchw.shape
    N = H * W
    hidden = heads * dim_head
    scale = float(dim_head) ** (-0.5)

    x = x_nchw.reshape(B, C, N)                                      # (B, C, N)
    qkv = jnp.einsum('oc,bcn->bon', raw["w_qkv"], x)                 # (B, 3*hidden, N)
    q, k, v = jnp.split(qkv, 3, axis=1)
    to_heads = lambda t: t.reshape(B, heads, dim_head, N)
    q, k, v = map(to_heads, (q, k, v))
    q = q * scale
    sim = jnp.einsum('bhdi,bhdj->bhij', q, k)
    sim = sim - jnp.max(sim, axis=-1, keepdims=True)
    attn = jax.nn.softmax(sim, axis=-1)
    out = jnp.einsum('bhij,bhdj->bhid', attn, v)                     # (B, heads, N, dh)
    out = jnp.transpose(out, (0, 1, 3, 2)).reshape(B, hidden, N)     # channel = h*dh + d
    y = jnp.einsum('oc,bcn->bon', raw["w_out"], out) + raw["b_out"][None, :, None]
    return y.reshape(B, C, H, W)


def init_params(key, *, dim, heads, dim_head):
    """Raw, PyTorch-layout parameters (1x1 conv weights squeezed to 2-D)."""
    hidden = heads * dim_head
    k1, k2, k3 = jax.random.split(key, 3)
    return {
        "w_qkv": 0.1 * jax.random.normal(k1, (3 * hidden, dim), jnp.float32),  # to_qkv.weight
        "w_out": 0.1 * jax.random.normal(k2, (dim, hidden), jnp.float32),      # to_out.weight
        "b_out": 0.1 * jax.random.normal(k3, (dim,), jnp.float32),             # to_out.bias
    }


def prepare_kernel_params(raw, *, heads, dim_head):
    """One-time weight transform: fold the attention scale into the q rows, reshape bias."""
    hidden = heads * dim_head
    scale = float(dim_head) ** (-0.5)
    w_qkv = raw["w_qkv"].at[:hidden].multiply(scale)
    return {
        "w_qkv": w_qkv,                                  # (3*hidden, C)
        "w_out": raw["w_out"],                           # (C, hidden)
        "b_out": raw["b_out"].reshape(-1, 1),            # (C, 1) for lane-broadcast add
    }


if __name__ == "__main__":
    B, dim, H, W = 2, 4, 16, 16          # matches Attention(dim=4) on a 16x16 feature map
    heads, dim_head = 4, 32              # module defaults -> hidden_dim = 128

    key = jax.random.PRNGKey(0)
    kx, kp = jax.random.split(key)
    x = jax.random.normal(kx, (B, dim, H, W), jnp.float32)           # NCHW, like PyTorch
    raw = init_params(kp, dim=dim, heads=heads, dim_head=dim_head)
    kparams = prepare_kernel_params(raw, heads=heads, dim_head=dim_head)

    out = attention_forward(x, kparams, heads=heads, dim_head=dim_head)
    out = jax.block_until_ready(out)
    assert out.shape == (B, dim, H, W), out.shape
    assert out.dtype == jnp.float32

    ref = jax.block_until_ready(
        attention_reference(x, raw, heads=heads, dim_head=dim_head))
    max_err = float(jnp.max(jnp.abs(out - ref)))
    # bf16 matmul operands + approx reciprocal -> relaxed tolerance vs f32 reference.
    assert jnp.allclose(out, ref, atol=2e-2, rtol=2e-2), max_err

    print("KERNEL_OK")
</pallas_src>

<mosaic_0001>
module attributes {stable_mosaic.version = 11 : i64} {
  func.func @_attention_kernel(%arg0: i32, %arg1: memref<1x4x256xf32, #tpu.memory_space<vmem>>, %arg2: memref<384x4xf32, #tpu.memory_space<vmem>>, %arg3: memref<4x128xf32, #tpu.memory_space<vmem>>, %arg4: memref<4x1xf32, #tpu.memory_space<vmem>>, %arg5: memref<1x4x256xf32, #tpu.memory_space<vmem>>) attributes {dimension_semantics = [#tpu.dimension_semantics<parallel>], iteration_bounds = array<i64: 2>, scalar_prefetch = 0 : i64, scratch_operands = 0 : i64, tpu.core_type = #tpu.core_type<tc>, window_params = [{transform_indices = @transform_0, window_bounds = array<i64: 1, 4, 256>}, {pipeline_mode = #tpu.pipeline_mode<synchronous>, transform_indices = @transform_1, window_bounds = array<i64: 384, 4>}, {pipeline_mode = #tpu.pipeline_mode<synchronous>, transform_indices = @transform_2, window_bounds = array<i64: 4, 128>}, {pipeline_mode = #tpu.pipeline_mode<synchronous>, transform_indices = @transform_3, window_bounds = array<i64: 4, 1>}, {transform_indices = @transform_4, window_bounds = array<i64: 1, 4, 256>}]} {
    %c0 = arith.constant 0 : index
    %c0_0 = arith.constant 0 : index
    %c0_1 = arith.constant 0 : index
    %0 = vector.load %arg1[%c0, %c0_0, %c0_1] : memref<1x4x256xf32, #tpu.memory_space<vmem>>, vector<1x4x256xf32>
    %1 = vector.shape_cast %0 : vector<1x4x256xf32> to vector<4x256xf32>
    %c0_2 = arith.constant 0 : index
    %c0_3 = arith.constant 0 : index
    %2 = vector.load %arg2[%c0_2, %c0_3] : memref<384x4xf32, #tpu.memory_space<vmem>>, vector<384x4xf32>
    %cst = arith.constant dense<0.000000e+00> : vector<384x256xf32>
    %3 = tpu.matmul %2, %1, %cst {dimension_numbers = #tpu.dot_dimension_numbers<[1], [0], [0], [1], [0, 0, 1, 1], [], []>} : vector<384x4xf32>, vector<4x256xf32>, vector<384x256xf32> -> vector<384x256xf32>
    %4 = arith.truncf %3 : vector<384x256xf32> to vector<384x256xbf16>
    %cst_4 = arith.constant 1.000000e+00 : bf16
    %5 = vector.broadcast %cst_4 : bf16 to vector<1x256xbf16>
    %6 = vector.extract_strided_slice %4 {offsets = [0, 0], sizes = [32, 256], strides = [1, 1]} : vector<384x256xbf16> to vector<32x256xbf16>
    %7 = vector.extract_strided_slice %4 {offsets = [128, 0], sizes = [32, 256], strides = [1, 1]} : vector<384x256xbf16> to vector<32x256xbf16>
    %8 = vector.extract_strided_slice %4 {offsets = [256, 0], sizes = [32, 256], strides = [1, 1]} : vector<384x256xbf16> to vector<32x256xbf16>
    %cst_5 = arith.constant dense<0.000000e+00> : vector<256x256xf32>
    %9 = tpu.matmul %6, %7, %cst_5 {dimension_numbers = #tpu.dot_dimension_numbers<[0], [0], [1], [1], [0, 1, 1, 1], [], []>} : vector<32x256xbf16>, vector<32x256xbf16>, vector<256x256xf32> -> vector<256x256xf32>
    %cst_6 = arith.constant dense<0xFF800000> : vector<256xf32>
    %10 = vector.multi_reduction <maximumf>, %9, %cst_6 [1] : vector<256x256xf32> to vector<256xf32>
    %11 = vector.shape_cast %10 : vector<256xf32> to vector<256x1xf32>
    %12 = vector.broadcast %11 : vector<256x1xf32> to vector<256x256xf32>
    %13 = arith.subf %9, %12 : vector<256x256xf32>
    %14 = math.exp %13 : vector<256x256xf32>
    %15 = arith.truncf %14 : vector<256x256xf32> to vector<256x256xbf16>
    %cst_7 = arith.constant dense<0.000000e+00> : vector<1x256xf32>
    %16 = tpu.matmul %5, %15, %cst_7 {dimension_numbers = #tpu.dot_dimension_numbers<[1], [1], [0], [0], [0, 0, 1, 0], [], []>} : vector<1x256xbf16>, vector<256x256xbf16>, vector<1x256xf32> -> vector<1x256xf32>
    %cst_8 = arith.constant dense<0.000000e+00> : vector<32x256xf32>
    %17 = tpu.matmul %8, %15, %cst_8 {dimension_numbers = #tpu.dot_dimension_numbers<[1], [1], [0], [0], [0, 0, 1, 0], [], []>} : vector<32x256xbf16>, vector<256x256xbf16>, vector<32x256xf32> -> vector<32x256xf32>
    %18 = tpu.reciprocal %16 {approx = true} : vector<1x256xf32> -> vector<1x256xf32>
    %19 = vector.broadcast %18 : vector<1x256xf32> to vector<32x256xf32>
    %20 = arith.mulf %17, %19 : vector<32x256xf32>
    %21 = vector.extract_strided_slice %4 {offsets = [32, 0], sizes = [32, 256], strides = [1, 1]} : vector<384x256xbf16> to vector<32x256xbf16>
    %22 = vector.extract_strided_slice %4 {offsets = [160, 0], sizes = [32, 256], strides = [1, 1]} : vector<384x256xbf16> to vector<32x256xbf16>
    %23 = vector.extract_strided_slice %4 {offsets = [288, 0], sizes = [32, 256], strides = [1, 1]} : vector<384x256xbf16> to vector<32x256xbf16>
    %cst_9 = arith.constant dense<0.000000e+00> : vector<256x256xf32>
    %24 = tpu.matmul %21, %22, %cst_9 {dimension_numbers = #tpu.dot_dimension_numbers<[0], [0], [1], [1], [0, 1, 1, 1], [], []>} : vector<32x256xbf16>, vector<32x256xbf16>, vector<256x256xf32> -> vector<256x256xf32>
    %cst_10 = arith.constant dense<0xFF800000> : vector<256xf32>
    %25 = vector.multi_reduction <maximumf>, %24, %cst_10 [1] : vector<256x256xf32> to vector<256xf32>
    %26 = vector.shape_cast %25 : vector<256xf32> to vector<256x1xf32>
    %27 = vector.broadcast %26 : vector<256x1xf32> to vector<256x256xf32>
    %28 = arith.subf %24, %27 : vector<256x256xf32>
    %29 = math.exp %28 : vector<256x256xf32>
    %30 = arith.truncf %29 : vector<256x256xf32> to vector<256x256xbf16>
    %cst_11 = arith.constant dense<0.000000e+00> : vector<1x256xf32>
    %31 = tpu.matmul %5, %30, %cst_11 {dimension_numbers = #tpu.dot_dimension_numbers<[1], [1], [0], [0], [0, 0, 1, 0], [], []>} : vector<1x256xbf16>, vector<256x256xbf16>, vector<1x256xf32> -> vector<1x256xf32>
    %cst_12 = arith.constant dense<0.000000e+00> : vector<32x256xf32>
    %32 = tpu.matmul %23, %30, %cst_12 {dimension_numbers = #tpu.dot_dimension_numbers<[1], [1], [0], [0], [0, 0, 1, 0], [], []>} : vector<32x256xbf16>, vector<256x256xbf16>, vector<32x256xf32> -> vector<32x256xf32>
    %33 = tpu.reciprocal %31 {approx = true} : vector<1x256xf32> -> vector<1x256xf32>
    %34 = vector.broadcast %33 : vector<1x256xf32> to vector<32x256xf32>
    %35 = arith.mulf %32, %34 : vector<32x256xf32>
    %36 = vector.extract_strided_slice %4 {offsets = [64, 0], sizes = [32, 256], strides = [1, 1]} : vector<384x256xbf16> to vector<32x256xbf16>
    %37 = vector.extract_strided_slice %4 {offsets = [192, 0], sizes = [32, 256], strides = [1, 1]} : vector<384x256xbf16> to vector<32x256xbf16>
    %38 = vector.extract_strided_slice %4 {offsets = [320, 0], sizes = [32, 256], strides = [1, 1]} : vector<384x256xbf16> to vector<32x256xbf16>
    %cst_13 = arith.constant dense<0.000000e+00> : vector<256x256xf32>
    %39 = tpu.matmul %36, %37, %cst_13 {dimension_numbers = #tpu.dot_dimension_numbers<[0], [0], [1], [1], [0, 1, 1, 1], [], []>} : vector<32x256xbf16>, vector<32x256xbf16>, vector<256x256xf32> -> vector<256x256xf32>
    %cst_14 = arith.constant dense<0xFF800000> : vector<256xf32>
    %40 = vector.multi_reduction <maximumf>, %39, %cst_14 [1] : vector<256x256xf32> to vector<256xf32>
    %41 = vector.shape_cast %40 : vector<256xf32> to vector<256x1xf32>
    %42 = vector.broadcast %41 : vector<256x1xf32> to vector<256x256xf32>
    %43 = arith.subf %39, %42 : vector<256x256xf32>
    %44 = math.exp %43 : vector<256x256xf32>
    %45 = arith.truncf %44 : vector<256x256xf32> to vector<256x256xbf16>
    %cst_15 = arith.constant dense<0.000000e+00> : vector<1x256xf32>
    %46 = tpu.matmul %5, %45, %cst_15 {dimension_numbers = #tpu.dot_dimension_numbers<[1], [1], [0], [0], [0, 0, 1, 0], [], []>} : vector<1x256xbf16>, vector<256x256xbf16>, vector<1x256xf32> -> vector<1x256xf32>
    %cst_16 = arith.constant dense<0.000000e+00> : vector<32x256xf32>
    %47 = tpu.matmul %38, %45, %cst_16 {dimension_numbers = #tpu.dot_dimension_numbers<[1], [1], [0], [0], [0, 0, 1, 0], [], []>} : vector<32x256xbf16>, vector<256x256xbf16>, vector<32x256xf32> -> vector<32x256xf32>
    %48 = tpu.reciprocal %46 {approx = true} : vector<1x256xf32> -> vector<1x256xf32>
    %49 = vector.broadcast %48 : vector<1x256xf32> to vector<32x256xf32>
    %50 = arith.mulf %47, %49 : vector<32x256xf32>
    %51 = vector.extract_strided_slice %4 {offsets = [96, 0], sizes = [32, 256], strides = [1, 1]} : vector<384x256xbf16> to vector<32x256xbf16>
    %52 = vector.extract_strided_slice %4 {offsets = [224, 0], sizes = [32, 256], strides = [1, 1]} : vector<384x256xbf16> to vector<32x256xbf16>
    %53 = vector.extract_strided_slice %4 {offsets = [352, 0], sizes = [32, 256], strides = [1, 1]} : vector<384x256xbf16> to vector<32x256xbf16>
    %cst_17 = arith.constant dense<0.000000e+00> : vector<256x256xf32>
    %54 = tpu.matmul %51, %52, %cst_17 {dimension_numbers = #tpu.dot_dimension_numbers<[0], [0], [1], [1], [0, 1, 1, 1], [], []>} : vector<32x256xbf16>, vector<32x256xbf16>, vector<256x256xf32> -> vector<256x256xf32>
    %cst_18 = arith.constant dense<0xFF800000> : vector<256xf32>
    %55 = vector.multi_reduction <maximumf>, %54, %cst_18 [1] : vector<256x256xf32> to vector<256xf32>
    %56 = vector.shape_cast %55 : vector<256xf32> to vector<256x1xf32>
    %57 = vector.broadcast %56 : vector<256x1xf32> to vector<256x256xf32>
    %58 = arith.subf %54, %57 : vector<256x256xf32>
    %59 = math.exp %58 : vector<256x256xf32>
    %60 = arith.truncf %59 : vector<256x256xf32> to vector<256x256xbf16>
    %cst_19 = arith.constant dense<0.000000e+00> : vector<1x256xf32>
    %61 = tpu.matmul %5, %60, %cst_19 {dimension_numbers = #tpu.dot_dimension_numbers<[1], [1], [0], [0], [0, 0, 1, 0], [], []>} : vector<1x256xbf16>, vector<256x256xbf16>, vector<1x256xf32> -> vector<1x256xf32>
    %cst_20 = arith.constant dense<0.000000e+00> : vector<32x256xf32>
    %62 = tpu.matmul %53, %60, %cst_20 {dimension_numbers = #tpu.dot_dimension_numbers<[1], [1], [0], [0], [0, 0, 1, 0], [], []>} : vector<32x256xbf16>, vector<256x256xbf16>, vector<32x256xf32> -> vector<32x256xf32>
    %63 = tpu.reciprocal %61 {approx = true} : vector<1x256xf32> -> vector<1x256xf32>
    %64 = vector.broadcast %63 : vector<1x256xf32> to vector<32x256xf32>
    %65 = arith.mulf %62, %64 : vector<32x256xf32>
    %66 = tpu.concatenate %20, %35, %50, %65 in 0 : vector<32x256xf32>, vector<32x256xf32>, vector<32x256xf32>, vector<32x256xf32> -> vector<128x256xf32>
    %c0_21 = arith.constant 0 : index
    %c0_22 = arith.constant 0 : index
    %67 = vector.load %arg3[%c0_21, %c0_22] : memref<4x128xf32, #tpu.memory_space<vmem>>, vector<4x128xf32>
    %cst_23 = arith.constant dense<0.000000e+00> : vector<4x256xf32>
    %68 = tpu.matmul %67, %66, %cst_23 {dimension_numbers = #tpu.dot_dimension_numbers<[1], [0], [0], [1], [0, 0, 1, 1], [], []>} : vector<4x128xf32>, vector<128x256xf32>, vector<4x256xf32> -> vector<4x256xf32>
    %c0_24 = arith.constant 0 : index
    %c0_25 = arith.constant 0 : index
    %69 = vector.load %arg4[%c0_24, %c0_25] : memref<4x1xf32, #tpu.memory_space<vmem>>, vector<4x1xf32>
    %70 = vector.broadcast %69 : vector<4x1xf32> to vector<4x256xf32>
    %71 = arith.addf %68, %70 : vector<4x256xf32>
    %c0_26 = arith.constant 0 : index
    %c0_27 = arith.constant 0 : index
    %c0_28 = arith.constant 0 : index
    %72 = vector.load %arg5[%c0_26, %c0_27, %c0_28] : memref<1x4x256xf32, #tpu.memory_space<vmem>>, vector<1x4x256xf32>
    %73 = vector.shape_cast %72 : vector<1x4x256xf32> to vector<4x256xf32>
    %74 = vector.shape_cast %71 : vector<4x256xf32> to vector<1x4x256xf32>
    tpu.vector_store %arg5[%c0_26, %c0_27, %c0_28], %74 {strides = array<i32>} : memref<1x4x256xf32, #tpu.memory_space<vmem>>, vector<1x4x256xf32>,
    return
  }
  func.func @transform_0(%arg0: i32) -> (i32, i32, i32) {
    %c0_i32 = arith.constant 0 : i32
    %c0_i32_0 = arith.constant 0 : i32
    %c0_i32_1 = arith.constant 0 : i32
    return %arg0, %c0_i32, %c0_i32_0 : i32, i32, i32
  }
  func.func @transform_1(%arg0: i32) -> (i32, i32) {
    %c0_i32 = arith.constant 0 : i32
    %c0_i32_0 = arith.constant 0 : i32
    %c0_i32_1 = arith.constant 0 : i32
    return %c0_i32, %c0_i32_0 : i32, i32
  }
  func.func @transform_2(%arg0: i32) -> (i32, i32) {
    %c0_i32 = arith.constant 0 : i32
    %c0_i32_0 = arith.constant 0 : i32
    %c0_i32_1 = arith.constant 0 : i32
    return %c0_i32, %c0_i32_0 : i32, i32
  }
  func.func @transform_3(%arg0: i32) -> (i32, i32) {
    %c0_i32 = arith.constant 0 : i32
    %c0_i32_0 = arith.constant 0 : i32
    %c0_i32_1 = arith.constant 0 : i32
    return %c0_i32, %c0_i32_0 : i32, i32
  }
  func.func @transform_4(%arg0: i32) -> (i32, i32, i32) {
    %c0_i32 = arith.constant 0 : i32
    %c0_i32_0 = arith.constant 0 : i32
    %c0_i32_1 = arith.constant 0 : i32
    return %arg0, %c0_i32, %c0_i32_0 : i32, i32, i32
  }
}

</mosaic_0001>

<bundles_post_ra>
// kernel: tpu_custom_call.1
= control target key start
LH: loop header
LB: loop body
LE: loop exit
PB: predicated region body
PF: predicated region fallthrough
CT: control target
= control target key end

     0   :  { %9 = vsyncpa [#allocation3], 0  ;;  %s7487_s0 = inlined_call_operand.vmem [shape: f32[2,4,256], index: 0, kind: input, shape index: {}]   ;;  %s7488_s1 = inlined_call_operand.vmem [shape: f32[384,4], index: 1, kind: input, shape index: {}]   ;;  %s7489_s2 = inlined_call_operand.vmem [shape: f32[4,128], index: 2, kind: input, shape index: {}]   ;;  %s7490_s3 = inlined_call_operand.vmem [shape: f32[4,1], index: 3, kind: input, shape index: {}]   ;;  %s7491_s4 = inlined_call_operand.hbm [shape: f32[2,4,256], index: 4, kind: output, shape index: {}]  }
   0x1   :  { %11 = vsyncpa [#allocation3 + $0x1], 0  ;;  %s4883_s15 = smov 0   ;;  %s4885_s16 = smov 0  }
   0x2   :  { %s4887_s17 = smov 0   ;;  %s4889_s18 = smov 0  }
   0x3 LB: > { %s4904_s19 = sadd.s32 4294967295, %s4854_s18   ;;  %s3981_s20 = sadd.s32 4294967294, %s4854_s18   ;;  %s4854_s18 = sphi %s4889_s18, %s8151_s18   ;;  %s4850_s17 = sphi %s4887_s17, %s8150_s17   ;;  %s4846_s16 = sphi %s4885_s16, %s8149_s16   ;;  %s4842_s15 = sphi %s4883_s15, %s8148_s15  }
   0x4   : > { %s4908_s21 = sadd.s32 1, %s4854_s18   ;;  %s113_s22 = sadd.s32 1, %s4850_s17 }
   0x5   : > { %s110_s23 = ssub.s32 %s4854_s18, %s4908_s21  ;;  %p123_p0 = scmp.ne.s32.totalorder %s4850_s17, %s4846_s16 }
   0x6   : > { %p111_p1 = scmp.eq.s32.totalorder %s110_s23, 0  ;;  %p124_p2 = scmp.eq.s32.totalorder %s4904_s19, 1 }
   0x7   : > { %p129_p3 = scmp.ne.s32.totalorder %s4846_s16, %s4842_s15  ;;  %p130_p4 = scmp.eq.s32.totalorder %s3981_s20, 1 }
   0x8   : > { %s4919_s24 = scalar_select %p111_p1, %s4850_s17, %s113_s22  }
   0x9   : > { %p4921_p5 = por %p124_p2, %p123_p0  ;;  %p4925_p6 = por %p130_p4, %p129_p3 }
   0xa   : > { %p3984_p7 = scmp.ge.s32.totalorder %s4854_s18, 1  ;;  %p165_p8 = scmp.lt.s32.totalorder %s4854_s18, 3 }
   0xc   : > { %p166_p9 = pnand %p3984_p7, %p165_p8 }
   0xe   : > { %169 = sbr.rel (%p166_p9) target bundleno = 2419 (0x973), region = 36 }
  0x13   : > { %p191_p10 = scmp.lt.s32.totalorder %s4904_s19, 1  ;;  %vm396_vm0 = vcmask 1043456   ;;  %v199_v1 = vld [vmem:[%s7488_s1] sm:$0xff]  ;;  %vm251_vm1 = vcmask 31744   ;;  %v200_v4 = vld [vmem:[%s7488_s1 + $0x8] sm:$0xff]  ;;  %v201_v5 = vld [vmem:[%s7488_s1 + $0x10] sm:$0xff] }
  0x14   : > { %v202_v6 = vld [vmem:[%s7488_s1 + $0x18] sm:$0xff]  ;;  %v203_v7 = vld [vmem:[%s7488_s1 + $0x20] sm:$0xff]  ;;  %v204_v8 = vld [vmem:[%s7488_s1 + $0x28] sm:$0xff]  ;;  %vm835_vm2 = vcmask 261120   ;;  %s188_s30 = sand.u32 1, %s4846_s16   ;;  %s4220_s6 = sshll.u32 %s4904_s19, 3 }
  0x15   : > { %s192_s27 = scalar_select %p191_p10, %s4904_s19, 1  ;;  %v205_v9 = vld [vmem:[%s7488_s1 + $0x30] sm:$0xff]  ;;  %v206_v10 = vld [vmem:[%s7488_s1 + $0x38] sm:$0xff]  ;;  %v207_v11 = vld [vmem:[%s7488_s1 + $0x40] sm:$0xff] }
  0x16   : > { %v208_v12 = vld [vmem:[%s7488_s1 + $0x48] sm:$0xff]  ;;  %v209_v13 = vld [vmem:[%s7488_s1 + $0x50] sm:$0xff]  ;;  %v210_v14 = vld [vmem:[%s7488_s1 + $0x58] sm:$0xff]  ;;  %s3917_s9 = scalar_lea.hbm %s7491_s4, %s4220_s6  ;;  %s3906_s19 = scalar_lea.sflag [#allocation3], %s188_s30 }
  0x17   : > { %s4219_s28 = sshll.u32 %s192_s27, 3  ;;  %v211_v15 = vld [vmem:[%s7488_s1 + $0x60] sm:$0xff]  ;;  %v212_v16 = vld [vmem:[%s7488_s1 + $0x68] sm:$0xff]  ;;  %v213_v17 = vld [vmem:[%s7488_s1 + $0x70] sm:$0xff]  ;;  %s3921_s12 = sshll.u32 %s3917_s9, 4  ;;  %s3922_s12 = int_to_ptr.hbm [resolvable:$true] %s3921_s12 }
  0x18   : > { %s195_s5 = scalar_lea.vmem %s7487_s0, %s4219_s28  ;;  %v214_v18 = vld [vmem:[%s7488_s1 + $0x78] sm:$0xff]  ;;  %v215_v21 = vld [vmem:[%s7488_s1 + $0x80] sm:$0xff]  ;;  %v216_v25 = vld [vmem:[%s7488_s1 + $0x88] sm:$0xff]  ;;  %s4806_s13 = sshra.s32 %s3922_s12, 4  ;;  %s4807_s13 = int_to_ptr.hbm [resolvable:$true] %s4806_s13 }
  0x19   : > { %v198_v0 = vld [vmem:[%s195_s5] sm:$0xff]  ;;  %v217_v35 = vld [vmem:[%s7488_s1 + $0x90] sm:$0xff]  ;;  %v218_v39 = vld [vmem:[%s7488_s1 + $0x98] sm:$0xff]  ;;  %s3985_s5 = sshll.u32 %s188_s30, 3  ;;  %s4808_s14 = scalar_lea.hbm %s4807_s13, 8 }
  0x1a   : > { %248 = vst [vmem:[#allocation1] ss:$2 sm:$0xff] %v198_v0  ;;  %s190_s10 = scalar_lea.vmem [#allocation2], %s3985_s5  ;;  %p4809_p11 = scmp.ne.s32.totalorder %s4807_s13, %s4808_s14 }
  0x1b   : > { %s3919_s11 = sshll.u32 %s190_s10, 4  ;;  %s4812_s23 = scalar_lea.hbm %s7491_s4, 16  ;;  %s3920_s11 = int_to_ptr.vmem [resolvable:$true] %s3919_s11 }
  0x1c   : > { %p4810_p12 = pnand %p4809_p11, %p4921_p5  ;;  %p4813_p0 = scmp.lt.s32.totalorder %s4807_s13, %s7491_s4 }
  0x1d   : > { %p4814_p1 = scmp.lt.s32.totalorder %s4812_s23, %s4808_s14 }
  0x1e   : > { %p4811_p13 = pneg %p4810_p12 }
  0x1f   : > { %p4815_p2 = por %p4814_p1, %p4813_p0 }
  0x21   : > { %v249_v2 = vld.sshfl [vmem:[#allocation1] sm:$0xff pattern:$0x75316420]  ;;  %v250_v3 = vld.sshfl [vmem:[#allocation1 + $0x8] sm:$0xff pattern:$0x75316420]  ;;  %p4816_p3 = pnand %p4815_p2, %p4811_p13 }
  0x22   : > { %3988 = vmatpush.msk.msra.mxu0 %vm396_vm0, %v249_v2  ;;  %4037 = vmatpush.msk.msra.mxu1 %vm396_vm0, %v250_v3 }
  0x23   : > { %3989 = vmatmul.msk.f32.vlgmr.msra.gmra.mxu0 %vm251_vm1, %v199_v1  ;;  %4038 = vmatmul.msk.f32.vlgmr.msra.gmra.mxu1 %vm251_vm1, %v199_v1 }
  0x2b   : > { %3990 = vmatmul.msk.f32.gmra.mxu0 %vm251_vm1, %v200_v4  ;;  %4039 = vmatmul.msk.f32.gmra.mxu1 %vm251_vm1, %v200_v4 }
  0x33   : > { %3991 = vmatmul.msk.f32.gmra.mxu0 %vm251_vm1, %v201_v5  ;;  %4040 = vmatmul.msk.f32.gmra.mxu1 %vm251_vm1, %v201_v5 }
  0x3b   : > { %3992 = vmatmul.msk.f32.gmra.mxu0 %vm251_vm1, %v202_v6  ;;  %4041 = vmatmul.msk.f32.gmra.mxu1 %vm251_vm1, %v202_v6 }
  0x43   : > { %3993 = vmatmul.msk.f32.gmra.mxu0 %vm251_vm1, %v203_v7  ;;  %4042 = vmatmul.msk.f32.gmra.mxu1 %vm251_vm1, %v203_v7 }
  0x4b   : > { %3994 = vmatmul.msk.f32.gmra.mxu0 %vm251_vm1, %v204_v8  ;;  %4043 = vmatmul.msk.f32.gmra.mxu1 %vm251_vm1, %v204_v8 }
  0x53   : > { %3995 = vmatmul.msk.f32.gmra.mxu0 %vm251_vm1, %v205_v9  ;;  %4044 = vmatmul.msk.f32.gmra.mxu1 %vm251_vm1, %v205_v9 }
  0x5b   : > { %3996 = vmatmul.msk.f32.gmra.mxu0 %vm251_vm1, %v206_v10  ;;  %4045 = vmatmul.msk.f32.gmra.mxu1 %vm251_vm1, %v206_v10 }
  0x63   : > { %3997 = vmatmul.msk.f32.gmra.mxu0 %vm251_vm1, %v207_v11  ;;  %4046 = vmatmul.msk.f32.gmra.mxu1 %vm251_vm1, %v207_v11 }
  0x6b   : > { %3998 = vmatmul.msk.f32.gmra.mxu0 %vm251_vm1, %v208_v12  ;;  %4047 = vmatmul.msk.f32.gmra.mxu1 %vm251_vm1, %v208_v12 }
  0x73   : > { %3999 = vmatmul.msk.f32.gmra.mxu0 %vm251_vm1, %v209_v13  ;;  %4048 = vmatmul.msk.f32.gmra.mxu1 %vm251_vm1, %v209_v13 }
  0x7b   : > { %4000 = vmatmul.msk.f32.gmra.mxu0 %vm251_vm1, %v210_v14  ;;  %4049 = vmatmul.msk.f32.gmra.mxu1 %vm251_vm1, %v210_v14 }
  0x83   : > { %4001 = vmatmul.msk.f32.gmra.mxu0 %vm251_vm1, %v211_v15  ;;  %4050 = vmatmul.msk.f32.gmra.mxu1 %vm251_vm1, %v211_v15 }
  0x8b   : > { %4002 = vmatmul.msk.f32.gmra.mxu0 %vm251_vm1, %v212_v16  ;;  %4051 = vmatmul.msk.f32.gmra.mxu1 %vm251_vm1, %v212_v16 }
  0x93   : > { %4003 = vmatmul.msk.f32.gmra.mxu0 %vm251_vm1, %v213_v17  ;;  %4052 = vmatmul.msk.f32.gmra.mxu1 %vm251_vm1, %v213_v17 }
  0x9b   : > { %4004 = vmatmul.msk.f32.gmra.mxu0 %vm251_vm1, %v214_v18  ;;  %4053 = vmatmul.msk.f32.gmra.mxu1 %vm251_vm1, %v214_v18 }
  0xa0   : > { %v418_v19 = vpop.f32.mrf.mxu0  ;;  %v579_v20 = vpop.f32.mrf.mxu1 }
  0xa1   : > { %v723_v22 = vpack.c.bf16 %v579_v20, %v418_v19 }
  0xa3   : > { %4005 = vmatmul.msk.f32.gmra.mxu0 %vm251_vm1, %v215_v21  ;;  %4054 = vmatmul.msk.f32.gmra.mxu1 %vm251_vm1, %v215_v21  ;;  %v775_v27 = vunpack.c.l.b16 %v723_v22  ;;  %v776_v28 = vunpack.c.h.b16 %v723_v22 }
  0xa8   : > { %v421_v23 = vpop.f32.mrf.mxu0  ;;  %v582_v24 = vpop.f32.mrf.mxu1 }
  0xa9   : > { %v724_v26 = vpack.c.bf16 %v582_v24, %v421_v23 }
  0xab   : > { %4006 = vmatmul.msk.f32.gmra.mxu0 %vm251_vm1, %v216_v25  ;;  %4055 = vmatmul.msk.f32.gmra.mxu1 %vm251_vm1, %v216_v25  ;;  %v777_v29 = vunpack.c.l.b16 %v724_v26  ;;  %v778_v30 = vunpack.c.h.b16 %v724_v26 }
  0xad   : > { %v783_v31 = vpack.c.b16 %v777_v29, %v775_v27  ;;  %v784_v32 = vpack.c.b16 %v778_v30, %v776_v28 }
  0xaf   : > { %791 = vxpose.binary.xlu0.c.b16.start [1/4] (short) %v784_v32, %v783_v31, 128 }
  0xb0   : > { %v424_v33 = vpop.f32.mrf.mxu0  ;;  %v585_v34 = vpop.f32.mrf.mxu1 }
  0xb1   : > { %v725_v36 = vpack.c.bf16 %v585_v34, %v424_v33 }
  0xb3   : > { %4007 = vmatmul.msk.f32.gmra.mxu0 %vm251_vm1, %v217_v35  ;;  %4056 = vmatmul.msk.f32.gmra.mxu1 %vm251_vm1, %v217_v35  ;;  %v779_v41 = vunpack.c.l.b16 %v725_v36  ;;  %v780_v42 = vunpack.c.h.b16 %v725_v36 }
  0xb8   : > { %v427_v37 = vpop.f32.mrf.mxu0  ;;  %v588_v38 = vpop.f32.mrf.mxu1 }
  0xb9   : > { %v726_v40 = vpack.c.bf16 %v588_v38, %v427_v37 }
  0xbb   : > { %v781_v43 = vunpack.c.l.b16 %v726_v40  ;;  %v782_v44 = vunpack.c.h.b16 %v726_v40  ;;  %4008 = vmatmul.msk.f32.gmra.mxu0 %vm251_vm1, %v218_v39  ;;  %4057 = vmatmul.msk.f32.gmra.mxu1 %vm251_vm1, %v218_v39 }
  0xbd   : > { %v785_v45 = vpack.c.b16 %v781_v43, %v779_v41  ;;  %v786_v46 = vpack.c.b16 %v782_v44, %v780_v42 }
  0xbf   : > { %792 = vxpose.binary.xlu0.c.b16.end [2/4] (short) %v786_v46, %v785_v45, 128 }
  0xc0   : > { %v5038_v47 = vpop.f32.mrf.mxu0  ;;  %v5040_v48 = vpop.f32.mrf.mxu1 }
  0xc8   : > { %v5042_v49 = vpop.f32.mrf.mxu0  ;;  %v5044_v50 = vpop.f32.mrf.mxu1 }
  0xd0   : > { %v5046_v51 = vpop.f32.mrf.mxu0  ;;  %v5048_v52 = vpop.f32.mrf.mxu1 }
  0xd8   : > { %v5050_v53 = vpop.f32.mrf.mxu0  ;;  %v5052_v54 = vpop.f32.mrf.mxu1 }
  0xe0   : > { %v5054_v55 = vpop.f32.mrf.mxu0  ;;  %v5056_v56 = vpop.f32.mrf.mxu1 }
  0xe8   : > { %v5058_v57 = vpop.f32.mrf.mxu0  ;;  %v5060_v58 = vpop.f32.mrf.mxu1 }
  0xf0   : > { %v5062_v59 = vpop.f32.mrf.mxu0  ;;  %v5064_v60 = vpop.f32.mrf.mxu1 }
  0xf8   : > { %v5066_v61 = vpop.f32.mrf.mxu0  ;;  %v5068_v62 = vpop.f32.mrf.mxu1 }
 0x100   : > { %v5070_v63 = vpop.f32.mrf.mxu0  ;;  %v5072_v0 = vpop.f32.mrf.mxu1 }
 0x101   : > { %7676 = vst [vmem:[#allocation5_spill] sm:$0xff] %v5070_v63 }
 0x102   : > { %7677 = vst [vmem:[#allocation6_spill] sm:$0xff] %v5072_v0 }
 0x108   : > { %v5074_v1 = vpop.f32.mrf.mxu0  ;;  %v5076_v2 = vpop.f32.mrf.mxu1 }
 0x109   : > { %7678 = vst [vmem:[#allocation7_spill] sm:$0xff] %v5074_v1 }
 0x10a   : > { %7679 = vst [vmem:[#allocation8_spill] sm:$0xff] %v5076_v2 }
 0x110   : > { %v5078_v3 = vpop.f32.mrf.mxu0  ;;  %v5080_v4 = vpop.f32.mrf.mxu1 }
 0x111   : > { %7680 = vst [vmem:[#allocation9_spill] sm:$0xff] %v5078_v3  ;;  %v234_v3 = vld [vmem:[%s7488_s1 + $0x118] sm:$0xff] }
 0x112   : > { %7681 = vst [vmem:[#allocation10_spill] sm:$0xff] %v5080_v4  ;;  %v233_v4 = vld [vmem:[%s7488_s1 + $0x110] sm:$0xff] }
 0x118   : > { %v5082_v5 = vpop.f32.mrf.mxu0  ;;  %v5084_v6 = vpop.f32.mrf.mxu1 }
 0x119   : > { %7682 = vst [vmem:[#allocation11_spill] sm:$0xff] %v5082_v5  ;;  %v231_v5 = vld [vmem:[%s7488_s1 + $0x100] sm:$0xff] }
 0x11a   : > { %7683 = vst [vmem:[#allocation12_spill] sm:$0xff] %v5084_v6 }
 0x120   : > { %v466_v7 = vpop.f32.mrf.mxu0  ;;  %v627_v8 = vpop.f32.mrf.mxu1 }
 0x121   : > { %v739_v14 = vpack.c.bf16 %v627_v8, %v466_v7 }
 0x123   : > { %v819_v23 = vunpack.c.l.b16 %v739_v14  ;;  %v820_v24 = vunpack.c.h.b16 %v739_v14 }
 0x128   : > { %v469_v9 = vpop.f32.mrf.mxu0  ;;  %v630_v10 = vpop.f32.mrf.mxu1 }
 0x129   : > { %v740_v17 = vpack.c.bf16 %v630_v10, %v469_v9 }
 0x12b   : > { %v821_v27 = vunpack.c.l.b16 %v740_v17  ;;  %v822_v28 = vunpack.c.h.b16 %v740_v17 }
 0x12d   : > { %v827_v29 = vpack.c.b16 %v821_v27, %v819_v23  ;;  %v828_v30 = vpack.c.b16 %v822_v28, %v820_v24  ;;  %v221_v24 = vld [vmem:[%s7488_s1 + $0xb0] sm:$0xff]  ;;  %v222_v28 = vld [vmem:[%s7488_s1 + $0xb8] sm:$0xff] }
 0x130   : > { %v472_v11 = vpop.f32.mrf.mxu0  ;;  %v633_v12 = vpop.f32.mrf.mxu1 }
 0x131   : > { %v741_v13 = vpack.c.bf16 %v633_v12, %v472_v11 }
 0x133   : > { %v823_v19 = vunpack.c.l.b16 %v741_v13  ;;  %v824_v20 = vunpack.c.h.b16 %v741_v13 }
 0x138   : > { %v475_v15 = vpop.f32.mrf.mxu0  ;;  %v636_v16 = vpop.f32.mrf.mxu1 }
 0x139   : > { %v742_v18 = vpack.c.bf16 %v636_v16, %v475_v15 }
 0x13b   : > { %v825_v21 = vunpack.c.l.b16 %v742_v18  ;;  %v826_v22 = vunpack.c.h.b16 %v742_v18  ;;  %v219_v18 = vld [vmem:[%s7488_s1 + $0xa0] sm:$0xff] }
 0x13c   : > { %4009 = vmatmul.msk.f32.gmra.mxu0 %vm251_vm1, %v219_v18  ;;  %4058 = vmatmul.msk.f32.gmra.mxu1 %vm251_vm1, %v219_v18 }
 0x13d   : > { %v829_v25 = vpack.c.b16 %v825_v21, %v823_v19  ;;  %v830_v26 = vpack.c.b16 %v826_v22, %v824_v20  ;;  %v220_v21 = vld [vmem:[%s7488_s1 + $0xa8] sm:$0xff] }
 0x13f   : > { %890 = vmatpush.bf16.msra.mxu2 %v829_v25  ;;  %979 = vmatpush.bf16.msra.mxu3 %v830_v26 }
 0x143   : > { %891 = vmatpush.bf16.msra.mxu2 %v827_v29  ;;  %980 = vmatpush.bf16.msra.mxu3 %v828_v30 }
 0x144   : > { %4010 = vmatmul.msk.f32.gmra.mxu0 %vm251_vm1, %v220_v21  ;;  %4059 = vmatmul.msk.f32.gmra.mxu1 %vm251_vm1, %v220_v21 }
 0x14c   : > { %4011 = vmatmul.msk.f32.gmra.mxu0 %vm251_vm1, %v221_v24  ;;  %4060 = vmatmul.msk.f32.gmra.mxu1 %vm251_vm1, %v221_v24 }
 0x154   : > { %4012 = vmatmul.msk.f32.gmra.mxu0 %vm251_vm1, %v222_v28  ;;  %4061 = vmatmul.msk.f32.gmra.mxu1 %vm251_vm1, %v222_v28  ;;  %v228_v28 = vld [vmem:[%s7488_s1 + $0xe8] sm:$0xff] }
 0x15b   : > { %v799_v31 = vpop.trf.xlu0 }
 0x15c   : > { %4086 = vmatmul.msk.bf16.vlgmr.msra.gmra.mxu2 %vm835_vm2, %v799_v31  ;;  %4102 = vmatmul.msk.bf16.vlgmr.msra.gmra.mxu3 %vm835_vm2, %v799_v31  ;;  %v223_v31 = vld [vmem:[%s7488_s1 + $0xc0] sm:$0xff] }
 0x15d   : > { %4013 = vmatmul.msk.f32.gmra.mxu0 %vm251_vm1, %v223_v31  ;;  %4062 = vmatmul.msk.f32.gmra.mxu1 %vm251_vm1, %v223_v31 }
 0x163   : > { %v800_v32 = vpop.trf.xlu0 }
 0x16b   : > { %v801_v33 = vpop.trf.xlu0 }
 0x16c   : > { %4087 = vmatmul.msk.bf16.gmra.mxu2 %vm835_vm2, %v801_v33  ;;  %4103 = vmatmul.msk.bf16.gmra.mxu3 %vm835_vm2, %v801_v33 }
 0x173   : > { %v802_v34 = vpop.trf.xlu0 }
 0x17b   : > { %v803_v35 = vpop.trf.xlu0 }
 0x17c   : > { %4088 = vmatmul.msk.bf16.gmra.mxu2 %vm835_vm2, %v803_v35  ;;  %4104 = vmatmul.msk.bf16.gmra.mxu3 %vm835_vm2, %v803_v35 }
 0x183   : > { %v804_v36 = vpop.trf.xlu0 }
 0x18b   : > { %v805_v37 = vpop.trf.xlu0 }
 0x18c   : > { %4089 = vmatmul.msk.bf16.gmra.mxu2 %vm835_vm2, %v805_v37  ;;  %4105 = vmatmul.msk.bf16.gmra.mxu3 %vm835_vm2, %v805_v37  ;;  %v225_v37 = vld [vmem:[%s7488_s1 + $0xd0] sm:$0xff] }
 0x193   : > { %v806_v38 = vpop.trf.xlu0 }
 0x19b   : > { %v807_v39 = vpop.trf.xlu0 }
 0x19c   : > { %4090 = vmatmul.msk.bf16.gmra.mxu2 %vm835_vm2, %v807_v39  ;;  %4106 = vmatmul.msk.bf16.gmra.mxu3 %vm835_vm2, %v807_v39 }
 0x1a3   : > { %v808_v40 = vpop.trf.xlu0 }
 0x1ab   : > { %v809_v41 = vpop.trf.xlu0 }
 0x1ac   : > { %4091 = vmatmul.msk.bf16.gmra.mxu2 %vm835_vm2, %v809_v41  ;;  %4107 = vmatmul.msk.bf16.gmra.mxu3 %vm835_vm2, %v809_v41  ;;  %v226_v41 = vld [vmem:[%s7488_s1 + $0xd8] sm:$0xff] }
 0x1b3   : > { %v810_v42 = vpop.trf.xlu0 }
 0x1bb   : > { %v811_v43 = vpop.trf.xlu0 }
 0x1bc   : > { %4092 = vmatmul.msk.bf16.gmra.mxu2 %vm835_vm2, %v811_v43  ;;  %4108 = vmatmul.msk.bf16.gmra.mxu3 %vm835_vm2, %v811_v43 }
 0x1c3   : > { %v5100_v44 = vpop.trf.xlu0 }
 0x1cb   : > { %v813_v45 = vpop.trf.xlu0 }
 0x1cc   : > { %4093 = vmatmul.msk.bf16.gmra.mxu2 %vm835_vm2, %v813_v45  ;;  %4109 = vmatmul.msk.bf16.gmra.mxu3 %vm835_vm2, %v813_v45  ;;  %v227_v45 = vld [vmem:[%s7488_s1 + $0xe0] sm:$0xff] }
 0x1dc   : > { %4094 = vmatmul.msk.bf16.gmra.mxu2 %vm835_vm2, %v800_v32  ;;  %4110 = vmatmul.msk.bf16.gmra.mxu3 %vm835_vm2, %v800_v32 }
 0x1df   : > { %v5106_v46 = vpop.f32.mrf.mxu2  ;;  %v5108_v7 = vpop.f32.mrf.mxu3 }
 0x1e0   : > { %7684 = vst [vmem:[#allocation13_spill] sm:$0xff] %v5106_v46 }
 0x1e1   : > { %7685 = vst [vmem:[#allocation14_spill] sm:$0xff] %v5108_v7 }
 0x1e7   : > { %v5110_v8 = vpop.f32.mrf.mxu2  ;;  %v5112_v9 = vpop.f32.mrf.mxu3 }
 0x1e8   : > { %7686 = vst [vmem:[#allocation15_spill] sm:$0xff] %v5110_v8 }
 0x1e9   : > { %7687 = vst [vmem:[#allocation16_spill] sm:$0xff] %v5112_v9 }
 0x1ec   : > { %4095 = vmatmul.msk.bf16.gmra.mxu2 %vm835_vm2, %v802_v34  ;;  %4111 = vmatmul.msk.bf16.gmra.mxu3 %vm835_vm2, %v802_v34  ;;  %v224_v34 = vld [vmem:[%s7488_s1 + $0xc8] sm:$0xff] }
 0x1ed   : > { %4014 = vmatmul.msk.f32.gmra.mxu0 %vm251_vm1, %v224_v34  ;;  %4063 = vmatmul.msk.f32.gmra.mxu1 %vm251_vm1, %v224_v34 }
 0x1ef   : > { %v5116_v10 = vpop.f32.mrf.mxu2  ;;  %v5118_v11 = vpop.f32.mrf.mxu3 }
 0x1f5   : > { %4015 = vmatmul.msk.f32.gmra.mxu0 %vm251_vm1, %v225_v37  ;;  %4064 = vmatmul.msk.f32.gmra.mxu1 %vm251_vm1, %v225_v37 }
 0x1f7   : > { %v5120_v12 = vpop.f32.mrf.mxu2  ;;  %v5122_v13 = vpop.f32.mrf.mxu3 }
 0x1fc   : > { %4096 = vmatmul.msk.bf16.gmra.mxu2 %vm835_vm2, %v804_v36  ;;  %4112 = vmatmul.msk.bf16.gmra.mxu3 %vm835_vm2, %v804_v36 }
 0x1fd   : > { %4016 = vmatmul.msk.f32.gmra.mxu0 %vm251_vm1, %v226_v41  ;;  %4065 = vmatmul.msk.f32.gmra.mxu1 %vm251_vm1, %v226_v41  ;;  %v229_v41 = vld [vmem:[%s7488_s1 + $0xf0] sm:$0xff] }
 0x1ff   : > { %v5126_v14 = vpop.f32.mrf.mxu2  ;;  %v5128_v15 = vpop.f32.mrf.mxu3 }
 0x205   : > { %4017 = vmatmul.msk.f32.gmra.mxu0 %vm251_vm1, %v227_v45  ;;  %4066 = vmatmul.msk.f32.gmra.mxu1 %vm251_vm1, %v227_v45 }
 0x207   : > { %v5130_v16 = vpop.f32.mrf.mxu2  ;;  %v5132_v17 = vpop.f32.mrf.mxu3 }
 0x20c   : > { %4097 = vmatmul.msk.bf16.gmra.mxu2 %vm835_vm2, %v806_v38  ;;  %4113 = vmatmul.msk.bf16.gmra.mxu3 %vm835_vm2, %v806_v38 }
 0x20d   : > { %4018 = vmatmul.msk.f32.gmra.mxu0 %vm251_vm1, %v228_v28  ;;  %4067 = vmatmul.msk.f32.gmra.mxu1 %vm251_vm1, %v228_v28 }
 0x20f   : > { %v5141_v19 = vpop.f32.mrf.mxu2  ;;  %v5143_v20 = vpop.f32.mrf.mxu3 }
 0x210   : > { %v1080_v37 = vmax.f32 %v5141_v19, %v5143_v20 }
 0x215   : > { %4019 = vmatmul.msk.f32.gmra.mxu0 %vm251_vm1, %v229_v41  ;;  %4068 = vmatmul.msk.f32.gmra.mxu1 %vm251_vm1, %v229_v41 }
 0x217   : > { %v5150_v22 = vpop.f32.mrf.mxu2  ;;  %v5152_v23 = vpop.f32.mrf.mxu3 }
 0x21c   : > { %4098 = vmatmul.msk.bf16.gmra.mxu2 %vm835_vm2, %v808_v40  ;;  %4114 = vmatmul.msk.bf16.gmra.mxu3 %vm835_vm2, %v808_v40 }
 0x21f   : > { %v5161_v25 = vpop.f32.mrf.mxu2  ;;  %v5163_v26 = vpop.f32.mrf.mxu3 }
 0x220   : > { %v1086_v27 = vmax.f32 %v5161_v25, %v5163_v26 }
 0x222   : > { %1087 = vmax.xlane.f32.xlu0 %v1086_v27 }
 0x227   : > { %v5172_v29 = vpop.f32.mrf.mxu2  ;;  %v5174_v30 = vpop.f32.mrf.mxu3 }
 0x228   : > { %v1089_v6 = vmax.f32 %v5172_v29, %v5174_v30 }
 0x22c   : > { %4099 = vmatmul.msk.bf16.gmra.mxu2 %vm835_vm2, %v810_v42  ;;  %4115 = vmatmul.msk.bf16.gmra.mxu3 %vm835_vm2, %v810_v42 }
 0x22f   : > { %v5183_v32 = vpop.f32.mrf.mxu2  ;;  %v5185_v33 = vpop.f32.mrf.mxu3 }
 0x230   : > { %v1092_v28 = vmax.f32 %v5183_v32, %v5185_v33 }
 0x237   : > { %v5192_v35 = vpop.f32.mrf.mxu2  ;;  %v5194_v36 = vpop.f32.mrf.mxu3 }
 0x238   : > { %v1095_v24 = vmax.f32 %v5192_v35, %v5194_v36 }
 0x23c   : > { %4100 = vmatmul.msk.bf16.gmra.mxu2 %vm835_vm2, %v5100_v44  ;;  %4116 = vmatmul.msk.bf16.gmra.mxu3 %vm835_vm2, %v5100_v44 }
 0x23f   : > { %v5205_v38 = vpop.f32.mrf.mxu2  ;;  %v5207_v39 = vpop.f32.mrf.mxu3 }
 0x240   : > { %v1098_v40 = vmax.f32 %v5205_v38, %v5207_v39 }
 0x242   : > { %1099 = vmax.xlane.f32.xlu2 %v1098_v40 }
 0x247   : > { %v5216_v42 = vpop.f32.mrf.mxu2  ;;  %v5218_v43 = vpop.f32.mrf.mxu3 }
 0x248   : > { %v1101_v44 = vmax.f32 %v5216_v42, %v5218_v43 }
 0x24a   : > { %1102 = vmax.xlane.f32.xlu2 %v1101_v44  ;;  %v814_v44 = vpop.trf.xlu0 }
 0x24c   : > { %4101 = vmatmul.msk.bf16.gmra.mxu2 %vm835_vm2, %v814_v44  ;;  %4117 = vmatmul.msk.bf16.gmra.mxu3 %vm835_vm2, %v814_v44  ;;  %v1068_v44 = vmax.f32 %v5116_v10, %v5118_v11 }
 0x24f   : > { %v5227_v18 = vpop.f32.mrf.mxu2  ;;  %v5229_v21 = vpop.f32.mrf.mxu3 }
 0x250   : > { %v1104_v27 = vmax.f32 %v5227_v18, %v5229_v21 }
 0x252   : > { %1096 = vmax.xlane.f32.xlu2 %v1095_v24  ;;  %1105 = vmax.xlane.f32.xlu1 %v1104_v27  ;;  %v1074_v27 = vmax.f32 %v5126_v14, %v5128_v15 }
 0x257   : > { %v5240_v31 = vpop.f32.mrf.mxu2  ;;  %v5242_v34 = vpop.f32.mrf.mxu3 }
 0x258   : > { %v1107_v40 = vmax.f32 %v5240_v31, %v5242_v34 }
 0x25a   : > { %1081 = vmax.xlane.f32.xlu2 %v1080_v37  ;;  %1108 = vmax.xlane.f32.xlu1 %v1107_v40  ;;  %v230_v37 = vld [vmem:[%s7488_s1 + $0xf8] sm:$0xff] }
 0x25b   : > { %4020 = vmatmul.msk.f32.gmra.mxu0 %vm251_vm1, %v230_v37  ;;  %4069 = vmatmul.msk.f32.gmra.mxu1 %vm251_vm1, %v230_v37  ;;  %v1062_v37 = vmax.f32 %v5106_v46, %v5108_v7  ;;  %v238_v7 = vld [vmem:[%s7488_s1 + $0x138] sm:$0xff] }
 0x25f   : > { %v5255_v45 = vpop.f32.mrf.mxu2  ;;  %v5257_v24 = vpop.f32.mrf.mxu3 }
 0x260   : > { %7688 = vst [vmem:[#allocation17_spill] sm:$0xff] %v5255_v45 }
 0x261   : > { %7689 = vst [vmem:[#allocation18_spill] sm:$0xff] %v5257_v24  ;;  %v5322_v24 = vpop.f32.mrf.mxu0 }
 0x262   : > { %1075 = vmax.xlane.f32.xlu2 %v1074_v27  ;;  %1093 = vmax.xlane.f32.xlu1 %v1092_v28  ;;  %7696 = vst [vmem:[#allocation25_spill] sm:$0xff] %v5322_v24 }
 0x263   : > { %4021 = vmatmul.msk.f32.gmra.mxu0 %vm251_vm1, %v231_v5  ;;  %4070 = vmatmul.msk.f32.gmra.mxu1 %vm251_vm1, %v231_v5 }
 0x267   : > { %v5268_v40 = vpop.f32.mrf.mxu2  ;;  %v5270_v41 = vpop.f32.mrf.mxu3 }
 0x268   : > { %7690 = vst [vmem:[#allocation19_spill] sm:$0xff] %v5268_v40  ;;  %v1083_v40 = vmax.f32 %v5150_v22, %v5152_v23 }
 0x269   : > { %7691 = vst [vmem:[#allocation20_spill] sm:$0xff] %v5270_v41  ;;  %v232_v41 = vld [vmem:[%s7488_s1 + $0x108] sm:$0xff] }
 0x26a   : > { %1069 = vmax.xlane.f32.xlu2 %v1068_v44  ;;  %1090 = vmax.xlane.f32.xlu1 %v1089_v6  ;;  %v1077_v44 = vmax.f32 %v5130_v16, %v5132_v17 }
 0x26b   : > { %4022 = vmatmul.msk.f32.gmra.mxu0 %vm251_vm1, %v232_v41  ;;  %4071 = vmatmul.msk.f32.gmra.mxu1 %vm251_vm1, %v232_v41  ;;  %v1071_v41 = vmax.f32 %v5120_v12, %v5122_v13 }
 0x26f   : > { %v5281_v27 = vpop.f32.mrf.mxu2  ;;  %v5283_v28 = vpop.f32.mrf.mxu3 }
 0x270   : > { %7692 = vst [vmem:[#allocation21_spill] sm:$0xff] %v5281_v27  ;;  %v728_v27 = vpack.c.bf16 %v5044_v50, %v5042_v49 }
 0x271   : > { %7693 = vst [vmem:[#allocation22_spill] sm:$0xff] %v5283_v28 }
 0x272   : > { %1063 = vmax.xlane.f32.xlu2 %v1062_v37  ;;  %1084 = vmax.xlane.f32.xlu1 %v1083_v40  ;;  %v1548_v24 = vunpack.c.l.b16 %v728_v27  ;;  %v1549_v63 = vunpack.c.h.b16 %v728_v27  ;;  %v236_v27 = vld [vmem:[%s7488_s1 + $0x128] sm:$0xff] }
 0x273   : > { %4023 = vmatmul.msk.f32.gmra.mxu0 %vm251_vm1, %v233_v4  ;;  %4072 = vmatmul.msk.f32.gmra.mxu1 %vm251_vm1, %v233_v4  ;;  %v1065_v4 = vmax.f32 %v5110_v8, %v5112_v9  ;;  %v239_v8 = vld [vmem:[%s7488_s1 + $0x140] sm:$0xff] }
 0x277   : > { %v5294_v5 = vpop.f32.mrf.mxu2  ;;  %v5296_v6 = vpop.f32.mrf.mxu3 }
 0x278   : > { %7694 = vst [vmem:[#allocation23_spill] sm:$0xff] %v5294_v5  ;;  %v5324_v5 = vpop.f32.mrf.mxu1 }
 0x279   : > { %7695 = vst [vmem:[#allocation24_spill] sm:$0xff] %v5296_v6 }
 0x27a   : > { %1078 = vmax.xlane.f32.xlu1 %v1077_v44  ;;  %7697 = vst [vmem:[#allocation26_spill] sm:$0xff] %v5324_v5 }
 0x27b   : > { %4024 = vmatmul.msk.f32.gmra.mxu0 %vm251_vm1, %v234_v3  ;;  %4073 = vmatmul.msk.f32.gmra.mxu1 %vm251_vm1, %v234_v3  ;;  %v727_v3 = vpack.c.bf16 %v5040_v48, %v5038_v47 }
 0x27d   : > { %v1546_v28 = vunpack.c.l.b16 %v727_v3  ;;  %v1547_v0 = vunpack.c.h.b16 %v727_v3 }
 0x27f   : > { %v5305_v40 = vpop.f32.mrf.mxu2  ;;  %v5307_v37 = vpop.f32.mrf.mxu3  ;;  %v1554_v49 = vpack.c.b16 %v1548_v24, %v1546_v28  ;;  %v1555_v50 = vpack.c.b16 %v1549_v63, %v1547_v0  ;;  %v729_v63 = vpack.c.bf16 %v5048_v52, %v5046_v51  ;;  %v730_v0 = vpack.c.bf16 %v5052_v54, %v5050_v53 }
 0x280   : > { %v5332_v1 = vpop.f32.mrf.mxu1 }
 0x281   : > { %7699 = vst [vmem:[#allocation28_spill] sm:$0xff] %v5332_v1  ;;  %v1550_v24 = vunpack.c.l.b16 %v729_v63  ;;  %v1551_v28 = vunpack.c.h.b16 %v729_v63 }
 0x282   : > { %1072 = vmax.xlane.f32.xlu1 %v1071_v41  ;;  %v5330_v41 = vpop.f32.mrf.mxu0 }
 0x283   : > { %7698 = vst [vmem:[#allocation27_spill] sm:$0xff] %v5330_v41 }
 0x287   : > { %v5316_v44 = vpop.f32.mrf.mxu2  ;;  %v5318_v45 = vpop.f32.mrf.mxu3 }
 0x288   : > { %v5349_v48 = vpop.f32.mrf.mxu1 }
 0x289   : > { %7701 = vst [vmem:[#allocation30_spill] sm:$0xff] %v5349_v48 }
 0x28a   : > { %1066 = vmax.xlane.f32.xlu1 %v1065_v4  ;;  %v235_v4 = vld [vmem:[%s7488_s1 + $0x120] sm:$0xff]  ;;  %v5347_v47 = vpop.f32.mrf.mxu0 }
 0x28b   : > { %4025 = vmatmul.msk.f32.gmra.mxu0 %vm251_vm1, %v235_v4  ;;  %4074 = vmatmul.msk.f32.gmra.mxu1 %vm251_vm1, %v235_v4  ;;  %7700 = vst [vmem:[#allocation29_spill] sm:$0xff] %v5347_v47 }
 0x28f   : > { %v5326_v6 = vpop.f32.mrf.mxu2  ;;  %v5328_v2 = vpop.f32.mrf.mxu3 }
 0x290   : > { %v5360_v5 = vpop.f32.mrf.mxu1 }
 0x291   : > { %7702 = vst [vmem:[#allocation31_spill] sm:$0xff] %v5360_v5  ;;  %v237_v5 = vld [vmem:[%s7488_s1 + $0x130] sm:$0xff] }
 0x292   : > { %v5362_v47 = vpop.f32.mrf.mxu0 }
 0x293   : > { %4026 = vmatmul.msk.f32.gmra.mxu0 %vm251_vm1, %v236_v27  ;;  %4075 = vmatmul.msk.f32.gmra.mxu1 %vm251_vm1, %v236_v27  ;;  %7703 = vst [vmem:[#allocation32_spill] sm:$0xff] %v5362_v47 }
 0x297   : > { %v5343_v41 = vpop.f32.mrf.mxu2  ;;  %v5345_v1 = vpop.f32.mrf.mxu3 }
 0x298   : > { %v651_v53 = vpop.f32.mrf.mxu1 }
 0x29a   : > { %v490_v47 = vpop.f32.mrf.mxu0 }
 0x29b   : > { %1562 = vxpose.binary.xlu2.c.b16.start [1/4] (short) %v1555_v50, %v1554_v49, 128  ;;  %v1552_v49 = vunpack.c.l.b16 %v730_v0  ;;  %v1553_v50 = vunpack.c.h.b16 %v730_v0  ;;  %v747_v54 = vpack.c.bf16 %v651_v53, %v490_v47 }
 0x29c   : > { %4027 = vmatmul.msk.f32.gmra.mxu0 %vm251_vm1, %v237_v5  ;;  %4076 = vmatmul.msk.f32.gmra.mxu1 %vm251_vm1, %v237_v5 }
 0x29d   : > { %v1556_v51 = vpack.c.b16 %v1552_v49, %v1550_v24  ;;  %v1557_v52 = vpack.c.b16 %v1553_v50, %v1551_v28  ;;  %v2360_v24 = vunpack.c.l.b16 %v747_v54  ;;  %v2361_v28 = vunpack.c.h.b16 %v747_v54 }
 0x29e   : > { %v731_v54 = vpack.c.bf16 %v5056_v56, %v5054_v55 }
 0x29f   : > { %v5356_v3 = vpop.f32.mrf.mxu2  ;;  %v5358_v4 = vpop.f32.mrf.mxu3 }
 0x2a0   : > { %v654_v46 = vpop.f32.mrf.mxu1 }
 0x2a2   : > { %v493_v5 = vpop.f32.mrf.mxu0 }
 0x2a3   : > { %v748_v49 = vpack.c.bf16 %v654_v46, %v493_v5  ;;  %v732_v5 = vpack.c.bf16 %v5060_v58, %v5058_v57 }
 0x2a4   : > { %4028 = vmatmul.msk.f32.gmra.mxu0 %vm251_vm1, %v238_v7  ;;  %4077 = vmatmul.msk.f32.gmra.mxu1 %vm251_vm1, %v238_v7 }
 0x2a5   : > { %v2362_v50 = vunpack.c.l.b16 %v748_v49 }
 0x2a7   : > { %v5368_v48 = vpop.f32.mrf.mxu2  ;;  %v5370_v27 = vpop.f32.mrf.mxu3  ;;  %v5386_v47 = vpack.c.b16 %v2362_v50, %v2360_v24  ;;  %v2316_v24 = vunpack.c.l.b16 %v731_v54  ;;  %v2319_v50 = vunpack.c.h.b16 %v732_v5 }
 0x2a8   : > { %v5401_v46 = vpop.f32.mrf.mxu1 }
 0x2a9   : > { %7706 = vst [vmem:[#allocation35_spill] sm:$0xff] %v5386_v47 }
 0x2aa   : > { %v5399_v7 = vpop.f32.mrf.mxu0  ;;  %7708 = vst [vmem:[#allocation37_spill] sm:$0xff] %v5401_v46  ;;  %v241_v46 = vld [vmem:[%s7488_s1 + $0x150] sm:$0xff] }
 0x2ab   : > { %1563 = vxpose.binary.xlu2.c.b16.end [2/4] (short) %v1557_v52, %v1556_v51, 128  ;;  %v2363_v51 = vunpack.c.h.b16 %v748_v49  ;;  %v2318_v49 = vunpack.c.l.b16 %v732_v5 }
 0x2ac   : > { %4029 = vmatmul.msk.f32.gmra.mxu0 %vm251_vm1, %v239_v8  ;;  %4078 = vmatmul.msk.f32.gmra.mxu1 %vm251_vm1, %v239_v8  ;;  %v240_v8 = vld [vmem:[%s7488_s1 + $0x148] sm:$0xff] }
 0x2ad   : > { %v5388_v52 = vpack.c.b16 %v2363_v51, %v2361_v28  ;;  %v2317_v28 = vunpack.c.h.b16 %v731_v54  ;;  %v2324_v57 = vpack.c.b16 %v2318_v49, %v2316_v24 }
 0x2af   : > { %v5377_v63 = vpop.f32.mrf.mxu2  ;;  %v5379_v0 = vpop.f32.mrf.mxu3  ;;  %7707 = vst [vmem:[#allocation36_spill] sm:$0xff] %v5388_v52  ;;  %v2325_v58 = vpack.c.b16 %v2319_v50, %v2317_v28 }
 0x2b0   : > { %7704 = vst [vmem:[#allocation33_spill] sm:$0xff] %v5377_v63  ;;  %v5420_v56 = vpop.f32.mrf.mxu1 }
 0x2b1   : > { %7705 = vst [vmem:[#allocation34_spill] sm:$0xff] %v5379_v0 }
 0x2b2   : > { %v5418_v55 = vpop.f32.mrf.mxu0  ;;  %7712 = vst [vmem:[#allocation41_spill] sm:$0xff] %v5420_v56 }
 0x2b3   : > { %7711 = vst [vmem:[#allocation40_spill] sm:$0xff] %v5418_v55 }
 0x2b4   : > { %4030 = vmatmul.msk.f32.gmra.mxu0 %vm251_vm1, %v240_v8  ;;  %4079 = vmatmul.msk.f32.gmra.mxu1 %vm251_vm1, %v240_v8  ;;  %v733_v8 = vpack.c.bf16 %v5064_v60, %v5062_v59 }
 0x2b5   : > { %v1100_v54 = vpop.xlane.xlu2 %1099 }
 0x2b7   : > { %v5390_v53 = vpop.f32.mrf.mxu2  ;;  %v5392_v9 = vpop.f32.mrf.mxu3 }
 0x2b8   : > { %v663_v28 = vpop.f32.mrf.mxu1 }
 0x2ba   : > { %v502_v24 = vpop.f32.mrf.mxu0 }
 0x2bc   : > { %4031 = vmatmul.msk.f32.gmra.mxu0 %vm251_vm1, %v241_v46  ;;  %4080 = vmatmul.msk.f32.gmra.mxu1 %vm251_vm1, %v241_v46 }
 0x2bd   : > { %v1103_v60 = vpop.xlane.xlu2 %1102 }
 0x2bf   : > { %v5407_v51 = vpop.f32.mrf.mxu2  ;;  %v5409_v52 = vpop.f32.mrf.mxu3 }
 0x2c0   : > { %7709 = vst [vmem:[#allocation38_spill] sm:$0xff] %v5407_v51  ;;  %v1146_v47 = vmax.f32 %v5407_v51, %v5409_v52 }
 0x2c1   : > { %7710 = vst [vmem:[#allocation39_spill] sm:$0xff] %v5409_v52  ;;  %v1140_v52 = vmax.f32 %v5377_v63, %v5379_v0 }
 0x2c2   : > { %1147 = vmax.xlane.f32.xlu0 %v1146_v47  ;;  %v734_v47 = vpack.c.bf16 %v5068_v62, %v5066_v61  ;;  %v751_v61 = vpack.c.bf16 %v663_v28, %v502_v24  ;;  %v242_v62 = vld [vmem:[%s7488_s1 + $0x158] sm:$0xff]  ;;  %v1185_v24 = vsub.f32 %v5218_v43, %v1103_v60  ;;  %v1182_v28 = vsub.f32 %v5205_v38, %v1100_v54 }
 0x2c3   : > { %v1134_v38 = vmax.f32 %v5356_v3, %v5358_v4 }
 0x2c4   : > { %2332 = vxpose.binary.xlu1.c.b16.start [1/4] (short) %v2325_v58, %v2324_v57, 128  ;;  %v2320_v57 = vunpack.c.l.b16 %v733_v8  ;;  %v2321_v58 = vunpack.c.h.b16 %v733_v8  ;;  %v2322_v51 = vunpack.c.l.b16 %v734_v47  ;;  %v2323_v63 = vunpack.c.h.b16 %v734_v47  ;;  %v666_v8 = vpop.f32.mrf.mxu1 }
 0x2c5   : > { %v1106_v5 = vpop.xlane.xlu1 %1105  ;;  %4032 = vmatmul.msk.f32.gmra.mxu0 %vm251_vm1, %v242_v62  ;;  %4081 = vmatmul.msk.f32.gmra.mxu1 %vm251_vm1, %v242_v62 }
 0x2c6   : > { %v1186_v49 = vsub.f32 %v5227_v18, %v1106_v5  ;;  %v1187_v50 = vsub.f32 %v5229_v21, %v1106_v5  ;;  %v1143_v21 = vmax.f32 %v5390_v53, %v5392_v9 }
 0x2c8   : > { %v1278_v56 = vmul.f32 1.442695, %v1186_v49  ;;  %v1280_v55 = vmul.f32 1.442695, %v1187_v50  ;;  %v3130_v49 = vunpack.c.l.b16 %v751_v61 }
 0x2ca   : > { %1141 = vmax.xlane.f32.xlu0 %v1140_v52  ;;  %v2326_v52 = vpack.c.b16 %v2322_v51, %v2320_v57  ;;  %4264 = vpow2.f32 %v1278_v56  ;;  %v1183_v51 = vsub.f32 %v5207_v39, %v1100_v54  ;;  %v243_v56 = vld [vmem:[%s7488_s1 + $0x160] sm:$0xff] }
 0x2cb   : > { %4266 = vpow2.f32 %v1280_v55  ;;  %v1270_v55 = vmul.f32 1.442695, %v1182_v28 }
 0x2cd   : > { %v1109_v0 = vpop.xlane.xlu1 %1108  ;;  %4033 = vmatmul.msk.f32.gmra.mxu0 %vm251_vm1, %v243_v56  ;;  %4082 = vmatmul.msk.f32.gmra.mxu1 %vm251_vm1, %v243_v56 }
 0x2ce   : > { %v1188_v46 = vsub.f32 %v5240_v31, %v1109_v0  ;;  %v1189_v59 = vsub.f32 %v5242_v34, %v1109_v0  ;;  %v505_v31 = vpop.f32.mrf.mxu0  ;;  %v2327_v34 = vpack.c.b16 %v2323_v63, %v2321_v58  ;;  %v1184_v0 = vsub.f32 %v5216_v42, %v1103_v60  ;;  %v1097_v60 = vpop.xlane.xlu2 %1096 }
 0x2cf   : > { %v752_v47 = vpack.c.bf16 %v666_v8, %v505_v31  ;;  %v1276_v42 = vmul.f32 1.442695, %v1185_v24  ;;  %v1180_v31 = vsub.f32 %v5192_v35, %v1097_v60  ;;  %v5465_v24 = vpop.f32.mrf.mxu1 }
 0x2d0   : > { %v1282_v18 = vmul.f32 1.442695, %v1188_v46  ;;  %v1284_v5 = vmul.f32 1.442695, %v1189_v59  ;;  %v3131_v46 = vunpack.c.h.b16 %v751_v61  ;;  %v1274_v58 = vmul.f32 1.442695, %v1184_v0  ;;  %v4265_v43 = vpop.eup %4264 }
 0x2d1   : > { %v3132_v50 = vunpack.c.l.b16 %v752_v47  ;;  %v3133_v63 = vunpack.c.h.b16 %v752_v47  ;;  %v4267_v54 = vpop.eup %4266  ;;  %v1272_v59 = vmul.f32 1.442695, %v1183_v51  ;;  %v1181_v0 = vsub.f32 %v5194_v36, %v1097_v60  ;;  %v1088_v51 = vpop.xlane.xlu0 %1087 }
 0x2d2   : > { %1144 = vmax.xlane.f32.xlu0 %v1143_v21  ;;  %4268 = vpow2.f32 %v1282_v18 }
 0x2d3   : > { %4270 = vpow2.f32 %v1284_v5  ;;  %v5455_v39 = vpack.c.b16 %v3132_v50, %v3130_v49  ;;  %v5457_v61 = vpack.c.b16 %v3133_v63, %v3131_v46  ;;  %v1266_v49 = vmul.f32 1.442695, %v1180_v31 }
 0x2d4   : > { %2333 = vxpose.binary.xlu1.c.b16.end [2/4] (short) %v2327_v34, %v2326_v52, 128  ;;  %4272 = vpow2.f32 %v1274_v58  ;;  %v1137_v50 = vmax.f32 %v5368_v48, %v5370_v27 }
 0x2d5   : > { %v1094_v57 = vpop.xlane.xlu1 %1093  ;;  %4274 = vpow2.f32 %v1276_v42 }
 0x2d6   : > { %v1178_v18 = vsub.f32 %v5183_v32, %v1094_v57  ;;  %v1179_v52 = vsub.f32 %v5185_v33, %v1094_v57  ;;  %4276 = vpow2.f32 %v1270_v55  ;;  %v5462_v34 = vpop.f32.mrf.mxu0  ;;  %v244_v33 = vld [vmem:[%s7488_s1 + $0x168] sm:$0xff]  ;;  %v1268_v57 = vmul.f32 1.442695, %v1181_v0  ;;  %v1082_v42 = vpop.xlane.xlu2 %1081 }
 0x2d7   : > { %4278 = vpow2.f32 %v1272_v59  ;;  %4034 = vmatmul.msk.f32.gmra.mxu0 %vm251_vm1, %v244_v33  ;;  %4083 = vmatmul.msk.f32.gmra.mxu1 %vm251_vm1, %v244_v33  ;;  %v1174_v55 = vsub.f32 %v5161_v25, %v1088_v51  ;;  %v245_v25 = vld [vmem:[%s7488_s1 + $0x170] sm:$0xff] }
 0x2d8   : > { %v4269_v62 = vpop.eup %4268  ;;  %v1262_v32 = vmul.f32 1.442695, %v1178_v18  ;;  %v1264_v28 = vmul.f32 1.442695, %v1179_v52  ;;  %v5480_v18 = vpop.f32.mrf.mxu1 }
 0x2d9   : > { %v4271_v21 = vpop.eup %4270  ;;  %v1364_v5 = vpack.c.bf16 %v4269_v62, %v4265_v43 }
 0x2da   : > { %1135 = vmax.xlane.f32.xlu0 %v1134_v38  ;;  %v1365_v8 = vpack.c.bf16 %v4271_v21, %v4267_v54  ;;  %v4273_v35 = vpop.eup %4272  ;;  %4280 = vpow2.f32 %v1262_v32  ;;  %v1175_v54 = vsub.f32 %v5163_v26, %v1088_v51  ;;  %v1254_v21 = vmul.f32 1.442695, %v1174_v55 }
 0x2db   : > { %1382 = vmatpush.bf16.xpose.msrb.mxu2 %v1364_v5  ;;  %1454 = vmatpush.bf16.xpose.msrb.mxu0 %v1364_v5  ;;  %v4275_v36 = vpop.eup %4274  ;;  %4282 = vpow2.f32 %v1264_v28  ;;  %v1128_v26 = vmax.f32 %v5326_v6, %v5328_v2  ;;  %v1170_v28 = vsub.f32 %v5141_v19, %v1082_v42  ;;  %v5498_v19 = vpop.f32.mrf.mxu3 }
 0x2dc   : > { %1395 = vmatpush.bf16.xpose.msrb.mxu3 %v1365_v8  ;;  %1473 = vmatpush.bf16.xpose.msrb.mxu1 %v1365_v8  ;;  %v4277_v46 = vpop.eup %4276  ;;  %4284 = vpow2.f32 %v1266_v49  ;;  %v1256_v5 = vmul.f32 1.442695, %v1175_v54 }
 0x2dd   : > { %v1091_v47 = vpop.xlane.xlu1 %1090  ;;  %v4279_v58 = vpop.eup %4278  ;;  %v1362_v43 = vpack.c.bf16 %v4273_v35, %v4277_v46  ;;  %4286 = vpow2.f32 %v1268_v57  ;;  %v1171_v35 = vsub.f32 %v5143_v20, %v1082_v42  ;;  %v1246_v46 = vmul.f32 1.442695, %v1170_v28 }
 0x2de   : > { %v1176_v63 = vsub.f32 %v5172_v29, %v1091_v47  ;;  %v1177_v56 = vsub.f32 %v5174_v30, %v1091_v47  ;;  %v1363_v38 = vpack.c.bf16 %v4275_v36, %v4279_v58  ;;  %v5478_v62 = vpop.f32.mrf.mxu0  ;;  %v1076_v49 = vpop.xlane.xlu2 %1075  ;;  %v1131_v20 = vmax.f32 %v5343_v41, %v5345_v1 }
 0x2df   : > { %4035 = vmatmul.msk.f32.gmra.mxu0 %vm251_vm1, %v245_v25  ;;  %4084 = vmatmul.msk.f32.gmra.mxu1 %vm251_vm1, %v245_v25  ;;  %v5496_v57 = vpop.f32.mrf.mxu2  ;;  %v1248_v58 = vmul.f32 1.442695, %v1171_v35  ;;  %v1167_v25 = vsub.f32 %v5128_v15, %v1076_v49 }
 0x2e0   : > { %v1258_v60 = vmul.f32 1.442695, %v1176_v63  ;;  %v1260_v29 = vmul.f32 1.442695, %v1177_v56  ;;  %v4281_v30 = vpop.eup %4280  ;;  %v5506_v56 = vpop.f32.mrf.mxu1 }
 0x2e1   : > { %v4283_v52 = vpop.eup %4282 }
 0x2e2   : > { %1138 = vmax.xlane.f32.xlu0 %v1137_v50  ;;  %v4285_v31 = vpop.eup %4284  ;;  %4288 = vpow2.f32 %v1258_v60  ;;  %v1166_v60 = vsub.f32 %v5126_v14, %v1076_v49 }
 0x2e3   : > { %1383 = vmatpush.bf16.xpose.msrb.mxu2 %v1362_v43  ;;  %1455 = vmatpush.bf16.xpose.msrb.mxu0 %v1362_v43  ;;  %v4287_v0 = vpop.eup %4286  ;;  %4290 = vpow2.f32 %v1260_v29  ;;  %v1360_v32 = vpack.c.bf16 %v4285_v31, %v4281_v30 }
 0x2e4   : > { %1396 = vmatpush.bf16.xpose.msrb.mxu3 %v1363_v38  ;;  %1474 = vmatpush.bf16.xpose.msrb.mxu1 %v1363_v38  ;;  %4292 = vpow2.f32 %v1254_v21  ;;  %v1361_v33 = vpack.c.bf16 %v4287_v0, %v4283_v52  ;;  %v5516_v0 = vpop.f32.mrf.mxu3 }
 0x2e5   : > { %v1085_v59 = vpop.xlane.xlu1 %1084  ;;  %4294 = vpow2.f32 %v1256_v5  ;;  %v1238_v5 = vmul.f32 1.442695, %v1166_v60 }
 0x2e6   : > { %v1172_v8 = vsub.f32 %v5150_v22, %v1085_v59  ;;  %v1173_v47 = vsub.f32 %v5152_v23, %v1085_v59  ;;  %v246_v23 = vld [vmem:[%s7488_s1 + $0x178] sm:$0xff]  ;;  %v5504_v42 = vpop.f32.mrf.mxu0 }
 0x2e7   : > { %4036 = vmatmul.msk.f32.gmra.mxu0 %vm251_vm1, %v246_v23  ;;  %4085 = vmatmul.msk.f32.gmra.mxu1 %vm251_vm1, %v246_v23  ;;  %v5514_v14 = vpop.f32.mrf.mxu2 }
 0x2e8   : > { %v1250_v36 = vmul.f32 1.442695, %v1172_v8  ;;  %v1252_v22 = vmul.f32 1.442695, %v1173_v47  ;;  %v4289_v51 = vpop.eup %4288  ;;  %v1240_v8 = vmul.f32 1.442695, %v1167_v25  ;;  %v5522_v49 = vpop.f32.mrf.mxu1 }
 0x2e9   : > { %v4291_v63 = vpop.eup %4290 }
 0x2ea   : > { %1129 = vmax.xlane.f32.xlu0 %v1128_v26  ;;  %v4293_v43 = vpop.eup %4292  ;;  %4296 = vpow2.f32 %v1250_v36 }
 0x2eb   : > { %1384 = vmatpush.bf16.xpose.msrb.mxu2 %v1360_v32  ;;  %1456 = vmatpush.bf16.xpose.msrb.mxu0 %v1360_v32  ;;  %v4295_v38 = vpop.eup %4294  ;;  %4298 = vpow2.f32 %v1252_v22  ;;  %v1358_v59 = vpack.c.bf16 %v4289_v51, %v4293_v43 }
 0x2ec   : > { %1397 = vmatpush.bf16.xpose.msrb.mxu3 %v1361_v33  ;;  %1475 = vmatpush.bf16.xpose.msrb.mxu1 %v1361_v33  ;;  %4300 = vpow2.f32 %v1246_v46  ;;  %v1359_v29 = vpack.c.bf16 %v4291_v63, %v4295_v38  ;;  %v5532_v25 = vpop.f32.mrf.mxu3 }
 0x2ed   : > { %v1079_v50 = vpop.xlane.xlu1 %1078  ;;  %4302 = vpow2.f32 %v1248_v58 }
 0x2ee   : > { %v1168_v55 = vsub.f32 %v5130_v16, %v1079_v50  ;;  %v1169_v54 = vsub.f32 %v5132_v17, %v1079_v50  ;;  %v1070_v16 = vpop.xlane.xlu2 %1069  ;;  %v1122_v17 = vmax.f32 %v5305_v40, %v5307_v37  ;;  %v5520_v35 = vpop.f32.mrf.mxu0 }
 0x2ef   : > { %v1162_v50 = vsub.f32 %v5116_v10, %v1070_v16  ;;  %v1163_v22 = vsub.f32 %v5118_v11, %v1070_v16 }
 0x2f0   : > { %v1242_v21 = vmul.f32 1.442695, %v1168_v55  ;;  %v1244_v26 = vmul.f32 1.442695, %v1169_v54  ;;  %v4297_v52 = vpop.eup %4296  ;;  %v7713_v55 = vld [vmem:[#allocation15_spill] sm:$0xff]  ;;  %v7714_v54 = vld [vmem:[#allocation16_spill] sm:$0xff] }
 0x2f1   : > { %v4299_v31 = vpop.eup %4298  ;;  %v1230_v46 = vmul.f32 1.442695, %v1162_v50  ;;  %v1232_v58 = vmul.f32 1.442695, %v1163_v22 }
 0x2f2   : > { %1132 = vmax.xlane.f32.xlu0 %v1131_v20  ;;  %v4301_v15 = vpop.eup %4300  ;;  %4304 = vpow2.f32 %v1242_v21  ;;  %v1125_v20 = vmax.f32 %v5316_v44, %v5318_v45 }
 0x2f3   : > { %1385 = vmatpush.bf16.xpose.msrb.mxu2 %v1358_v59  ;;  %1457 = vmatpush.bf16.xpose.msrb.mxu0 %v1358_v59  ;;  %v4303_v32 = vpop.eup %4302  ;;  %4306 = vpow2.f32 %v1244_v26  ;;  %v1356_v33 = vpack.c.bf16 %v4297_v52, %v4301_v15  ;;  %v7716_v26 = vld [vmem:[#allocation14_spill] sm:$0xff] }
 0x2f4   : > { %1398 = vmatpush.bf16.xpose.msrb.mxu3 %v1359_v29  ;;  %1476 = vmatpush.bf16.xpose.msrb.mxu1 %v1359_v29  ;;  %4308 = vpow2.f32 %v1238_v5  ;;  %v1357_v36 = vpack.c.bf16 %v4299_v31, %v4303_v32  ;;  %v5530_v29 = vpop.f32.mrf.mxu2 }
 0x2f5   : > { %v1073_v30 = vpop.xlane.xlu1 %1072  ;;  %4310 = vpow2.f32 %v1240_v8  ;;  %v1155_v8 = vmax.f32 %v5530_v29, %v5532_v25 }
 0x2f6   : > { %v1164_v47 = vsub.f32 %v5120_v12, %v1073_v30  ;;  %v1165_v28 = vsub.f32 %v5122_v13, %v1073_v30  ;;  %v1064_v43 = vpop.xlane.xlu2 %1063  ;;  %v7715_v30 = vld [vmem:[#allocation13_spill] sm:$0xff]  ;;  %v5536_v5 = vpop.f32.mrf.mxu0 }
 0x2f7   : > { %v1158_v21 = vsub.f32 %v7715_v30, %v1064_v43  ;;  %v1159_v52 = vsub.f32 %v7716_v26, %v1064_v43  ;;  %v7722_v43 = vld [vmem:[#allocation6_spill] sm:$0xff]  ;;  %v7725_v30 = vld [vmem:[#allocation27_spill] sm:$0xff] }
 0x2f8   : > { %v1234_v12 = vmul.f32 1.442695, %v1164_v47  ;;  %v1236_v23 = vmul.f32 1.442695, %v1165_v28  ;;  %v4305_v13 = vpop.eup %4304  ;;  %v7727_v26 = vld [vmem:[#allocation22_spill] sm:$0xff] }
 0x2f9   : > { %v4307_v63 = vpop.eup %4306  ;;  %v1222_v32 = vmul.f32 1.442695, %v1158_v21  ;;  %v7726_v21 = vld [vmem:[#allocation28_spill] sm:$0xff] }
 0x2fa   : > { %1123 = vmax.xlane.f32.xlu0 %v1122_v17  ;;  %v4309_v10 = vpop.eup %4308  ;;  %4312 = vpow2.f32 %v1234_v12  ;;  %v5538_v17 = vpop.f32.mrf.mxu1 }
 0x2fb   : > { %1386 = vmatpush.bf16.xpose.msrb.mxu2 %v1356_v33  ;;  %1458 = vmatpush.bf16.xpose.msrb.mxu0 %v1356_v33  ;;  %v4311_v11 = vpop.eup %4310  ;;  %4314 = vpow2.f32 %v1236_v23  ;;  %v1354_v60 = vpack.c.bf16 %v4305_v13, %v4309_v10  ;;  %v1224_v33 = vmul.f32 1.442695, %v1159_v52  ;;  %v7717_v23 = vld [vmem:[#allocation29_spill] sm:$0xff] }
 0x2fc   : > { %1399 = vmatpush.bf16.xpose.msrb.mxu3 %v1357_v36  ;;  %1477 = vmatpush.bf16.xpose.msrb.mxu1 %v1357_v36  ;;  %4316 = vpow2.f32 %v1230_v46  ;;  %v1355_v16 = vpack.c.bf16 %v4307_v63, %v4311_v11  ;;  %v7719_v46 = vld [vmem:[#allocation32_spill] sm:$0xff]  ;;  %v7728_v52 = vld [vmem:[#allocation21_spill] sm:$0xff] }
 0x2fd   : > { %v1067_v51 = vpop.xlane.xlu1 %1066  ;;  %4318 = vpow2.f32 %v1232_v58  ;;  %v7721_v58 = vld [vmem:[#allocation5_spill] sm:$0xff] }
 0x2fe   : > { %v1160_v38 = vsub.f32 %v7713_v55, %v1067_v51  ;;  %v1161_v59 = vsub.f32 %v7714_v54, %v1067_v51  ;;  %v7718_v51 = vld [vmem:[#allocation30_spill] sm:$0xff]  ;;  %v735_v10 = vpack.c.bf16 %v7722_v43, %v7721_v58  ;;  %v7723_v55 = vld [vmem:[#allocation25_spill] sm:$0xff]  ;;  %v5550_v54 = vpop.f32.mrf.mxu0  ;;  %v756_v58 = vpack.c.bf16 %v5522_v49, %v5520_v35  ;;  %v7734_v35 = vld [vmem:[#allocation24_spill] sm:$0xff] }
 0x2ff   : > { %v745_v13 = vpack.c.bf16 %v7718_v51, %v7717_v23  ;;  %v7735_v49 = vld [vmem:[#allocation23_spill] sm:$0xff] }
 0x300   : > { %v1226_v31 = vmul.f32 1.442695, %v1160_v38  ;;  %v1228_v15 = vmul.f32 1.442695, %v1161_v59  ;;  %v4313_v47 = vpop.eup %4312  ;;  %v7724_v38 = vld [vmem:[#allocation26_spill] sm:$0xff] }
 0x301   : > { %v4315_v28 = vpop.eup %4314  ;;  %v743_v11 = vpack.c.bf16 %v7724_v38, %v7723_v55  ;;  %v7733_v38 = vld [vmem:[#allocation41_spill] sm:$0xff] }
 0x302   : > { %1126 = vmax.xlane.f32.xlu0 %v1125_v20  ;;  %v4317_v50 = vpop.eup %4316  ;;  %4320 = vpow2.f32 %v1226_v31  ;;  %v7720_v20 = vld [vmem:[#allocation31_spill] sm:$0xff]  ;;  %v5552_v59 = vpop.f32.mrf.mxu1  ;;  %v1116_v31 = vmax.f32 %v7728_v52, %v7727_v26  ;;  %v3087_v52 = vunpack.c.h.b16 %v735_v10 }
 0x303   : > { %1387 = vmatpush.bf16.xpose.msrb.mxu2 %v1354_v60  ;;  %1459 = vmatpush.bf16.xpose.msrb.mxu0 %v1354_v60  ;;  %v4319_v36 = vpop.eup %4318  ;;  %4322 = vpow2.f32 %v1228_v15  ;;  %v1352_v22 = vpack.c.bf16 %v4313_v47, %v4317_v50  ;;  %v746_v63 = vpack.c.bf16 %v7720_v20, %v7719_v46  ;;  %v1594_v15 = vunpack.c.l.b16 %v745_v13 }
 0x304   : > { %1400 = vmatpush.bf16.xpose.msrb.mxu3 %v1355_v16  ;;  %1478 = vmatpush.bf16.xpose.msrb.mxu1 %v1355_v16  ;;  %4324 = vpow2.f32 %v1222_v32  ;;  %v1353_v12 = vpack.c.bf16 %v4315_v28, %v4319_v36  ;;  %v744_v16 = vpack.c.bf16 %v7726_v21, %v7725_v30  ;;  %v1595_v47 = vunpack.c.h.b16 %v745_v13  ;;  %v7729_v36 = vld [vmem:[#allocation7_spill] sm:$0xff]  ;;  %v7731_v13 = vld [vmem:[#allocation37_spill] sm:$0xff] }
 0x305   : > { %4326 = vpow2.f32 %v1224_v33  ;;  %v1596_v32 = vunpack.c.l.b16 %v746_v63  ;;  %v1597_v28 = vunpack.c.h.b16 %v746_v63  ;;  %v3086_v50 = vunpack.c.l.b16 %v735_v10  ;;  %v7732_v63 = vld [vmem:[#allocation40_spill] sm:$0xff] }
 0x306   : > { %v1590_v51 = vunpack.c.l.b16 %v743_v11  ;;  %v755_v46 = vpack.c.bf16 %v5506_v56, %v5504_v42  ;;  %v1591_v43 = vunpack.c.h.b16 %v743_v11  ;;  %v749_v55 = vpack.c.bf16 %v7731_v13, %v5399_v7 }
 0x307   : > { %v750_v30 = vpack.c.bf16 %v7733_v38, %v7732_v63  ;;  %v1592_v26 = vunpack.c.l.b16 %v744_v16  ;;  %v1119_v11 = vmax.f32 %v7735_v49, %v7734_v35  ;;  %v1441_v13 = vunpack.c.h.b16 %v756_v58 }
 0x308   : > { %v4321_v60 = vpop.eup %4320  ;;  %v1439_v7 = vunpack.c.h.b16 %v755_v46 }
 0x309   : > { %v1598_v10 = vpack.c.b16 %v1592_v26, %v1590_v51  ;;  %v7508_v26 = vmov 1065369472   ;;  %v7741_v51 = vld [vmem:[#allocation18_spill] sm:$0xff] }
 0x30a   : > { %1156 = vmax.xlane.f32.xlu0 %v1155_v8  ;;  %v4323_v8 = vpop.eup %4322  ;;  %v5572_v38 = vpack.c.b16 %v1441_v13, %v1439_v7  ;;  %v757_v7 = vpack.c.bf16 %v5538_v17, %v5536_v5 }
 0x30b   : > { %1388 = vmatpush.bf16.xpose.msrb.mxu2 %v1352_v22  ;;  %1460 = vmatpush.bf16.xpose.msrb.mxu0 %v1352_v22  ;;  %v4325_v33 = vpop.eup %4324  ;;  %v7730_v22 = vld [vmem:[#allocation8_spill] sm:$0xff] }
 0x30c   : > { %1401 = vmatpush.bf16.xpose.msrb.mxu3 %v1353_v12  ;;  %1479 = vmatpush.bf16.xpose.msrb.mxu1 %v1353_v12  ;;  %v736_v12 = vpack.c.bf16 %v7730_v22, %v7729_v36  ;;  %v4327_v23 = vpop.eup %4326  ;;  %v1350_v20 = vpack.c.bf16 %v4321_v60, %v4325_v33  ;;  %v1593_v36 = vunpack.c.h.b16 %v744_v16  ;;  %v1601_v22 = vpack.c.b16 %v1597_v28, %v1595_v47  ;;  %v687_v16 = vpop.f32.mrf.mxu1 }
 0x30d   : > { %v1351_v21 = vpack.c.bf16 %v4323_v8, %v4327_v23  ;;  %v1438_v60 = vunpack.c.l.b16 %v755_v46  ;;  %v1440_v33 = vunpack.c.l.b16 %v756_v58  ;;  %v526_v8 = vpop.f32.mrf.mxu0  ;;  %v2365_v47 = vunpack.c.h.b16 %v749_v55  ;;  %7737 = vst [vmem:[#allocation16_spill] sm:$0xff] %v5572_v38 }
 0x30e   : > { %v3088_v42 = vunpack.c.l.b16 %v736_v12  ;;  %v3089_v56 = vunpack.c.h.b16 %v736_v12  ;;  %v2367_v28 = vunpack.c.h.b16 %v750_v30  ;;  %v1599_v23 = vpack.c.b16 %v1593_v36, %v1591_v43  ;;  %v7742_v43 = vld [vmem:[#allocation17_spill] sm:$0xff]  ;;  %v7744_v36 = vld [vmem:[#allocation10_spill] sm:$0xff] }
 0x30f   : > { %v5570_v63 = vpack.c.b16 %v1440_v33, %v1438_v60  ;;  %v5574_v46 = vpack.c.bf16 %v687_v16, %v526_v8  ;;  %v7748_v60 = vld [vmem:[#allocation36_spill] sm:$0xff]  ;;  %v758_v33 = vpack.c.bf16 %v5552_v59, %v5550_v54  ;;  %v753_v59 = vpack.c.bf16 %v5465_v24, %v5462_v34 }
 0x310   : > { %v3094_v12 = vpack.c.b16 %v3088_v42, %v3086_v50  ;;  %v7746_v42 = vld [vmem:[#allocation12_spill] sm:$0xff] }
 0x311   : > { %7736 = vst [vmem:[#allocation15_spill] sm:$0xff] %v5570_v63 }
 0x312   : > { %1117 = vmax.xlane.f32.xlu0 %v1116_v31  ;;  %v1600_v31 = vpack.c.b16 %v1596_v32, %v1594_v15  ;;  %v2364_v15 = vunpack.c.l.b16 %v749_v55  ;;  %v2366_v32 = vunpack.c.l.b16 %v750_v30  ;;  %7738 = vst [vmem:[#allocation13_spill] sm:$0xff] %v5574_v46  ;;  %v1110_v55 = vmax.f32 %v7742_v43, %v7741_v51  ;;  %v7743_v30 = vld [vmem:[#allocation9_spill] sm:$0xff] }
 0x313   : > { %1389 = vmatpush.bf16.xpose.msrb.mxu2 %v1350_v20  ;;  %1461 = vmatpush.bf16.xpose.msrb.mxu0 %v1350_v20  ;;  %v3095_v20 = vpack.c.b16 %v3089_v56, %v3087_v52 }
 0x314   : > { %1402 = vmatpush.bf16.xpose.msrb.mxu3 %v1351_v21  ;;  %1480 = vmatpush.bf16.xpose.msrb.mxu1 %v1351_v21  ;;  %v2370_v58 = vpack.c.b16 %v2366_v32, %v2364_v15  ;;  %v2371_v21 = vpack.c.b16 %v2367_v28, %v2365_v47  ;;  %v5582_v50 = vpop.f32.mrf.mxu1  ;;  %v1442_v47 = vunpack.c.l.b16 %v757_v7  ;;  %v1443_v32 = vunpack.c.h.b16 %v757_v7 }
 0x315   : > { %v5580_v52 = vpop.f32.mrf.mxu0  ;;  %7740 = vst [vmem:[#allocation29_spill] sm:$0xff] %v5582_v50  ;;  %v1444_v28 = vunpack.c.l.b16 %v758_v33 }
 0x316   : > { %7739 = vst [vmem:[#allocation14_spill] sm:$0xff] %v5580_v52 }
 0x31a   : > { %1120 = vmax.xlane.f32.xlu0 %v1119_v11  ;;  %1462 = vmatmul.bf16.vlgmr.msrb.gmra.mxu0 %v5570_v63  ;;  %v7747_v11 = vld [vmem:[#allocation35_spill] sm:$0xff] }
 0x31b   : > { %1660 = vmatpush.bf16.msra.mxu0 %v1600_v31  ;;  %1481 = vmatmul.bf16.vlgmr.msrb.gmra.mxu1 %v5572_v38  ;;  %v737_v31 = vpack.c.bf16 %v7744_v36, %v7743_v30 }
 0x31c   : > { %1749 = vmatpush.bf16.msra.mxu1 %v1601_v22  ;;  %1390 = vmatmul.bf16.vlgmr.msrb.gmra.mxu2 %v7508_v26  ;;  %v7745_v22 = vld [vmem:[#allocation11_spill] sm:$0xff] }
 0x31d   : > { %3102 = vxpose.binary.xlu2.c.b16.start [1/4] (short) %v3095_v20, %v3094_v12, 128  ;;  %v738_v56 = vpack.c.bf16 %v7746_v42, %v7745_v22  ;;  %v3090_v13 = vunpack.c.l.b16 %v737_v31  ;;  %v3091_v8 = vunpack.c.h.b16 %v737_v31  ;;  %v693_v12 = vpop.f32.mrf.mxu1  ;;  %v3134_v42 = vunpack.c.l.b16 %v753_v59 }
 0x31e   : > { %1403 = vmatmul.bf16.vlgmr.msrb.gmra.mxu3 %v7508_v26 }
 0x31f   : > { %1661 = vmatpush.bf16.msra.mxu0 %v1598_v10  ;;  %v3092_v16 = vunpack.c.l.b16 %v738_v56  ;;  %v3093_v15 = vunpack.c.h.b16 %v738_v56  ;;  %v1445_v10 = vunpack.c.h.b16 %v758_v33  ;;  %v3135_v56 = vunpack.c.h.b16 %v753_v59 }
 0x320   : > { %1750 = vmatpush.bf16.msra.mxu1 %v1599_v23  ;;  %v532_v23 = vpop.f32.mrf.mxu0 }
 0x321   : > { %v3096_v20 = vpack.c.b16 %v3092_v16, %v3090_v13  ;;  %v5598_v30 = vpack.c.b16 %v1445_v10, %v1443_v32  ;;  %v5600_v5 = vpack.c.bf16 %v693_v12, %v532_v23 }
 0x322   : > { %1111 = vmax.xlane.f32.xlu0 %v1110_v55  ;;  %v754_v55 = vpack.c.bf16 %v5480_v18, %v5478_v62  ;;  %v7757_v62 = vld [vmem:[#allocation33_spill] sm:$0xff] }
 0x323   : > { %2430 = vmatpush.bf16.msrb.mxu0 %v2370_v58  ;;  %v3097_v58 = vpack.c.b16 %v3093_v15, %v3091_v8  ;;  %7750 = vst [vmem:[#allocation32_spill] sm:$0xff] %v5598_v30  ;;  %v7758_v15 = vld [vmem:[#allocation34_spill] sm:$0xff] }
 0x324   : > { %2519 = vmatpush.bf16.msrb.mxu1 %v2371_v21  ;;  %v5596_v21 = vpack.c.b16 %v1444_v28, %v1442_v47  ;;  %7751 = vst [vmem:[#allocation31_spill] sm:$0xff] %v5600_v5 }
 0x325   : > { %v5606_v54 = vpop.f32.mrf.mxu1 }
 0x326   : > { %7749 = vst [vmem:[#allocation30_spill] sm:$0xff] %v5596_v21 }
 0x327   : > { %2431 = vmatpush.bf16.msrb.mxu0 %v7747_v11  ;;  %7753 = vst [vmem:[#allocation6_spill] sm:$0xff] %v5606_v54  ;;  %v3136_v11 = vunpack.c.l.b16 %v754_v55 }
 0x328   : > { %2520 = vmatpush.bf16.msrb.mxu1 %v7748_v60  ;;  %v5604_v17 = vpop.f32.mrf.mxu0  ;;  %v3137_v60 = vunpack.c.h.b16 %v754_v55 }
 0x329   : > { %7752 = vst [vmem:[#allocation5_spill] sm:$0xff] %v5604_v17  ;;  %v3140_v33 = vpack.c.b16 %v3136_v11, %v3134_v42 }
 0x32a   : > { %1467 = vmatmul.bf16.gmra.mxu0 %v5596_v21  ;;  %v3141_v13 = vpack.c.b16 %v3137_v60, %v3135_v56 }
 0x32b   : > { %1486 = vmatmul.bf16.gmra.mxu1 %v5598_v30 }
 0x32d   : > { %3103 = vxpose.binary.xlu2.c.b16.end [2/4] (short) %v3097_v58, %v3096_v20, 128  ;;  %v699_v22 = vpop.f32.mrf.mxu1 }
 0x330   : > { %v538_v31 = vpop.f32.mrf.mxu0 }
 0x331   : > { %v5614_v7 = vpack.c.bf16 %v699_v22, %v538_v31 }
 0x333   : > { %7754 = vst [vmem:[#allocation25_spill] sm:$0xff] %v5614_v7 }
 0x335   : > { %v5612_v36 = vpop.xlane.xlu0 %1147  ;;  %v5620_v24 = vpop.f32.mrf.mxu1 }
 0x336   : > { %7756 = vst [vmem:[#allocation27_spill] sm:$0xff] %v5620_v24 }
 0x338   : > { %v5618_v34 = vpop.f32.mrf.mxu0 }
 0x339   : > { %7755 = vst [vmem:[#allocation26_spill] sm:$0xff] %v5618_v34 }
 0x33c   : > { %v1570_v8 = vpop.trf.xlu2 }
 0x33d   : > { %v1142_v16 = vpop.xlane.xlu0 %1141  ;;  %4118 = vmatmul.msk.bf16.vlgmr.msra.gmra.mxu0 %vm835_vm2, %v1570_v8  ;;  %4134 = vmatmul.msk.bf16.vlgmr.msra.gmra.mxu1 %vm835_vm2, %v1570_v8  ;;  %v705_v59 = vpop.f32.mrf.mxu1 }
 0x33e   : > { %3200 = vmatpush.bf16.msra.mxu0 %v3140_v33  ;;  %3289 = vmatpush.bf16.msra.mxu1 %v3141_v13  ;;  %v1210_v18 = vsub.f32 %v7757_v62, %v1142_v16  ;;  %v1211_v47 = vsub.f32 %v7758_v15, %v1142_v16 }
 0x340   : > { %v1326_v32 = vmul.f32 1.442695, %v1210_v18  ;;  %v1328_v10 = vmul.f32 1.442695, %v1211_v47  ;;  %v544_v58 = vpop.f32.mrf.mxu0 }
 0x342   : > { %3201 = vmatpush.bf16.msra.mxu0 %v5455_v39  ;;  %3290 = vmatpush.bf16.msra.mxu1 %v5457_v61  ;;  %4328 = vpow2.f32 %v1326_v32  ;;  %v5630_v39 = vpack.c.bf16 %v705_v59, %v544_v58 }
 0x343   : > { %4330 = vpow2.f32 %v1328_v10 }
 0x344   : > { %v5626_v28 = vpop.trf.xlu2  ;;  %7759 = vst [vmem:[#allocation28_spill] sm:$0xff] %v5630_v39 }
 0x345   : > { %v1145_v23 = vpop.xlane.xlu0 %1144 }
 0x346   : > { %v1212_v12 = vsub.f32 %v5390_v53, %v1145_v23  ;;  %v1213_v20 = vsub.f32 %v5392_v9, %v1145_v23  ;;  %v5636_v9 = vpop.f32.mrf.mxu1 }
 0x347   : > { %7761 = vst [vmem:[#allocation8_spill] sm:$0xff] %v5636_v9 }
 0x348   : > { %v1330_v55 = vmul.f32 1.442695, %v1212_v12  ;;  %v1332_v31 = vmul.f32 1.442695, %v1213_v20  ;;  %v4329_v42 = vpop.eup %4328  ;;  %v5634_v56 = vpop.f32.mrf.mxu0 }
 0x349   : > { %v4331_v53 = vpop.eup %4330  ;;  %7760 = vst [vmem:[#allocation7_spill] sm:$0xff] %v5634_v56 }
 0x34a   : > { %4332 = vpow2.f32 %v1330_v55 }
 0x34b   : > { %4334 = vpow2.f32 %v1332_v31 }
 0x34c   : > { %v1572_v61 = vpop.trf.xlu2 }
 0x34d   : > { %v1136_v22 = vpop.xlane.xlu0 %1135  ;;  %4119 = vmatmul.msk.bf16.gmra.mxu0 %vm835_vm2, %v1572_v61  ;;  %4135 = vmatmul.msk.bf16.gmra.mxu1 %vm835_vm2, %v1572_v61 }
 0x34e   : > { %v1206_v60 = vsub.f32 %v5356_v3, %v1136_v22  ;;  %v1207_v13 = vsub.f32 %v5358_v4, %v1136_v22  ;;  %v711_v12 = vpop.f32.mrf.mxu1 }
 0x350   : > { %v4333_v11 = vpop.eup %4332  ;;  %v1318_v62 = vmul.f32 1.442695, %v1206_v60  ;;  %v1320_v15 = vmul.f32 1.442695, %v1207_v13  ;;  %v550_v23 = vpop.f32.mrf.mxu0 }
 0x351   : > { %v4335_v33 = vpop.eup %4334  ;;  %v5640_v8 = vpack.c.bf16 %v4333_v11, %v4329_v42  ;;  %v5648_v4 = vpack.c.bf16 %v711_v12, %v550_v23 }
 0x352   : > { %v5642_v16 = vpack.c.bf16 %v4335_v33, %v4331_v53  ;;  %4336 = vpow2.f32 %v1318_v62 }
 0x353   : > { %4338 = vpow2.f32 %v1320_v15  ;;  %7762 = vst [vmem:[#allocation37_spill] sm:$0xff] %v5648_v4 }
 0x354   : > { %v5644_v18 = vpop.trf.xlu2 }
 0x355   : > { %v1139_v47 = vpop.xlane.xlu0 %1138 }
 0x356   : > { %v1208_v32 = vsub.f32 %v5368_v48, %v1139_v47  ;;  %v1209_v10 = vsub.f32 %v5370_v27, %v1139_v47  ;;  %v5655_v22 = vpop.f32.mrf.mxu1 }
 0x357   : > { %7764 = vst [vmem:[#allocation41_spill] sm:$0xff] %v5655_v22 }
 0x358   : > { %v1322_v3 = vmul.f32 1.442695, %v1208_v32  ;;  %v1324_v20 = vmul.f32 1.442695, %v1209_v10  ;;  %v4337_v55 = vpop.eup %4336  ;;  %v5653_v61 = vpop.f32.mrf.mxu0 }
 0x359   : > { %v4339_v48 = vpop.eup %4338  ;;  %7763 = vst [vmem:[#allocation40_spill] sm:$0xff] %v5653_v61 }
 0x35a   : > { %4340 = vpow2.f32 %v1322_v3 }
 0x35b   : > { %4342 = vpow2.f32 %v1324_v20 }
 0x35c   : > { %v1574_v58 = vpop.trf.xlu2 }
 0x35d   : > { %v1130_v59 = vpop.xlane.xlu0 %1129  ;;  %4120 = vmatmul.msk.bf16.gmra.mxu0 %vm835_vm2, %v1574_v58  ;;  %4136 = vmatmul.msk.bf16.gmra.mxu1 %vm835_vm2, %v1574_v58 }
 0x35e   : > { %v1202_v27 = vsub.f32 %v5326_v6, %v1130_v59  ;;  %v1203_v53 = vsub.f32 %v5328_v2, %v1130_v59  ;;  %v717_v2 = vpop.f32.mrf.mxu1 }
 0x360   : > { %v4341_v31 = vpop.eup %4340  ;;  %v1310_v33 = vmul.f32 1.442695, %v1202_v27  ;;  %v1312_v62 = vmul.f32 1.442695, %v1203_v53  ;;  %v556_v23 = vpop.f32.mrf.mxu0 }
 0x361   : > { %v4343_v42 = vpop.eup %4342  ;;  %v5658_v11 = vpack.c.bf16 %v4341_v31, %v4337_v55  ;;  %v5666_v12 = vpack.c.bf16 %v717_v2, %v556_v23 }
 0x362   : > { %v5660_v60 = vpack.c.bf16 %v4343_v42, %v4339_v48  ;;  %4344 = vpow2.f32 %v1310_v33 }
 0x363   : > { %4346 = vpow2.f32 %v1312_v62  ;;  %7765 = vst [vmem:[#allocation24_spill] sm:$0xff] %v5666_v12 }
 0x364   : > { %v5662_v13 = vpop.trf.xlu2 }
 0x365   : > { %v1133_v15 = vpop.xlane.xlu0 %1132 }
 0x366   : > { %v1204_v47 = vsub.f32 %v5343_v41, %v1133_v15  ;;  %v1205_v6 = vsub.f32 %v5345_v1, %v1133_v15 }
 0x368   : > { %v1314_v32 = vmul.f32 1.442695, %v1204_v47  ;;  %v1316_v10 = vmul.f32 1.442695, %v1205_v6  ;;  %v4345_v58 = vpop.eup %4344 }
 0x369   : > { %v4347_v41 = vpop.eup %4346 }
 0x36a   : > { %4348 = vpow2.f32 %v1314_v32 }
 0x36b   : > { %4350 = vpow2.f32 %v1316_v10 }
 0x36c   : > { %v1576_v3 = vpop.trf.xlu2 }
 0x36d   : > { %v1124_v20 = vpop.xlane.xlu0 %1123  ;;  %4121 = vmatmul.msk.bf16.gmra.mxu0 %vm835_vm2, %v1576_v3  ;;  %4137 = vmatmul.msk.bf16.gmra.mxu1 %vm835_vm2, %v1576_v3 }
 0x36e   : > { %v1198_v1 = vsub.f32 %v5305_v40, %v1124_v20  ;;  %v1199_v31 = vsub.f32 %v5307_v37, %v1124_v20 }
 0x370   : > { %v4349_v59 = vpop.eup %4348  ;;  %v5671_v55 = vpop.trf.xlu1  ;;  %v1302_v53 = vmul.f32 1.442695, %v1198_v1  ;;  %v1304_v62 = vmul.f32 1.442695, %v1199_v31 }
 0x371   : > { %v4351_v48 = vpop.eup %4350  ;;  %v5674_v27 = vpack.c.bf16 %v4349_v59, %v4345_v58  ;;  %v5700_v31 = vpop.f32.mrf.mxu0 }
 0x372   : > { %v5676_v42 = vpack.c.bf16 %v4351_v48, %v4347_v41  ;;  %4352 = vpow2.f32 %v1302_v53  ;;  %7766 = vst [vmem:[#allocation23_spill] sm:$0xff] %v5700_v31  ;;  %v5702_v53 = vpop.f32.mrf.mxu1 }
 0x373   : > { %4354 = vpow2.f32 %v1304_v62  ;;  %7767 = vst [vmem:[#allocation18_spill] sm:$0xff] %v5702_v53  ;;  %v1152_v62 = vmax.f32 %v5514_v14, %v5516_v0 }
 0x374   : > { %v5678_v33 = vpop.trf.xlu2 }
 0x375   : > { %v1127_v15 = vpop.xlane.xlu0 %1126 }
 0x376   : > { %v1200_v47 = vsub.f32 %v5316_v44, %v1127_v15  ;;  %v1201_v6 = vsub.f32 %v5318_v45, %v1127_v15 }
 0x378   : > { %v1306_v40 = vmul.f32 1.442695, %v1200_v47  ;;  %v1308_v32 = vmul.f32 1.442695, %v1201_v6  ;;  %v5682_v10 = vpop.trf.xlu1  ;;  %v4353_v23 = vpop.eup %4352 }
 0x379   : > { %v4355_v2 = vpop.eup %4354 }
 0x37a   : > { %4356 = vpow2.f32 %v1306_v40 }
 0x37b   : > { %4358 = vpow2.f32 %v1308_v32  ;;  %v7769_v32 = vld [vmem:[#allocation20_spill] sm:$0xff] }
 0x37c   : > { %v1578_v37 = vpop.trf.xlu2 }
 0x37d   : > { %4122 = vmatmul.msk.bf16.gmra.mxu0 %vm835_vm2, %v1578_v37  ;;  %4138 = vmatmul.msk.bf16.gmra.mxu1 %vm835_vm2, %v1578_v37  ;;  %v7770_v37 = vld [vmem:[#allocation19_spill] sm:$0xff] }
 0x380   : > { %v4357_v3 = vpop.eup %4356  ;;  %v5686_v20 = vpop.trf.xlu1 }
 0x381   : > { %v4359_v44 = vpop.eup %4358  ;;  %v5688_v45 = vpack.c.bf16 %v4357_v3, %v4353_v23  ;;  %v1113_v23 = vmax.f32 %v7770_v37, %v7769_v32 }
 0x382   : > { %v5690_v58 = vpack.c.bf16 %v4359_v44, %v4355_v2 }
 0x384   : > { %v5692_v41 = vpop.trf.xlu2 }
 0x388   : > { %v5694_v59 = vpop.trf.xlu1 }
 0x38c   : > { %v1580_v1 = vpop.trf.xlu2 }
 0x38d   : > { %4123 = vmatmul.msk.bf16.gmra.mxu0 %vm835_vm2, %v1580_v1  ;;  %4139 = vmatmul.msk.bf16.gmra.mxu1 %vm835_vm2, %v1580_v1 }
 0x390   : > { %v5698_v48 = vpop.trf.xlu1 }
 0x394   : > { %v5706_v15 = vpop.trf.xlu2  ;;  %1153 = vmax.xlane.f32.xlu1 %v1152_v62 }
 0x397   : > { %v1463_v6 = vpop.f32.mrf.mxu0 }
 0x398   : > { %v5708_v47 = vpop.trf.xlu1  ;;  %v1482_v40 = vpop.f32.mrf.mxu1 }
 0x399   : > { %7768 = vst [vmem:[#allocation17_spill] sm:$0xff] %v5708_v47  ;;  %v1483_v2 = vadd.f32 %v1482_v40, %v1463_v6 }
 0x39c   : > { %v1582_v3 = vpop.trf.xlu2  ;;  %1114 = vmax.xlane.f32.xlu1 %v1113_v23 }
 0x39d   : > { %4124 = vmatmul.msk.bf16.gmra.mxu0 %vm835_vm2, %v1582_v3  ;;  %4140 = vmatmul.msk.bf16.gmra.mxu1 %vm835_vm2, %v1582_v3 }
 0x39f   : > { %v1465_v1 = vpop.f32.mrf.mxu0  ;;  %v1391_v62 = vpop.f32.mrf.mxu2 }
 0x3a0   : > { %v5714_v44 = vpop.trf.xlu1  ;;  %v1484_v26 = vpop.f32.mrf.mxu1 }
 0x3a1   : > { %v1485_v12 = vadd.f32 %v1484_v26, %v1465_v1  ;;  %v1404_v53 = vpop.f32.mrf.mxu3 }
 0x3a2   : > { %v1405_v31 = vadd.f32 %v1404_v53, %v1391_v62 }
 0x3a4   : > { %v5716_v4 = vpop.trf.xlu2  ;;  %4360 = vrcp.f32 %v1405_v31 }
 0x3a7   : > { %v1468_v22 = vpop.f32.mrf.mxu0  ;;  %v1393_v40 = vpop.f32.mrf.mxu2 }
 0x3a8   : > { %v1487_v61 = vpop.f32.mrf.mxu1  ;;  %v5720_v3 = vpop.trf.xlu1 }
 0x3a9   : > { %v1488_v6 = vadd.f32 %v1487_v61, %v1468_v22  ;;  %v1406_v23 = vpop.f32.mrf.mxu3  ;;  %7771 = vst [vmem:[#allocation9_spill] sm:$0xff] %v5720_v3 }
 0x3aa   : > { %v4361_v39 = vpop.eup %4360 }
 0x3ab   : > { %v1532_v56 = vperm.slane %v4361_v39, 0 }
 0x3ac   : > { %v1584_v9 = vpop.trf.xlu2 }
 0x3ad   : > { %4125 = vmatmul.msk.bf16.gmra.mxu0 %vm835_vm2, %v1584_v9  ;;  %4141 = vmatmul.msk.bf16.gmra.mxu1 %vm835_vm2, %v1584_v9  ;;  %v5722_v26 = vmul.f32 %v1532_v56, %v1488_v6  ;;  %v5724_v53 = vmul.f32 %v1532_v56, %v1485_v12  ;;  %v5726_v1 = vmul.f32 %v1532_v56, %v1483_v2 }
 0x3af   : > { %7772 = vst [vmem:[#allocation10_spill] sm:$0xff] %v5722_v26  ;;  %v1470_v31 = vpop.f32.mrf.mxu0 }
 0x3b0   : > { %7773 = vst [vmem:[#allocation11_spill] sm:$0xff] %v5724_v53  ;;  %v1489_v62 = vpop.f32.mrf.mxu1  ;;  %v5730_v40 = vpop.trf.xlu1 }
 0x3b1   : > { %7774 = vst [vmem:[#allocation12_spill] sm:$0xff] %v5726_v1  ;;  %v1490_v61 = vadd.f32 %v1489_v62, %v1470_v31 }
 0x3b3   : > { %v5728_v22 = vmul.f32 %v1532_v56, %v1490_v61 }
 0x3b4   : > { %v5746_v56 = vpop.trf.xlu2 }
 0x3b5   : > { %7775 = vst [vmem:[#allocation35_spill] sm:$0xff] %v5728_v22 }
 0x3b8   : > { %v5740_v9 = vpop.trf.xlu1 }
 0x3b9   : > { %7776 = vst [vmem:[#allocation36_spill] sm:$0xff] %v5740_v9 }
 0x3ba   : > { %v5732_v39 = vpop.f32.mrf.mxu0  ;;  %v5734_v23 = vpop.f32.mrf.mxu1 }
 0x3bd   : > { %4126 = vmatmul.msk.bf16.gmra.mxu0 %vm835_vm2, %v5626_v28  ;;  %4142 = vmatmul.msk.bf16.gmra.mxu1 %vm835_vm2, %v5626_v28 }
 0x3be   : > { %v5758_v28 = vpop.trf.xlu2 }
 0x3bf   : > { %7779 = vst [vmem:[#allocation20_spill] sm:$0xff] %v5758_v28 }
 0x3c0   : > { %v5752_v62 = vpop.trf.xlu1 }
 0x3c2   : > { %v5742_v12 = vpop.f32.mrf.mxu0  ;;  %v5744_v2 = vpop.f32.mrf.mxu1 }
 0x3c6   : > { %v5766_v26 = vpop.trf.xlu2 }
 0x3c7   : > { %7783 = vst [vmem:[#allocation44_spill] sm:$0xff] %v5766_v26 }
 0x3c8   : > { %v5764_v53 = vpop.trf.xlu1 }
 0x3c9   : > { %7782 = vst [vmem:[#allocation43_spill] sm:$0xff] %v5764_v53 }
 0x3ca   : > { %v5748_v6 = vpop.f32.mrf.mxu0  ;;  %v5750_v31 = vpop.f32.mrf.mxu1 }
 0x3cb   : > { %7777 = vst [vmem:[#allocation33_spill] sm:$0xff] %v5748_v6 }
 0x3cc   : > { %7778 = vst [vmem:[#allocation34_spill] sm:$0xff] %v5750_v31 }
 0x3cd   : > { %4127 = vmatmul.msk.bf16.gmra.mxu0 %vm835_vm2, %v5644_v18  ;;  %4143 = vmatmul.msk.bf16.gmra.mxu1 %vm835_vm2, %v5644_v18 }
 0x3ce   : > { %v5782_v5 = vpop.trf.xlu2 }
 0x3cf   : > { %7788 = vst [vmem:[#allocation49_spill] sm:$0xff] %v5782_v5 }
 0x3d0   : > { %v5776_v18 = vpop.trf.xlu1 }
 0x3d2   : > { %v5760_v61 = vpop.f32.mrf.mxu0  ;;  %v5762_v1 = vpop.f32.mrf.mxu1 }
 0x3d3   : > { %7780 = vst [vmem:[#allocation19_spill] sm:$0xff] %v5760_v61 }
 0x3d4   : > { %7781 = vst [vmem:[#allocation42_spill] sm:$0xff] %v5762_v1 }
 0x3d8   : > { %v5784_v54 = vpop.trf.xlu1 }
 0x3d9   : > { %7789 = vst [vmem:[#allocation50_spill] sm:$0xff] %v5784_v54 }
 0x3da   : > { %v5768_v22 = vpop.f32.mrf.mxu0  ;;  %v5770_v7 = vpop.f32.mrf.mxu1 }
 0x3db   : > { %7784 = vst [vmem:[#allocation45_spill] sm:$0xff] %v5768_v22 }
 0x3dc   : > { %7785 = vst [vmem:[#allocation46_spill] sm:$0xff] %v5770_v7 }
 0x3dd   : > { %4128 = vmatmul.msk.bf16.gmra.mxu0 %vm835_vm2, %v5662_v13  ;;  %4144 = vmatmul.msk.bf16.gmra.mxu1 %vm835_vm2, %v5662_v13  ;;  %v5796_v13 = vpop.trf.xlu2 }
 0x3de   : > { %7790 = vst [vmem:[#allocation51_spill] sm:$0xff] %v5796_v13 }
 0x3e0   : > { %v5804_v28 = vpop.trf.xlu1 }
 0x3e2   : > { %v5778_v24 = vpop.f32.mrf.mxu0  ;;  %v5780_v34 = vpop.f32.mrf.mxu1 }
 0x3e3   : > { %7786 = vst [vmem:[#allocation47_spill] sm:$0xff] %v5778_v24 }
 0x3e4   : > { %7787 = vst [vmem:[#allocation48_spill] sm:$0xff] %v5780_v34 }
 0x3e5   : > { %v5806_v54 = vpop.trf.xlu2 }
 0x3e6   : > { %7791 = vst [vmem:[#allocation52_spill] sm:$0xff] %v5806_v54 }
 0x3e8   : > { %v5818_v13 = vpop.trf.xlu1 }
 0x3e9   : > { %7794 = vst [vmem:[#allocation55_spill] sm:$0xff] %v5818_v13 }
 0x3ea   : > { %v5786_v17 = vpop.f32.mrf.mxu0  ;;  %v5788_v26 = vpop.f32.mrf.mxu1 }
 0x3eb   : > { %v1850_v46 = vmax.f32 %v5786_v17, %v5788_v26 }
 0x3ed   : > { %4129 = vmatmul.msk.bf16.gmra.mxu0 %vm835_vm2, %v5678_v33  ;;  %4145 = vmatmul.msk.bf16.gmra.mxu1 %vm835_vm2, %v5678_v33  ;;  %v1149_v33 = vmax.f32 %v5496_v57, %v5498_v19  ;;  %v5822_v54 = vpop.trf.xlu2 }
 0x3ee   : > { %1851 = vmax.xlane.f32.xlu0 %v1850_v46  ;;  %7795 = vst [vmem:[#allocation56_spill] sm:$0xff] %v5822_v54 }
 0x3f2   : > { %v5798_v50 = vpop.f32.mrf.mxu0  ;;  %v5800_v52 = vpop.f32.mrf.mxu1 }
 0x3f3   : > { %v1853_v5 = vmax.f32 %v5798_v50, %v5800_v52 }
 0x3f5   : > { %1854 = vmax.xlane.f32.xlu1 %v1853_v5  ;;  %v1157_v5 = vpop.xlane.xlu0 %1156 }
 0x3f6   : > { %v1220_v21 = vsub.f32 %v5530_v29, %v1157_v5 }
 0x3f8   : > { %v1346_v13 = vmul.f32 1.442695, %v1220_v21 }
 0x3fa   : > { %v5808_v53 = vpop.f32.mrf.mxu0  ;;  %v5810_v30 = vpop.f32.mrf.mxu1  ;;  %4362 = vpow2.f32 %v1346_v13 }
 0x3fb   : > { %7792 = vst [vmem:[#allocation53_spill] sm:$0xff] %v5808_v53  ;;  %v1856_v46 = vmax.f32 %v5808_v53, %v5810_v30 }
 0x3fc   : > { %7793 = vst [vmem:[#allocation54_spill] sm:$0xff] %v5810_v30 }
 0x3fd   : > { %4130 = vmatmul.msk.bf16.gmra.mxu0 %vm835_vm2, %v5692_v41  ;;  %4146 = vmatmul.msk.bf16.gmra.mxu1 %vm835_vm2, %v5692_v41 }
 0x3fe   : > { %1150 = vmax.xlane.f32.xlu2 %v1149_v33  ;;  %1857 = vmax.xlane.f32.xlu0 %v1856_v46  ;;  %v1221_v33 = vsub.f32 %v5532_v25, %v1157_v5  ;;  %v5840_v5 = vpop.trf.xlu2 }
 0x3ff   : > { %7800 = vst [vmem:[#allocation61_spill] sm:$0xff] %v5840_v5 }
 0x400   : > { %v1348_v63 = vmul.f32 1.442695, %v1221_v33 }
 0x402   : > { %v5825_v9 = vpop.f32.mrf.mxu0  ;;  %v5827_v38 = vpop.f32.mrf.mxu1  ;;  %4364 = vpow2.f32 %v1348_v63 }
 0x403   : > { %7796 = vst [vmem:[#allocation57_spill] sm:$0xff] %v5825_v9  ;;  %v1859_v30 = vmax.f32 %v5825_v9, %v5827_v38 }
 0x404   : > { %7797 = vst [vmem:[#allocation58_spill] sm:$0xff] %v5827_v38 }
 0x405   : > { %1860 = vmax.xlane.f32.xlu1 %v1859_v30 }
 0x407   : > { %v1154_v53 = vpop.xlane.xlu1 %1153 }
 0x408   : > { %v1218_v41 = vsub.f32 %v5514_v14, %v1154_v53  ;;  %v1219_v46 = vsub.f32 %v5516_v0, %v1154_v53  ;;  %v4363_v14 = vpop.eup %4362 }
 0x409   : > { %v4365_v0 = vpop.eup %4364 }
 0x40a   : > { %v1342_v54 = vmul.f32 1.442695, %v1218_v41  ;;  %v1344_v29 = vmul.f32 1.442695, %v1219_v46  ;;  %v5834_v3 = vpop.f32.mrf.mxu0  ;;  %v5836_v47 = vpop.f32.mrf.mxu1 }
 0x40b   : > { %7798 = vst [vmem:[#allocation59_spill] sm:$0xff] %v5834_v3  ;;  %v1862_v25 = vmax.f32 %v5834_v3, %v5836_v47  ;;  %v5857_v41 = vpop.trf.xlu2 }
 0x40c   : > { %7799 = vst [vmem:[#allocation60_spill] sm:$0xff] %v5836_v47  ;;  %4366 = vpow2.f32 %v1342_v54 }
 0x40d   : > { %4368 = vpow2.f32 %v1344_v29  ;;  %4131 = vmatmul.msk.bf16.gmra.mxu0 %vm835_vm2, %v5706_v15  ;;  %1863 = vmax.xlane.f32.xlu0 %v1862_v25  ;;  %7803 = vst [vmem:[#allocation64_spill] sm:$0xff] %v5857_v41 }
 0x40e   : > { %4147 = vmatmul.msk.bf16.gmra.mxu1 %vm835_vm2, %v5706_v15 }
 0x412   : > { %v4367_v21 = vpop.eup %4366  ;;  %v5846_v30 = vpop.f32.mrf.mxu0 }
 0x413   : > { %7801 = vst [vmem:[#allocation62_spill] sm:$0xff] %v5846_v30  ;;  %v5848_v63 = vpop.f32.mrf.mxu1  ;;  %v4369_v53 = vpop.eup %4368  ;;  %v5850_v13 = vpack.c.bf16 %v4363_v14, %v4367_v21 }
 0x414   : > { %7802 = vst [vmem:[#allocation63_spill] sm:$0xff] %v5848_v63  ;;  %v1865_v54 = vmax.f32 %v5846_v30, %v5848_v63  ;;  %v5854_v33 = vpack.c.bf16 %v4365_v0, %v4369_v53  ;;  %v5870_v25 = vpop.trf.xlu2 }
 0x415   : > { %1408 = vmatpush.bf16.xpose.msra.mxu2 %v5850_v13  ;;  %7806 = vst [vmem:[#allocation67_spill] sm:$0xff] %v5870_v25 }
 0x416   : > { %1866 = vmax.xlane.f32.xlu1 %v1865_v54  ;;  %1421 = vmatpush.bf16.xpose.msra.mxu3 %v5854_v33 }
 0x41a   : > { %v5860_v15 = vpop.f32.mrf.mxu0 }
 0x41b   : > { %7804 = vst [vmem:[#allocation65_spill] sm:$0xff] %v5860_v15  ;;  %v5862_v46 = vpop.f32.mrf.mxu1 }
 0x41c   : > { %7805 = vst [vmem:[#allocation66_spill] sm:$0xff] %v5862_v46  ;;  %v1868_v29 = vmax.f32 %v5860_v15, %v5862_v46  ;;  %v5878_v53 = vpop.trf.xlu2 }
 0x41d   : > { %4132 = vmatmul.msk.bf16.gmra.mxu0 %vm835_vm2, %v5716_v4  ;;  %7808 = vst [vmem:[#allocation69_spill] sm:$0xff] %v5878_v53 }
 0x41e   : > { %1869 = vmax.xlane.f32.xlu0 %v1868_v29  ;;  %4148 = vmatmul.msk.bf16.gmra.mxu1 %vm835_vm2, %v5716_v4 }
 0x422   : > { %v5872_v14 = vpop.f32.mrf.mxu0 }
 0x423   : > { %v5874_v0 = vpop.f32.mrf.mxu1 }
 0x424   : > { %7807 = vst [vmem:[#allocation68_spill] sm:$0xff] %v5874_v0  ;;  %v1871_v21 = vmax.f32 %v5872_v14, %v5874_v0  ;;  %v5898_v5 = vpop.trf.xlu2 }
 0x425   : > { %7809 = vst [vmem:[#allocation70_spill] sm:$0xff] %v5898_v5 }
 0x426   : > { %1872 = vmax.xlane.f32.xlu1 %v1871_v21  ;;  %v1844_v21 = vmax.f32 %v5768_v22, %v5770_v7  ;;  %v1847_v7 = vmax.f32 %v5778_v24, %v5780_v34 }
 0x42a   : > { %v5880_v54 = vpop.f32.mrf.mxu0 }
 0x42b   : > { %v5882_v41 = vpop.f32.mrf.mxu1 }
 0x42c   : > { %v1874_v29 = vmax.f32 %v5880_v54, %v5882_v41  ;;  %v5912_v5 = vpop.trf.xlu2 }
 0x42d   : > { %4133 = vmatmul.msk.bf16.gmra.mxu0 %vm835_vm2, %v5746_v56  ;;  %7812 = vst [vmem:[#allocation73_spill] sm:$0xff] %v5912_v5 }
 0x42e   : > { %1875 = vmax.xlane.f32.xlu0 %v1874_v29  ;;  %4149 = vmatmul.msk.bf16.gmra.mxu1 %vm835_vm2, %v5746_v56  ;;  %v1838_v56 = vmax.f32 %v5748_v6, %v5750_v31 }
 0x432   : > { %v5890_v4 = vpop.f32.mrf.mxu0 }
 0x433   : > { %v5892_v25 = vpop.f32.mrf.mxu1 }
 0x434   : > { %v1877_v53 = vmax.f32 %v5890_v4, %v5892_v25  ;;  %v5924_v31 = vpop.trf.xlu2 }
 0x435   : > { %7815 = vst [vmem:[#allocation76_spill] sm:$0xff] %v5924_v31 }
 0x436   : > { %1845 = vmax.xlane.f32.xlu0 %v1844_v21  ;;  %1878 = vmax.xlane.f32.xlu1 %v1877_v53 }
 0x43a   : > { %v5900_v38 = vpop.f32.mrf.mxu0 }
 0x43b   : > { %7810 = vst [vmem:[#allocation71_spill] sm:$0xff] %v5900_v38  ;;  %v5902_v29 = vpop.f32.mrf.mxu1 }
 0x43c   : > { %7811 = vst [vmem:[#allocation72_spill] sm:$0xff] %v5902_v29  ;;  %v1880_v9 = vmax.f32 %v5900_v38, %v5902_v29  ;;  %v1841_v29 = vmax.f32 %v5760_v61, %v5762_v1  ;;  %v5922_v38 = vpop.xlane.xlu0 %1117 }
 0x43d   : > { %4150 = vmatmul.msk.bf16.vlgmr.msrb.gmra.mxu0 %vm835_vm2, %v5671_v55 }
 0x43e   : > { %1839 = vmax.xlane.f32.xlu0 %v1838_v56  ;;  %4166 = vmatmul.msk.bf16.vlgmr.msrb.gmra.mxu1 %vm835_vm2, %v5671_v55  ;;  %v5936_v55 = vpop.trf.xlu2 }
 0x43f   : > { %1848 = vmax.xlane.f32.xlu1 %v1847_v7  ;;  %1881 = vmax.xlane.f32.xlu2 %v1880_v9  ;;  %7818 = vst [vmem:[#allocation79_spill] sm:$0xff] %v5936_v55 }
 0x442   : > { %v5916_v53 = vpop.f32.mrf.mxu0 }
 0x443   : > { %7813 = vst [vmem:[#allocation74_spill] sm:$0xff] %v5916_v53  ;;  %v5918_v21 = vpop.f32.mrf.mxu1 }
 0x444   : > { %7814 = vst [vmem:[#allocation75_spill] sm:$0xff] %v5918_v21  ;;  %v5934_v7 = vpop.xlane.xlu0 %1120 }
 0x446   : > { %v5948_v61 = vpop.trf.xlu2 }
 0x447   : > { %1842 = vmax.xlane.f32.xlu1 %v1841_v29  ;;  %7821 = vst [vmem:[#allocation82_spill] sm:$0xff] %v5948_v61 }
 0x44a   : > { %v5926_v56 = vpop.f32.mrf.mxu0 }
 0x44b   : > { %7816 = vst [vmem:[#allocation77_spill] sm:$0xff] %v5926_v56  ;;  %v5928_v5 = vpop.f32.mrf.mxu1 }
 0x44c   : > { %7817 = vst [vmem:[#allocation78_spill] sm:$0xff] %v5928_v5  ;;  %v5942_v29 = vpop.xlane.xlu0 %1111 }
 0x44d   : > { %4151 = vmatmul.msk.bf16.gmra.mxu0 %vm835_vm2, %v5686_v20 }
 0x44e   : > { %4167 = vmatmul.msk.bf16.gmra.mxu1 %vm835_vm2, %v5686_v20  ;;  %v5954_v20 = vpop.xlane.xlu1 %1114  ;;  %v5962_v3 = vpop.trf.xlu2 }
 0x44f   : > { %7822 = vst [vmem:[#allocation83_spill] sm:$0xff] %v5962_v3 }
 0x452   : > { %v5938_v9 = vpop.f32.mrf.mxu0 }
 0x453   : > { %7819 = vst [vmem:[#allocation80_spill] sm:$0xff] %v5938_v9  ;;  %v5940_v6 = vpop.f32.mrf.mxu1 }
 0x454   : > { %7820 = vst [vmem:[#allocation81_spill] sm:$0xff] %v5940_v6  ;;  %v7823_v6 = vld [vmem:[#allocation38_spill] sm:$0xff] }
 0x455   : > { %v1214_v46 = vsub.f32 %v7823_v6, %v5612_v36 }
 0x45a   : > { %v5944_v31 = vpop.f32.mrf.mxu0 }
 0x45b   : > { %v5946_v1 = vpop.f32.mrf.mxu1 }
 0x45d   : > { %4152 = vmatmul.msk.bf16.gmra.mxu0 %vm835_vm2, %v5698_v48 }
 0x45e   : > { %4168 = vmatmul.msk.bf16.gmra.mxu1 %vm835_vm2, %v5698_v48 }
 0x461   : > { %v1852_v55 = vpop.xlane.xlu0 %1851 }
 0x462   : > { %v5956_v22 = vpop.f32.mrf.mxu0  ;;  %v1940_v24 = vsub.f32 %v5786_v17, %v1852_v55  ;;  %v1941_v47 = vsub.f32 %v5788_v26, %v1852_v55  ;;  %v7824_v26 = vld [vmem:[#allocation39_spill] sm:$0xff] }
 0x463   : > { %v5958_v34 = vpop.f32.mrf.mxu1  ;;  %v1215_v55 = vsub.f32 %v7824_v26, %v5612_v36 }
 0x464   : > { %v2016_v61 = vmul.f32 1.442695, %v1940_v24  ;;  %v2018_v63 = vmul.f32 1.442695, %v1941_v47 }
 0x466   : > { %4370 = vpow2.f32 %v2016_v61 }
 0x467   : > { %4372 = vpow2.f32 %v2018_v63 }
 0x468   : > { %v1855_v53 = vpop.xlane.xlu1 %1854 }
 0x469   : > { %v1942_v21 = vsub.f32 %v5798_v50, %v1855_v53  ;;  %v1943_v48 = vsub.f32 %v5800_v52, %v1855_v53  ;;  %v1334_v52 = vmul.f32 1.442695, %v1214_v46  ;;  %v1336_v50 = vmul.f32 1.442695, %v1215_v55 }
 0x46a   : > { %v5966_v30 = vpop.f32.mrf.mxu0 }
 0x46b   : > { %v5968_v9 = vpop.f32.mrf.mxu1  ;;  %v2020_v17 = vmul.f32 1.442695, %v1942_v21  ;;  %v2022_v15 = vmul.f32 1.442695, %v1943_v48 }
 0x46c   : > { %v4371_v47 = vpop.eup %4370 }
 0x46d   : > { %4374 = vpow2.f32 %v2020_v17  ;;  %4153 = vmatmul.msk.bf16.gmra.mxu0 %vm835_vm2, %v5714_v44  ;;  %v4373_v53 = vpop.eup %4372 }
 0x46e   : > { %4376 = vpow2.f32 %v2022_v15  ;;  %4169 = vmatmul.msk.bf16.gmra.mxu1 %vm835_vm2, %v5714_v44 }
 0x46f   : > { %4378 = vpow2.f32 %v1334_v52 }
 0x470   : > { %4380 = vpow2.f32 %v1336_v50 }
 0x471   : > { %v1151_v24 = vpop.xlane.xlu2 %1150 }
 0x472   : > { %v1216_v6 = vsub.f32 %v5496_v57, %v1151_v24  ;;  %v1217_v61 = vsub.f32 %v5498_v19, %v1151_v24  ;;  %v5980_v21 = vpop.f32.mrf.mxu0 }
 0x473   : > { %v5982_v36 = vpop.f32.mrf.mxu1  ;;  %v4375_v63 = vpop.eup %4374 }
 0x474   : > { %v1338_v48 = vmul.f32 1.442695, %v1216_v6  ;;  %v1340_v15 = vmul.f32 1.442695, %v1217_v61  ;;  %v4377_v17 = vpop.eup %4376  ;;  %v5984_v44 = vpack.c.bf16 %v4375_v63, %v4371_v47  ;;  %v1196_v61 = vsub.f32 %v7735_v49, %v5934_v7 }
 0x475   : > { %v5986_v46 = vpack.c.bf16 %v4377_v17, %v4373_v53  ;;  %v4379_v57 = vpop.eup %4378  ;;  %v1197_v63 = vsub.f32 %v7734_v35, %v5934_v7  ;;  %v7828_v17 = vld [vmem:[#allocation22_spill] sm:$0xff]  ;;  %v1192_v35 = vsub.f32 %v7770_v37, %v5954_v20  ;;  %v1191_v37 = vsub.f32 %v7741_v51, %v5942_v29 }
 0x476   : > { %7825 = vst [vmem:[#allocation38_spill] sm:$0xff] %v5984_v44  ;;  %4382 = vpow2.f32 %v1338_v48  ;;  %v4381_v26 = vpop.eup %4380  ;;  %v7827_v48 = vld [vmem:[#allocation21_spill] sm:$0xff] }
 0x477   : > { %7826 = vst [vmem:[#allocation39_spill] sm:$0xff] %v5986_v46  ;;  %4384 = vpow2.f32 %v1340_v15  ;;  %v1194_v15 = vsub.f32 %v7827_v48, %v5922_v38 }
 0x47a   : > { %v5988_v19 = vpop.f32.mrf.mxu0 }
 0x47b   : > { %v5990_v24 = vpop.f32.mrf.mxu1 }
 0x47c   : > { %v4383_v55 = vpop.eup %4382 }
 0x47d   : > { %v4385_v3 = vpop.eup %4384  ;;  %v5992_v0 = vpack.c.bf16 %v4383_v55, %v4379_v57  ;;  %4154 = vmatmul.msk.bf16.gmra.mxu0 %vm835_vm2, %v5730_v40  ;;  %v1195_v57 = vsub.f32 %v7828_v17, %v5922_v38  ;;  %v1294_v55 = vmul.f32 1.442695, %v1194_v15  ;;  %v1193_v38 = vsub.f32 %v7769_v32, %v5954_v20 }
 0x47e   : > { %v5994_v52 = vpack.c.bf16 %v4385_v3, %v4381_v26  ;;  %4170 = vmatmul.msk.bf16.gmra.mxu1 %vm835_vm2, %v5730_v40  ;;  %v1300_v26 = vmul.f32 1.442695, %v1197_v63  ;;  %v1190_v63 = vsub.f32 %v7742_v43, %v5942_v29  ;;  %v1290_v32 = vmul.f32 1.442695, %v1192_v35 }
 0x47f   : > { %1409 = vmatpush.bf16.xpose.msra.mxu2 %v5992_v0  ;;  %v1296_v46 = vmul.f32 1.442695, %v1195_v57  ;;  %v1292_v20 = vmul.f32 1.442695, %v1193_v38  ;;  %v1288_v17 = vmul.f32 1.442695, %v1191_v37 }
 0x480   : > { %1422 = vmatpush.bf16.xpose.msra.mxu3 %v5994_v52  ;;  %v1286_v15 = vmul.f32 1.442695, %v1190_v63 }
 0x482   : > { %v6002_v50 = vpop.f32.mrf.mxu0 }
 0x483   : > { %v6004_v47 = vpop.f32.mrf.mxu1 }
 0x487   : > { %1410 = vmatpush.bf16.xpose.msra.mxu2 %v5640_v8 }
 0x488   : > { %1423 = vmatpush.bf16.xpose.msra.mxu3 %v5642_v16 }
 0x48a   : > { %v6008_v3 = vpop.f32.mrf.mxu0 }
 0x48b   : > { %v6010_v6 = vpop.f32.mrf.mxu1 }
 0x48d   : > { %4155 = vmatmul.msk.bf16.gmra.mxu0 %vm835_vm2, %v5752_v62 }
 0x48e   : > { %4171 = vmatmul.msk.bf16.gmra.mxu1 %vm835_vm2, %v5752_v62  ;;  %v1298_v62 = vmul.f32 1.442695, %v1196_v61 }
 0x48f   : > { %1411 = vmatpush.bf16.xpose.msra.mxu2 %v5658_v11 }
 0x490   : > { %1424 = vmatpush.bf16.xpose.msra.mxu3 %v5660_v60  ;;  %4386 = vpow2.f32 %v1298_v62 }
 0x491   : > { %4388 = vpow2.f32 %v1300_v26 }
 0x492   : > { %v6018_v40 = vpop.f32.mrf.mxu0  ;;  %4390 = vpow2.f32 %v1294_v55 }
 0x493   : > { %v6022_v53 = vpop.f32.mrf.mxu1  ;;  %4392 = vpow2.f32 %v1296_v46 }
 0x494   : > { %4394 = vpow2.f32 %v1290_v32 }
 0x495   : > { %4396 = vpow2.f32 %v1292_v20 }
 0x496   : > { %v4387_v48 = vpop.eup %4386  ;;  %4398 = vpow2.f32 %v1286_v15 }
 0x497   : > { %1412 = vmatpush.bf16.xpose.msra.mxu2 %v5674_v27  ;;  %v4389_v43 = vpop.eup %4388  ;;  %4400 = vpow2.f32 %v1288_v17 }
 0x498   : > { %1425 = vmatpush.bf16.xpose.msra.mxu3 %v5676_v42  ;;  %v4391_v46 = vpop.eup %4390 }
 0x499   : > { %v4393_v51 = vpop.eup %4392  ;;  %v6056_v29 = vpack.c.bf16 %v4387_v48, %v4391_v46  ;;  %v1910_v46 = vmax.f32 %v6008_v3, %v6010_v6 }
 0x49a   : > { %v6032_v49 = vpop.f32.mrf.mxu0  ;;  %v6060_v26 = vpack.c.bf16 %v4389_v43, %v4393_v51  ;;  %v4395_v55 = vpop.eup %4394  ;;  %v7829_v51 = vmov 1065369472  }
 0x49b   : > { %v6036_v7 = vpop.f32.mrf.mxu1  ;;  %v4397_v35 = vpop.eup %4396 }
 0x49c   : > { %v1916_v61 = vmax.f32 %v6032_v49, %v6036_v7 }
 0x49d   : > { %4156 = vmatmul.msk.bf16.gmra.mxu0 %vm835_vm2, %v5776_v18 }
 0x49e   : > { %4172 = vmatmul.msk.bf16.gmra.mxu1 %vm835_vm2, %v5776_v18  ;;  %1917 = vmax.xlane.f32.xlu0 %v1916_v61  ;;  %v4399_v61 = vpop.eup %4398 }
 0x49f   : > { %1413 = vmatpush.bf16.xpose.msra.mxu2 %v5688_v45  ;;  %v4401_v37 = vpop.eup %4400  ;;  %v6068_v32 = vpack.c.bf16 %v4395_v55, %v4399_v61  ;;  %v1913_v55 = vmax.f32 %v6018_v40, %v6022_v53 }
 0x4a0   : > { %1426 = vmatpush.bf16.xpose.msra.mxu3 %v5690_v58  ;;  %v6072_v48 = vpack.c.bf16 %v4397_v35, %v4401_v37  ;;  %v1832_v35 = vmax.f32 %v5732_v39, %v5734_v23 }
 0x4a2   : > { %v6052_v57 = vpop.f32.mrf.mxu0 }
 0x4a3   : > { %v6054_v62 = vpop.f32.mrf.mxu1 }
 0x4a4   : > { %v1919_v18 = vmax.f32 %v6052_v57, %v6054_v62 }
 0x4a6   : > { %1920 = vmax.xlane.f32.xlu1 %v1919_v18  ;;  %v6100_v18 = vpop.xlane.xlu0 %1857 }
 0x4a7   : > { %1414 = vmatpush.bf16.xpose.msra.mxu2 %v6056_v29 }
 0x4a8   : > { %1427 = vmatpush.bf16.xpose.msra.mxu3 %v6060_v26 }
 0x4aa   : > { %v6064_v38 = vpop.f32.mrf.mxu0 }
 0x4ab   : > { %v6066_v63 = vpop.f32.mrf.mxu1 }
 0x4ac   : > { %v1922_v20 = vmax.f32 %v6064_v38, %v6066_v63 }
 0x4ad   : > { %4157 = vmatmul.msk.bf16.gmra.mxu0 %vm835_vm2, %v5804_v28 }
 0x4ae   : > { %4173 = vmatmul.msk.bf16.gmra.mxu1 %vm835_vm2, %v5804_v28  ;;  %1923 = vmax.xlane.f32.xlu0 %v1922_v20  ;;  %v6094_v28 = vpop.xlane.xlu1 %1860  ;;  %v6118_v37 = vpop.xlane.xlu0 %1863  ;;  %v1835_v20 = vmax.f32 %v5742_v12, %v5744_v2 }
 0x4af   : > { %1415 = vmatpush.bf16.xpose.msra.mxu2 %v6068_v32 }
 0x4b0   : > { %1428 = vmatpush.bf16.xpose.msra.mxu3 %v6072_v48 }
 0x4b2   : > { %v6082_v15 = vpop.f32.mrf.mxu0 }
 0x4b3   : > { %v6084_v43 = vpop.f32.mrf.mxu1 }
 0x4b4   : > { %v1925_v17 = vmax.f32 %v6082_v15, %v6084_v43 }
 0x4b6   : > { %1416 = vmatmul.bf16.vlgmr.msra.gmra.mxu2 %v7829_v51  ;;  %1926 = vmax.xlane.f32.xlu1 %v1925_v17 }
 0x4b7   : > { %1492 = vmatpush.bf16.xpose.msrb.mxu2 %v5850_v13  ;;  %1429 = vmatmul.bf16.vlgmr.msra.gmra.mxu3 %v7829_v51 }
 0x4b8   : > { %1511 = vmatpush.bf16.xpose.msrb.mxu3 %v5854_v33  ;;  %1911 = vmax.xlane.f32.xlu0 %v1910_v46  ;;  %v1870_v46 = vpop.xlane.xlu0 %1869 }
 0x4ba   : > { %v6096_v13 = vpop.f32.mrf.mxu0 }
 0x4bb   : > { %7830 = vst [vmem:[#allocation21_spill] sm:$0xff] %v6096_v13  ;;  %v6098_v33 = vpop.f32.mrf.mxu1  ;;  %v1901_v13 = vmax.f32 %v5980_v21, %v5982_v36 }
 0x4bc   : > { %7831 = vst [vmem:[#allocation22_spill] sm:$0xff] %v6098_v33 }
 0x4bd   : > { %4158 = vmatmul.msk.bf16.gmra.mxu0 %vm835_vm2, %v5682_v10 }
 0x4be   : > { %4174 = vmatmul.msk.bf16.gmra.mxu1 %vm835_vm2, %v5682_v10  ;;  %1914 = vmax.xlane.f32.xlu1 %v1913_v55  ;;  %v1904_v10 = vmax.f32 %v5988_v19, %v5990_v24  ;;  %v1907_v55 = vmax.f32 %v6002_v50, %v6004_v47 }
 0x4bf   : > { %1493 = vmatpush.bf16.xpose.msrb.mxu2 %v5992_v0  ;;  %v6112_v0 = vpop.xlane.xlu1 %1866 }
 0x4c0   : > { %1512 = vmatpush.bf16.xpose.msrb.mxu3 %v5994_v52  ;;  %1833 = vmax.xlane.f32.xlu0 %v1832_v35  ;;  %v1898_v35 = vmax.f32 %v5966_v30, %v5968_v9 }
 0x4c2   : > { %v6114_v52 = vpop.f32.mrf.mxu0 }
 0x4c3   : > { %7832 = vst [vmem:[#allocation84_spill] sm:$0xff] %v6114_v52  ;;  %v6116_v61 = vpop.f32.mrf.mxu1 }
 0x4c4   : > { %7833 = vst [vmem:[#allocation85_spill] sm:$0xff] %v6116_v61 }
 0x4c6   : > { %1836 = vmax.xlane.f32.xlu1 %v1835_v20 }
 0x4c7   : > { %1494 = vmatpush.bf16.xpose.msrb.mxu2 %v5640_v8  ;;  %v1873_v8 = vpop.xlane.xlu1 %1872 }
 0x4c8   : > { %1513 = vmatpush.bf16.xpose.msrb.mxu3 %v5642_v16  ;;  %1905 = vmax.xlane.f32.xlu0 %v1904_v10  ;;  %v1876_v10 = vpop.xlane.xlu0 %1875 }
 0x4ca   : > { %v6126_v16 = vpop.f32.mrf.mxu0 }
 0x4cb   : > { %7834 = vst [vmem:[#allocation86_spill] sm:$0xff] %v6126_v16  ;;  %v6128_v17 = vpop.f32.mrf.mxu1 }
 0x4cc   : > { %7835 = vst [vmem:[#allocation87_spill] sm:$0xff] %v6128_v17 }
 0x4cd   : > { %4159 = vmatmul.msk.bf16.gmra.mxu0 %vm835_vm2, %v5694_v59 }
 0x4ce   : > { %4175 = vmatmul.msk.bf16.gmra.mxu1 %vm835_vm2, %v5694_v59  ;;  %1908 = vmax.xlane.f32.xlu1 %v1907_v55  ;;  %v1892_v59 = vmax.f32 %v5944_v31, %v5946_v1 }
 0x4cf   : > { %1495 = vmatpush.bf16.xpose.msrb.mxu2 %v5658_v11  ;;  %v1879_v11 = vpop.xlane.xlu1 %1878 }
 0x4d0   : > { %1514 = vmatpush.bf16.xpose.msrb.mxu3 %v5660_v60  ;;  %1899 = vmax.xlane.f32.xlu0 %v1898_v35  ;;  %v1958_v33 = vsub.f32 %v5890_v4, %v1879_v11  ;;  %v1959_v55 = vsub.f32 %v5892_v25, %v1879_v11  ;;  %v1895_v25 = vmax.f32 %v5956_v22, %v5958_v34 }
 0x4d2   : > { %v6140_v60 = vpop.f32.mrf.mxu0  ;;  %v2052_v35 = vmul.f32 1.442695, %v1958_v33  ;;  %v7842_v33 = vld [vmem:[#allocation65_spill] sm:$0xff] }
 0x4d3   : > { %7836 = vst [vmem:[#allocation88_spill] sm:$0xff] %v6140_v60  ;;  %v6142_v20 = vpop.f32.mrf.mxu1  ;;  %v2054_v60 = vmul.f32 1.442695, %v1959_v55  ;;  %v1952_v11 = vsub.f32 %v7842_v33, %v1870_v46  ;;  %v7851_v33 = vld [vmem:[#allocation63_spill] sm:$0xff] }
 0x4d4   : > { %7837 = vst [vmem:[#allocation89_spill] sm:$0xff] %v6142_v20  ;;  %4402 = vpow2.f32 %v2052_v35 }
 0x4d5   : > { %4404 = vpow2.f32 %v2054_v60  ;;  %v2040_v60 = vmul.f32 1.442695, %v1952_v11  ;;  %v7852_v11 = vld [vmem:[#allocation59_spill] sm:$0xff] }
 0x4d6   : > { %1902 = vmax.xlane.f32.xlu1 %v1901_v13  ;;  %v7840_v13 = vld [vmem:[#allocation17_spill] sm:$0xff] }
 0x4d7   : > { %1496 = vmatpush.bf16.xpose.msrb.mxu2 %v5674_v27  ;;  %v1956_v27 = vsub.f32 %v5880_v54, %v1876_v10  ;;  %v1954_v54 = vsub.f32 %v5872_v14, %v1873_v8 }
 0x4d8   : > { %1515 = vmatpush.bf16.xpose.msrb.mxu3 %v5676_v42  ;;  %1893 = vmax.xlane.f32.xlu0 %v1892_v59  ;;  %v1957_v42 = vsub.f32 %v5882_v41, %v1876_v10  ;;  %v7843_v10 = vld [vmem:[#allocation66_spill] sm:$0xff] }
 0x4d9   : > { %v2048_v4 = vmul.f32 1.442695, %v1956_v27  ;;  %v1953_v14 = vsub.f32 %v7843_v10, %v1870_v46  ;;  %v2044_v59 = vmul.f32 1.442695, %v1954_v54  ;;  %v1951_v10 = vsub.f32 %v7851_v33, %v6112_v0 }
 0x4da   : > { %v6154_v20 = vpop.f32.mrf.mxu0  ;;  %v2050_v61 = vmul.f32 1.442695, %v1957_v42 }
 0x4db   : > { %7838 = vst [vmem:[#allocation90_spill] sm:$0xff] %v6154_v20  ;;  %v6156_v52 = vpop.f32.mrf.mxu1  ;;  %4406 = vpow2.f32 %v2048_v4  ;;  %v7847_v4 = vld [vmem:[#allocation80_spill] sm:$0xff] }
 0x4dc   : > { %7839 = vst [vmem:[#allocation91_spill] sm:$0xff] %v6156_v52  ;;  %4408 = vpow2.f32 %v2050_v61  ;;  %v7848_v61 = vld [vmem:[#allocation62_spill] sm:$0xff] }
 0x4dd   : > { %4160 = vmatmul.msk.bf16.gmra.mxu0 %vm835_vm2, %v7840_v13  ;;  %v1950_v46 = vsub.f32 %v7848_v61, %v6112_v0  ;;  %4410 = vpow2.f32 %v2044_v59  ;;  %v7855_v59 = vld [vmem:[#allocation60_spill] sm:$0xff] }
 0x4de   : > { %4176 = vmatmul.msk.bf16.gmra.mxu1 %vm835_vm2, %v7840_v13  ;;  %1896 = vmax.xlane.f32.xlu1 %v1895_v25  ;;  %v2042_v25 = vmul.f32 1.442695, %v1953_v14  ;;  %v7846_v13 = vld [vmem:[#allocation81_spill] sm:$0xff]  ;;  %v1948_v14 = vsub.f32 %v7852_v11, %v6118_v37  ;;  %v1949_v61 = vsub.f32 %v7855_v59, %v6118_v37  ;;  %v7863_v59 = vld [vmem:[#allocation16_spill] sm:$0xff] }
 0x4df   : > { %1497 = vmatpush.bf16.xpose.msrb.mxu2 %v5688_v45  ;;  %v1886_v45 = vmax.f32 %v5926_v56, %v5928_v5  ;;  %v2036_v0 = vmul.f32 1.442695, %v1950_v46 }
 0x4e0   : > { %1516 = vmatpush.bf16.xpose.msrb.mxu3 %v5690_v58  ;;  %v7841_v58 = vld [vmem:[#allocation68_spill] sm:$0xff] }
 0x4e1   : > { %v1955_v41 = vsub.f32 %v7841_v58, %v1873_v8  ;;  %1887 = vmax.xlane.f32.xlu0 %v1886_v45  ;;  %v4403_v8 = vpop.eup %4402  ;;  %v1889_v45 = vmax.f32 %v7847_v4, %v7846_v13 }
 0x4e2   : > { %v6172_v27 = vpop.f32.mrf.mxu0  ;;  %v4405_v35 = vpop.eup %4404 }
 0x4e3   : > { %v2046_v55 = vmul.f32 1.442695, %v1955_v41  ;;  %7844 = vst [vmem:[#allocation17_spill] sm:$0xff] %v6172_v27  ;;  %v6174_v42 = vpop.f32.mrf.mxu1  ;;  %v4407_v58 = vpop.eup %4406 }
 0x4e4   : > { %7845 = vst [vmem:[#allocation68_spill] sm:$0xff] %v6174_v42  ;;  %v4409_v41 = vpop.eup %4408  ;;  %v6186_v16 = vpack.c.bf16 %v4403_v8, %v4407_v58 }
 0x4e5   : > { %4412 = vpow2.f32 %v2046_v55  ;;  %v6188_v17 = vpack.c.bf16 %v4405_v35, %v4409_v41  ;;  %v2038_v55 = vmul.f32 1.442695, %v1951_v10  ;;  %v4411_v8 = vpop.eup %4410  ;;  %v7860_v41 = vld [vmem:[#allocation58_spill] sm:$0xff]  ;;  %v7861_v10 = vld [vmem:[#allocation53_spill] sm:$0xff] }
 0x4e6   : > { %1890 = vmax.xlane.f32.xlu1 %v1889_v45  ;;  %4414 = vpow2.f32 %v2040_v60  ;;  %7853 = vst [vmem:[#allocation65_spill] sm:$0xff] %v6186_v16  ;;  %v2032_v45 = vmul.f32 1.442695, %v1948_v14  ;;  %v1947_v33 = vsub.f32 %v7860_v41, %v6094_v28  ;;  %v1944_v11 = vsub.f32 %v7861_v10, %v6100_v18  ;;  %v7862_v14 = vld [vmem:[#allocation15_spill] sm:$0xff] }
 0x4e7   : > { %1498 = vmatpush.bf16.xpose.msrb.mxu2 %v6056_v29  ;;  %v7849_v29 = vld [vmem:[#allocation75_spill] sm:$0xff]  ;;  %7854 = vst [vmem:[#allocation66_spill] sm:$0xff] %v6188_v17  ;;  %4416 = vpow2.f32 %v2042_v25  ;;  %v7858_v25 = vld [vmem:[#allocation57_spill] sm:$0xff] }
 0x4e8   : > { %1517 = vmatpush.bf16.xpose.msrb.mxu3 %v6060_v26  ;;  %v7850_v26 = vld [vmem:[#allocation74_spill] sm:$0xff]  ;;  %4418 = vpow2.f32 %v2036_v0  ;;  %v2024_v41 = vmul.f32 1.442695, %v1944_v11 }
 0x4e9   : > { %v1883_v54 = vmax.f32 %v7850_v26, %v7849_v29  ;;  %4420 = vpow2.f32 %v2038_v55  ;;  %v2030_v55 = vmul.f32 1.442695, %v1947_v33  ;;  %v1846_v33 = vpop.xlane.xlu0 %1845 }
 0x4ea   : > { %v6196_v60 = vpop.f32.mrf.mxu0  ;;  %4422 = vpow2.f32 %v2032_v45 }
 0x4eb   : > { %1884 = vmax.xlane.f32.xlu0 %v1883_v54  ;;  %7856 = vst [vmem:[#allocation80_spill] sm:$0xff] %v6196_v60  ;;  %v6198_v35 = vpop.f32.mrf.mxu1  ;;  %v4413_v58 = vpop.eup %4412  ;;  %v2034_v54 = vmul.f32 1.442695, %v1949_v61 }
 0x4ec   : > { %7857 = vst [vmem:[#allocation62_spill] sm:$0xff] %v6198_v35  ;;  %v4415_v37 = vpop.eup %4414 }
 0x4ed   : > { %v4417_v46 = vpop.eup %4416  ;;  %v6212_v61 = vpack.c.bf16 %v4411_v8, %v4415_v37  ;;  %4424 = vpow2.f32 %v2034_v54 }
 0x4ee   : > { %v6214_v0 = vpack.c.bf16 %v4413_v58, %v4417_v46  ;;  %v4419_v45 = vpop.eup %4418 }
 0x4ef   : > { %1499 = vmatpush.bf16.xpose.msrb.mxu2 %v6068_v32  ;;  %v1946_v32 = vsub.f32 %v7858_v25, %v6094_v28  ;;  %7864 = vst [vmem:[#allocation63_spill] sm:$0xff] %v6212_v61  ;;  %v7866_v25 = vld [vmem:[#allocation54_spill] sm:$0xff]  ;;  %v4421_v8 = vpop.eup %4420 }
 0x4f0   : > { %1518 = vmatpush.bf16.xpose.msrb.mxu3 %v6072_v48  ;;  %v7859_v48 = vld [vmem:[#allocation9_spill] sm:$0xff]  ;;  %7865 = vst [vmem:[#allocation59_spill] sm:$0xff] %v6214_v0  ;;  %v4423_v58 = vpop.eup %4422 }
 0x4f1   : > { %4161 = vmatmul.msk.bf16.gmra.mxu0 %vm835_vm2, %v7859_v48  ;;  %4177 = vmatmul.msk.bf16.gmra.mxu1 %vm835_vm2, %v7859_v48  ;;  %v2028_v28 = vmul.f32 1.442695, %v1946_v32  ;;  %v1849_v32 = vpop.xlane.xlu1 %1848 }
 0x4f2   : > { %v6220_v48 = vpop.f32.mrf.mxu0 }
 0x4f3   : > { %v6222_v10 = vpop.f32.mrf.mxu1  ;;  %4426 = vpow2.f32 %v2028_v28  ;;  %v4425_v46 = vpop.eup %4424  ;;  %v7870_v28 = vld [vmem:[#allocation47_spill] sm:$0xff] }
 0x4f4   : > { %7867 = vst [vmem:[#allocation60_spill] sm:$0xff] %v6222_v10  ;;  %4428 = vpow2.f32 %v2030_v55  ;;  %v6226_v54 = vpack.c.bf16 %v4421_v8, %v4425_v46  ;;  %v1938_v55 = vsub.f32 %v7870_v28, %v1849_v32  ;;  %v7872_v8 = vld [vmem:[#allocation48_spill] sm:$0xff]  ;;  %v7878_v28 = vld [vmem:[#allocation46_spill] sm:$0xff] }
 0x4f5   : > { %4430 = vpow2.f32 %v2024_v41 }
 0x4f6   : > { %1500 = vmatmul.bf16.vlgmr.msrb.gmra.mxu2 %v7862_v14  ;;  %7869 = vst [vmem:[#allocation9_spill] sm:$0xff] %v6226_v54  ;;  %v2012_v29 = vmul.f32 1.442695, %v1938_v55  ;;  %v7881_v55 = vld [vmem:[#allocation33_spill] sm:$0xff] }
 0x4f7   : > { %2152 = vmatpush.bf16.xpose.msra.mxu2 %v6186_v16  ;;  %1519 = vmatmul.bf16.vlgmr.msrb.gmra.mxu3 %v7863_v59  ;;  %v1937_v16 = vsub.f32 %v7878_v28, %v1846_v33  ;;  %v7882_v28 = vld [vmem:[#allocation34_spill] sm:$0xff] }
 0x4f8   : > { %2165 = vmatpush.bf16.xpose.msra.mxu3 %v6188_v17  ;;  %v1945_v17 = vsub.f32 %v7866_v25, %v6100_v18  ;;  %v6224_v18 = vpack.c.bf16 %v4419_v45, %v4423_v58  ;;  %v7871_v45 = vld [vmem:[#allocation36_spill] sm:$0xff]  ;;  %v7873_v58 = vld [vmem:[#allocation45_spill] sm:$0xff] }
 0x4f9   : > { %v4427_v14 = vpop.eup %4426  ;;  %v1936_v46 = vsub.f32 %v7873_v58, %v1846_v33 }
 0x4fa   : > { %v2026_v37 = vmul.f32 1.442695, %v1945_v17  ;;  %7868 = vst [vmem:[#allocation57_spill] sm:$0xff] %v6224_v18  ;;  %v6230_v11 = vpop.f32.mrf.mxu0  ;;  %v4429_v59 = vpop.eup %4428 }
 0x4fb   : > { %v6232_v17 = vpop.f32.mrf.mxu1  ;;  %v4431_v25 = vpop.eup %4430  ;;  %v2008_v58 = vmul.f32 1.442695, %v1936_v46  ;;  %v7883_v46 = vld [vmem:[#allocation39_spill] sm:$0xff] }
 0x4fc   : > { %4432 = vpow2.f32 %v2026_v37  ;;  %v1939_v37 = vsub.f32 %v7872_v8, %v1849_v32  ;;  %v1843_v8 = vpop.xlane.xlu1 %1842 }
 0x4fd   : > { %4434 = vpow2.f32 %v2012_v29 }
 0x4fe   : > { %v2014_v32 = vmul.f32 1.442695, %v1939_v37 }
 0x4ff   : > { %2153 = vmatpush.bf16.xpose.msra.mxu2 %v6212_v61 }
 0x500   : > { %2166 = vmatpush.bf16.xpose.msra.mxu3 %v6214_v0  ;;  %v6243_v0 = vpack.c.bf16 %v4427_v14, %v4431_v25  ;;  %v7879_v14 = vld [vmem:[#allocation19_spill] sm:$0xff]  ;;  %4436 = vpow2.f32 %v2014_v32  ;;  %v7880_v25 = vld [vmem:[#allocation42_spill] sm:$0xff] }
 0x501   : > { %4162 = vmatmul.msk.bf16.gmra.mxu0 %vm835_vm2, %v7871_v45  ;;  %4178 = vmatmul.msk.bf16.gmra.mxu1 %vm835_vm2, %v7871_v45  ;;  %v1935_v33 = vsub.f32 %v7880_v25, %v1843_v8  ;;  %4438 = vpow2.f32 %v2008_v58  ;;  %v7884_v25 = vld [vmem:[#allocation43_spill] sm:$0xff] }
 0x502   : > { %v4433_v41 = vpop.eup %4432  ;;  %7876 = vst [vmem:[#allocation58_spill] sm:$0xff] %v6243_v0  ;;  %v6250_v45 = vpop.f32.mrf.mxu0 }
 0x503   : > { %v6245_v61 = vpack.c.bf16 %v4429_v59, %v4433_v41  ;;  %v6252_v26 = vpop.f32.mrf.mxu1  ;;  %v1934_v59 = vsub.f32 %v7879_v14, %v1843_v8  ;;  %v4435_v29 = vpop.eup %4434 }
 0x505   : > { %7877 = vst [vmem:[#allocation53_spill] sm:$0xff] %v6245_v61 }
 0x506   : > { %v4437_v32 = vpop.eup %4436 }
 0x507   : > { %2154 = vmatpush.bf16.xpose.msra.mxu2 %v6224_v18  ;;  %v7875_v18 = vld [vmem:[#allocation32_spill] sm:$0xff]  ;;  %v4439_v58 = vpop.eup %4438 }
 0x508   : > { %2167 = vmatpush.bf16.xpose.msra.mxu3 %v6226_v54  ;;  %v7874_v54 = vld [vmem:[#allocation30_spill] sm:$0xff] }
 0x509   : > { %1505 = vmatmul.bf16.gmra.mxu2 %v7874_v54  ;;  %1524 = vmatmul.bf16.gmra.mxu3 %v7875_v18  ;;  %v2010_v54 = vmul.f32 1.442695, %v1937_v16  ;;  %v1840_v18 = vpop.xlane.xlu0 %1839 }
 0x50a   : > { %v1932_v41 = vsub.f32 %v7881_v55, %v1840_v18  ;;  %v1933_v37 = vsub.f32 %v7882_v28, %v1840_v18  ;;  %v6260_v16 = vpop.f32.mrf.mxu0  ;;  %v6268_v18 = vpack.c.bf16 %v4435_v29, %v4439_v58 }
 0x50b   : > { %4440 = vpow2.f32 %v2010_v54  ;;  %v6262_v14 = vpop.f32.mrf.mxu1 }
 0x50c   : > { %v2000_v5 = vmul.f32 1.442695, %v1932_v41  ;;  %v2002_v8 = vmul.f32 1.442695, %v1933_v37  ;;  %7885 = vst [vmem:[#allocation15_spill] sm:$0xff] %v6268_v18 }
 0x50f   : > { %2155 = vmatpush.bf16.xpose.msra.mxu2 %v6243_v0  ;;  %v2006_v0 = vmul.f32 1.442695, %v1935_v33 }
 0x510   : > { %2168 = vmatpush.bf16.xpose.msra.mxu3 %v6245_v61  ;;  %v2004_v61 = vmul.f32 1.442695, %v1934_v59 }
 0x511   : > { %4163 = vmatmul.msk.bf16.gmra.mxu0 %vm835_vm2, %v7884_v25  ;;  %v4441_v54 = vpop.eup %4440  ;;  %4179 = vmatmul.msk.bf16.gmra.mxu1 %vm835_vm2, %v7884_v25  ;;  %v6284_v29 = vpop.xlane.xlu0 %1917  ;;  %v7893_v25 = vld [vmem:[#allocation50_spill] sm:$0xff] }
 0x512   : > { %4442 = vpow2.f32 %v2004_v61  ;;  %v6270_v59 = vpack.c.bf16 %v4437_v32, %v4441_v54  ;;  %v6274_v33 = vpop.f32.mrf.mxu0 }
 0x513   : > { %4444 = vpow2.f32 %v2006_v0  ;;  %7887 = vst [vmem:[#allocation54_spill] sm:$0xff] %v6274_v33  ;;  %v6276_v55 = vpop.f32.mrf.mxu1 }
 0x514   : > { %4446 = vpow2.f32 %v2000_v5  ;;  %7886 = vst [vmem:[#allocation16_spill] sm:$0xff] %v6270_v59 }
 0x515   : > { %4448 = vpow2.f32 %v2002_v8  ;;  %7888 = vst [vmem:[#allocation47_spill] sm:$0xff] %v6276_v55 }
 0x517   : > { %2156 = vmatpush.bf16.xpose.msra.mxu2 %v5984_v44 }
 0x518   : > { %2169 = vmatpush.bf16.xpose.msra.mxu3 %v7883_v46  ;;  %v4443_v61 = vpop.eup %4442 }
 0x519   : > { %v4445_v41 = vpop.eup %4444  ;;  %v6296_v54 = vpop.xlane.xlu1 %1920 }
 0x51a   : > { %v4447_v0 = vpop.eup %4446  ;;  %v6286_v32 = vpop.f32.mrf.mxu0 }
 0x51b   : > { %v4449_v28 = vpop.eup %4448  ;;  %v6278_v37 = vpack.c.bf16 %v4443_v61, %v4447_v0  ;;  %7891 = vst [vmem:[#allocation45_spill] sm:$0xff] %v6286_v32  ;;  %v6288_v8 = vpop.f32.mrf.mxu1 }
 0x51c   : > { %v6280_v5 = vpack.c.bf16 %v4445_v41, %v4449_v28  ;;  %7892 = vst [vmem:[#allocation30_spill] sm:$0xff] %v6288_v8  ;;  %v2638_v58 = vmax.f32 %v6286_v32, %v6288_v8  ;;  %v2635_v28 = vmax.f32 %v6274_v33, %v6276_v55 }
 0x51d   : > { %7889 = vst [vmem:[#allocation36_spill] sm:$0xff] %v6278_v37 }
 0x51e   : > { %7890 = vst [vmem:[#allocation48_spill] sm:$0xff] %v6280_v5  ;;  %2639 = vmax.xlane.f32.xlu0 %v2638_v58  ;;  %v2620_v58 = vmax.f32 %v6196_v60, %v6198_v35 }
 0x51f   : > { %2157 = vmatpush.bf16.xpose.msra.mxu2 %v6268_v18 }
 0x520   : > { %2170 = vmatpush.bf16.xpose.msra.mxu3 %v6270_v59  ;;  %v7897_v59 = vld [vmem:[#allocation55_spill] sm:$0xff] }
 0x521   : > { %4164 = vmatmul.msk.bf16.gmra.mxu0 %vm835_vm2, %v7893_v25  ;;  %4180 = vmatmul.msk.bf16.gmra.mxu1 %vm835_vm2, %v7893_v25  ;;  %v1924_v61 = vpop.xlane.xlu0 %1923 }
 0x522   : > { %v6298_v41 = vpop.f32.mrf.mxu0  ;;  %v1988_v18 = vsub.f32 %v6064_v38, %v1924_v61 }
 0x523   : > { %v6300_v0 = vpop.f32.mrf.mxu1 }
 0x524   : > { %7894 = vst [vmem:[#allocation32_spill] sm:$0xff] %v6300_v0 }
 0x526   : > { %2636 = vmax.xlane.f32.xlu0 %v2635_v28 }
 0x527   : > { %2158 = vmatpush.bf16.xpose.msra.mxu2 %v6278_v37 }
 0x528   : > { %2171 = vmatpush.bf16.xpose.msra.mxu3 %v6280_v5 }
 0x529   : > { %v1927_v5 = vpop.xlane.xlu1 %1926 }
 0x52a   : > { %v6306_v32 = vpop.f32.mrf.mxu0  ;;  %v1990_v35 = vsub.f32 %v6082_v15, %v1927_v5  ;;  %v1989_v15 = vsub.f32 %v6066_v63, %v1924_v61 }
 0x52b   : > { %v6304_v8 = vpop.xlane.xlu0 %1911  ;;  %7895 = vst [vmem:[#allocation46_spill] sm:$0xff] %v6306_v32  ;;  %v6308_v37 = vpop.f32.mrf.mxu1 }
 0x52c   : > { %7896 = vst [vmem:[#allocation19_spill] sm:$0xff] %v6308_v37  ;;  %v2644_v25 = vmax.f32 %v6306_v32, %v6308_v37  ;;  %v2116_v32 = vmul.f32 1.442695, %v1990_v35  ;;  %v1986_v35 = vsub.f32 %v6052_v57, %v6296_v54 }
 0x52e   : > { %2621 = vmax.xlane.f32.xlu0 %v2620_v58  ;;  %2645 = vmax.xlane.f32.xlu1 %v2644_v25  ;;  %v2112_v58 = vmul.f32 1.442695, %v1988_v18  ;;  %v1991_v25 = vsub.f32 %v6084_v43, %v1927_v5 }
 0x530   : > { %4450 = vpow2.f32 %v2112_v58 }
 0x531   : > { %4165 = vmatmul.msk.bf16.gmra.mxu0 %vm835_vm2, %v7897_v59  ;;  %4181 = vmatmul.msk.bf16.gmra.mxu1 %vm835_vm2, %v7897_v59  ;;  %v6318_v28 = vpop.xlane.xlu1 %1914  ;;  %v2641_v59 = vmax.f32 %v6298_v41, %v6300_v0  ;;  %v2118_v0 = vmul.f32 1.442695, %v1991_v25  ;;  %4452 = vpow2.f32 %v2116_v32  ;;  %v2629_v25 = vmax.f32 %v6250_v45, %v6252_v26 }
 0x532   : > { %v6320_v33 = vpop.f32.mrf.mxu0 }
 0x533   : > { %v1834_v55 = vpop.xlane.xlu0 %1833  ;;  %v6323_v46 = vpop.f32.mrf.mxu1 }
 0x534   : > { %7898 = vst [vmem:[#allocation42_spill] sm:$0xff] %v6323_v46  ;;  %v2647_v60 = vmax.f32 %v6320_v33, %v6323_v46  ;;  %v1928_v37 = vsub.f32 %v5732_v39, %v1834_v55  ;;  %v1929_v38 = vsub.f32 %v5734_v23, %v1834_v55  ;;  %v2632_v23 = vmax.f32 %v6260_v16, %v6262_v14 }
 0x536   : > { %2648 = vmax.xlane.f32.xlu2 %v2647_v60  ;;  %2642 = vmax.xlane.f32.xlu1 %v2641_v59  ;;  %v1992_v44 = vmul.f32 1.442695, %v1928_v37  ;;  %v1994_v43 = vmul.f32 1.442695, %v1929_v38  ;;  %v4451_v57 = vpop.eup %4450  ;;  %v1985_v37 = vsub.f32 %v6036_v7, %v6284_v29  ;;  %v2623_v7 = vmax.f32 %v6220_v48, %v6222_v10 }
 0x537   : > { %v4453_v55 = vpop.eup %4452 }
 0x538   : > { %4454 = vpow2.f32 %v1992_v44  ;;  %v1987_v44 = vsub.f32 %v6054_v62, %v6296_v54 }
 0x539   : > { %v1837_v13 = vpop.xlane.xlu1 %1836  ;;  %v1417_v59 = vpop.f32.mrf.mxu2 }
 0x53a   : > { %v1930_v56 = vsub.f32 %v5742_v12, %v1837_v13  ;;  %v1931_v46 = vsub.f32 %v5744_v2, %v1837_v13  ;;  %v6336_v39 = vpop.f32.mrf.mxu0  ;;  %v7901_v12 = vld [vmem:[#allocation20_spill] sm:$0xff]  ;;  %v2626_v2 = vmax.f32 %v6230_v11, %v6232_v17  ;;  %v2114_v13 = vmul.f32 1.442695, %v1989_v15 }
 0x53b   : > { %7899 = vst [vmem:[#allocation33_spill] sm:$0xff] %v6336_v39  ;;  %v6338_v60 = vpop.f32.mrf.mxu1  ;;  %v6356_v5 = vpop.xlane.xlu0 %1905  ;;  %v2110_v62 = vmul.f32 1.442695, %v1987_v44  ;;  %v1982_v15 = vsub.f32 %v6018_v40, %v6318_v28  ;;  %v1983_v40 = vsub.f32 %v6022_v53, %v6318_v28 }
 0x53c   : > { %7900 = vst [vmem:[#allocation34_spill] sm:$0xff] %v6338_v60  ;;  %v1996_v18 = vmul.f32 1.442695, %v1930_v56  ;;  %v1998_v63 = vmul.f32 1.442695, %v1931_v46  ;;  %v1984_v56 = vsub.f32 %v6032_v49, %v6284_v29  ;;  %v1430_v29 = vpop.f32.mrf.mxu3 }
 0x53d   : > { %v2108_v46 = vmul.f32 1.442695, %v1986_v35  ;;  %v2106_v35 = vmul.f32 1.442695, %v1985_v37  ;;  %v2100_v44 = vmul.f32 1.442695, %v1982_v15 }
 0x53e   : > { %4456 = vpow2.f32 %v1996_v18  ;;  %2633 = vmax.xlane.f32.xlu2 %v2632_v23  ;;  %2627 = vmax.xlane.f32.xlu1 %v2626_v2  ;;  %v4455_v61 = vpop.eup %4454  ;;  %v2104_v49 = vmul.f32 1.442695, %v1984_v56  ;;  %v6372_v18 = vadd.f32 %v1430_v29, %v1417_v59  ;;  %v1980_v2 = vsub.f32 %v6008_v3, %v6304_v8 }
 0x53f   : > { %4458 = vpow2.f32 %v2118_v0  ;;  %v2617_v59 = vmax.f32 %v6172_v27, %v6174_v42 }
 0x540   : > { %4460 = vpow2.f32 %v1994_v43  ;;  %v2096_v37 = vmul.f32 1.442695, %v1980_v2 }
 0x541   : > { %4182 = vmatmul.msk.bf16.vlgmr.msra.gmra.mxu0 %vm835_vm2, %v7901_v12  ;;  %4198 = vmatmul.msk.bf16.vlgmr.msra.gmra.mxu1 %vm835_vm2, %v7901_v12  ;;  %4462 = vpow2.f32 %v1998_v63  ;;  %v6362_v54 = vpop.xlane.xlu1 %1908  ;;  %v6374_v63 = vpack.c.bf16 %v4453_v55, %v4451_v57  ;;  %v1419_v28 = vpop.f32.mrf.mxu2 }
 0x542   : > { %4464 = vpow2.f32 %v2114_v13  ;;  %v6358_v32 = vpop.f32.mrf.mxu0 }
 0x543   : > { %v6360_v0 = vpop.f32.mrf.mxu1  ;;  %4466 = vpow2.f32 %v2108_v46  ;;  %v1981_v46 = vsub.f32 %v6010_v6, %v6304_v8  ;;  %v1978_v6 = vsub.f32 %v6002_v50, %v6362_v54  ;;  %v7902_v8 = vld [vmem:[#allocation49_spill] sm:$0xff] }
 0x544   : > { %v4457_v58 = vpop.eup %4456  ;;  %4468 = vpow2.f32 %v2104_v49  ;;  %v1900_v49 = vpop.xlane.xlu0 %1899 }
 0x545   : > { %v4459_v38 = vpop.eup %4458  ;;  %v6370_v43 = vpack.c.bf16 %v4457_v58, %v4455_v61  ;;  %4470 = vpow2.f32 %v2110_v62  ;;  %v2102_v61 = vmul.f32 1.442695, %v1983_v40  ;;  %v1432_v58 = vpop.f32.mrf.mxu3  ;;  %v2098_v29 = vmul.f32 1.442695, %v1981_v46 }
 0x546   : > { %v4461_v23 = vpop.eup %4460  ;;  %2630 = vmax.xlane.f32.xlu2 %v2629_v25  ;;  %2624 = vmax.xlane.f32.xlu1 %v2623_v7  ;;  %4472 = vpow2.f32 %v2106_v35  ;;  %v2614_v25 = vmax.f32 %v6154_v20, %v6156_v52  ;;  %v1979_v35 = vsub.f32 %v6004_v47, %v6362_v54  ;;  %v7937_v52 = vld [vmem:[#allocation39_spill] sm:$0xff] }
 0x547   : > { %v4463_v12 = vpop.eup %4462  ;;  %2159 = vmatpush.bf16.xpose.msra.mxu2 %v6370_v43  ;;  %4474 = vpow2.f32 %v2100_v44 }
 0x548   : > { %v4465_v13 = vpop.eup %4464  ;;  %v6381_v56 = vpack.c.bf16 %v4463_v12, %v4461_v23  ;;  %4476 = vpow2.f32 %v2096_v37  ;;  %v1976_v23 = vsub.f32 %v5988_v19, %v6356_v5  ;;  %v2092_v12 = vmul.f32 1.442695, %v1978_v6 }
 0x549   : > { %v6384_v57 = vpack.c.bf16 %v4459_v38, %v4465_v13  ;;  %v4467_v55 = vpop.eup %4466  ;;  %v1903_v38 = vpop.xlane.xlu1 %1902  ;;  %4478 = vpow2.f32 %v2102_v61  ;;  %v1977_v13 = vsub.f32 %v5990_v24, %v6356_v5  ;;  %v2094_v47 = vmul.f32 1.442695, %v1979_v35 }
 0x54a   : > { %2172 = vmatpush.bf16.xpose.msra.mxu3 %v6381_v56  ;;  %v6389_v3 = vpop.f32.mrf.mxu0  ;;  %v4469_v62 = vpop.eup %4468  ;;  %4480 = vpow2.f32 %v2098_v29  ;;  %v2088_v44 = vmul.f32 1.442695, %v1976_v23  ;;  %v1972_v24 = vsub.f32 %v5966_v30, %v1900_v49  ;;  %v1975_v58 = vsub.f32 %v5982_v36, %v1903_v38 }
 0x54b   : > { %v6392_v53 = vpop.f32.mrf.mxu1  ;;  %v4471_v7 = vpop.eup %4470  ;;  %v6404_v15 = vpack.c.bf16 %v4467_v55, %v4469_v62  ;;  %4482 = vpow2.f32 %v2092_v12  ;;  %v1974_v55 = vsub.f32 %v5980_v21, %v1903_v38  ;;  %v2090_v28 = vmul.f32 1.442695, %v1977_v13  ;;  %v7903_v38 = vld [vmem:[#allocation52_spill] sm:$0xff] }
 0x54c   : > { %v4473_v50 = vpop.eup %4472  ;;  %v1894_v61 = vpop.xlane.xlu0 %1893  ;;  %4484 = vpow2.f32 %v2088_v44  ;;  %v1973_v21 = vsub.f32 %v5968_v9, %v1900_v49  ;;  %v2080_v29 = vmul.f32 1.442695, %v1972_v24  ;;  %v2086_v23 = vmul.f32 1.442695, %v1975_v58 }
 0x54d   : > { %v6412_v2 = vpack.c.bf16 %v4471_v7, %v4473_v50  ;;  %v4475_v40 = vpop.eup %4474  ;;  %4486 = vpow2.f32 %v2094_v47  ;;  %v2084_v6 = vmul.f32 1.442695, %v1974_v55  ;;  %v1968_v49 = vsub.f32 %v5944_v31, %v1894_v61 }
 0x54e   : > { %2618 = vmax.xlane.f32.xlu2 %v2617_v59  ;;  %2615 = vmax.xlane.f32.xlu1 %v2614_v25  ;;  %v4477_v54 = vpop.eup %4476  ;;  %4488 = vpow2.f32 %v2090_v28  ;;  %v2082_v12 = vmul.f32 1.442695, %v1973_v21 }
 0x54f   : > { %2178 = vmatpush.bf16.xpose.msrb.mxu2 %v6374_v63  ;;  %v4479_v37 = vpop.eup %4478  ;;  %v6423_v59 = vpack.c.bf16 %v4475_v40, %v4477_v54  ;;  %4490 = vpow2.f32 %v2084_v6  ;;  %v1969_v54 = vsub.f32 %v5946_v1, %v1894_v61  ;;  %v2072_v24 = vmul.f32 1.442695, %v1968_v49  ;;  %v7906_v1 = vld [vmem:[#allocation77_spill] sm:$0xff] }
 0x550   : > { %2160 = vmatmul.bf16.vlgmr.msra.gmra.mxu2 %v7829_v51  ;;  %v4481_v5 = vpop.eup %4480  ;;  %4492 = vpow2.f32 %v2080_v29  ;;  %v7907_v29 = vld [vmem:[#allocation81_spill] sm:$0xff] }
 0x551   : > { %4183 = vmatmul.msk.bf16.gmra.mxu0 %vm835_vm2, %v7902_v8  ;;  %4199 = vmatmul.msk.bf16.gmra.mxu1 %vm835_vm2, %v7902_v8  ;;  %v1897_v62 = vpop.xlane.xlu1 %1896  ;;  %v6428_v8 = vpack.c.bf16 %v4479_v37, %v4481_v5  ;;  %v4483_v7 = vpop.eup %4482  ;;  %4494 = vpow2.f32 %v2086_v23  ;;  %v2074_v6 = vmul.f32 1.442695, %v1969_v54 }
 0x552   : > { %2191 = vmatpush.bf16.xpose.msrb.mxu3 %v6384_v57  ;;  %v6417_v19 = vpop.f32.mrf.mxu0  ;;  %v4485_v50 = vpop.eup %4484  ;;  %v1970_v36 = vsub.f32 %v5956_v22, %v1897_v62  ;;  %v1971_v44 = vsub.f32 %v5958_v34, %v1897_v62  ;;  %4496 = vpow2.f32 %v2082_v12 }
 0x553   : > { %2173 = vmatmul.bf16.vlgmr.msra.gmra.mxu3 %v7829_v51  ;;  %v6420_v46 = vpop.f32.mrf.mxu1  ;;  %v4487_v35 = vpop.eup %4486  ;;  %v6441_v9 = vpack.c.bf16 %v4483_v7, %v4485_v50 }
 0x554   : > { %v4489_v13 = vpop.eup %4488  ;;  %v1888_v40 = vpop.xlane.xlu0 %1887  ;;  %v2076_v22 = vmul.f32 1.442695, %v1970_v36  ;;  %v2078_v5 = vmul.f32 1.442695, %v1971_v44 }
 0x555   : > { %v6446_v47 = vpack.c.bf16 %v4487_v35, %v4489_v13  ;;  %v4491_v28 = vpop.eup %4490  ;;  %v1964_v61 = vsub.f32 %v7906_v1, %v1888_v40 }
 0x556   : > { %v4493_v58 = vpop.eup %4492  ;;  %4498 = vpow2.f32 %v2076_v22  ;;  %v1882_v22 = vpop.xlane.xlu2 %1881 }
 0x557   : > { %2179 = vmatpush.bf16.xpose.msrb.mxu2 %v6404_v15  ;;  %v4495_v62 = vpop.eup %4494  ;;  %4500 = vrcp.f32 %v6372_v18  ;;  %v6456_v21 = vpack.c.bf16 %v4491_v28, %v4493_v58  ;;  %v2064_v49 = vmul.f32 1.442695, %v1964_v61  ;;  %v7909_v28 = vld [vmem:[#allocation74_spill] sm:$0xff]  ;;  %v7912_v61 = vld [vmem:[#allocation75_spill] sm:$0xff] }
 0x558   : > { %4502 = vpow2.f32 %v2072_v24  ;;  %v4497_v7 = vpop.eup %4496 }
 0x559   : > { %v1891_v55 = vpop.xlane.xlu1 %1890  ;;  %4504 = vpow2.f32 %v2078_v5  ;;  %v6461_v36 = vpack.c.bf16 %v4495_v62, %v4497_v7  ;;  %v7910_v5 = vld [vmem:[#allocation61_spill] sm:$0xff]  ;;  %v7911_v62 = vld [vmem:[#allocation71_spill] sm:$0xff] }
 0x55a   : > { %2192 = vmatpush.bf16.xpose.msrb.mxu3 %v6412_v2  ;;  %v6431_v25 = vpop.f32.mrf.mxu0  ;;  %v1966_v34 = vsub.f32 %v7847_v4, %v1891_v55  ;;  %v1967_v23 = vsub.f32 %v7907_v29, %v1891_v55  ;;  %4506 = vpow2.f32 %v2074_v6  ;;  %v7908_v4 = vld [vmem:[#allocation78_spill] sm:$0xff]  ;;  %v1960_v6 = vsub.f32 %v7911_v62, %v1882_v22 }
 0x55b   : > { %v6434_v30 = vpop.f32.mrf.mxu1 }
 0x55c   : > { %v2068_v50 = vmul.f32 1.442695, %v1966_v34  ;;  %v4499_v18 = vpop.eup %4498  ;;  %v2070_v54 = vmul.f32 1.442695, %v1967_v23 }
 0x55d   : > { %v4501_v44 = vpop.eup %4500 }
 0x55e   : > { %v1885_v35 = vpop.xlane.xlu0 %1884  ;;  %v4503_v55 = vpop.eup %4502  ;;  %4508 = vpow2.f32 %v2068_v50  ;;  %v6479_v23 = vperm.slane %v4501_v44, 0 }
 0x55f   : > { %2180 = vmatpush.bf16.xpose.msrb.mxu2 %v6423_v59  ;;  %v1962_v24 = vsub.f32 %v7909_v28, %v1885_v35  ;;  %v6474_v34 = vpack.c.bf16 %v4499_v18, %v4503_v55  ;;  %4510 = vpow2.f32 %v2064_v49  ;;  %v1963_v7 = vsub.f32 %v7912_v61, %v1885_v35 }
 0x560   : > { %4512 = vpow2.f32 %v2070_v54  ;;  %7913 = vst [vmem:[#allocation55_spill] sm:$0xff] %v6479_v23 }
 0x561   : > { %4184 = vmatmul.msk.bf16.gmra.mxu0 %vm835_vm2, %v7903_v38  ;;  %4200 = vmatmul.msk.bf16.gmra.mxu1 %vm835_vm2, %v7903_v38  ;;  %v1965_v38 = vsub.f32 %v7908_v4, %v1888_v40  ;;  %v4505_v40 = vpop.eup %4504  ;;  %v2060_v29 = vmul.f32 1.442695, %v1962_v24  ;;  %v7914_v4 = vld [vmem:[#allocation72_spill] sm:$0xff]  ;;  %v2062_v54 = vmul.f32 1.442695, %v1963_v7 }
 0x562   : > { %2193 = vmatpush.bf16.xpose.msrb.mxu3 %v6428_v8  ;;  %v6449_v37 = vpop.f32.mrf.mxu0  ;;  %v4507_v1 = vpop.eup %4506 }
 0x563   : > { %7904 = vst [vmem:[#allocation43_spill] sm:$0xff] %v6449_v37  ;;  %v6452_v31 = vpop.f32.mrf.mxu1  ;;  %v2066_v58 = vmul.f32 1.442695, %v1965_v38  ;;  %v6481_v50 = vpack.c.bf16 %v4505_v40, %v4507_v1  ;;  %v1961_v38 = vsub.f32 %v7914_v4, %v1882_v22 }
 0x564   : > { %7905 = vst [vmem:[#allocation50_spill] sm:$0xff] %v6452_v31  ;;  %v4509_v55 = vpop.eup %4508 }
 0x565   : > { %4514 = vpow2.f32 %v2066_v58  ;;  %v4511_v24 = vpop.eup %4510  ;;  %v2058_v22 = vmul.f32 1.442695, %v1961_v38 }
 0x566   : > { %4516 = vpow2.f32 %v2060_v29  ;;  %v4513_v40 = vpop.eup %4512  ;;  %v6492_v58 = vpack.c.bf16 %v4509_v55, %v4511_v24  ;;  %v7919_v24 = vld [vmem:[#allocation65_spill] sm:$0xff] }
 0x567   : > { %2181 = vmatpush.bf16.xpose.msrb.mxu2 %v6441_v9 }
 0x56a   : > { %2194 = vmatpush.bf16.xpose.msrb.mxu3 %v6446_v47 }
 0x56b   : > { %v4515_v1 = vpop.eup %4514 }
 0x56c   : > { %v4517_v29 = vpop.eup %4516 }
 0x56e   : > { %v6464_v12 = vpop.f32.mrf.mxu0  ;;  %v6467_v13 = vpop.f32.mrf.mxu1 }
 0x56f   : > { %2182 = vmatpush.bf16.xpose.msrb.mxu2 %v6456_v21 }
 0x571   : > { %4185 = vmatmul.msk.bf16.gmra.mxu0 %vm835_vm2, %v7910_v5  ;;  %4201 = vmatmul.msk.bf16.gmra.mxu1 %vm835_vm2, %v7910_v5  ;;  %v2056_v5 = vmul.f32 1.442695, %v1960_v6  ;;  %v6495_v6 = vpack.c.bf16 %v4513_v40, %v4515_v1 }
 0x572   : > { %2195 = vmatpush.bf16.xpose.msrb.mxu3 %v6461_v36 }
 0x573   : > { %4518 = vpow2.f32 %v2056_v5 }
 0x574   : > { %4520 = vpow2.f32 %v2062_v54 }
 0x575   : > { %4522 = vpow2.f32 %v2058_v22 }
 0x576   : > { %v6485_v62 = vpop.f32.mrf.mxu0  ;;  %v6487_v35 = vpop.f32.mrf.mxu1 }
 0x577   : > { %2183 = vmatpush.bf16.xpose.msrb.mxu2 %v6474_v34 }
 0x579   : > { %v1501_v28 = vpop.f32.mrf.mxu2 }
 0x57a   : > { %v1520_v18 = vpop.f32.mrf.mxu3  ;;  %2196 = vmatpush.bf16.xpose.msrb.mxu3 %v6481_v50 }
 0x57b   : > { %v1521_v49 = vadd.f32 %v1520_v18, %v1501_v28  ;;  %v4519_v28 = vpop.eup %4518  ;;  %v7918_v18 = vld [vmem:[#allocation67_spill] sm:$0xff] }
 0x57c   : > { %v4521_v55 = vpop.eup %4520  ;;  %v6510_v5 = vpack.c.bf16 %v4517_v29, %v4519_v28  ;;  %v7922_v28 = vld [vmem:[#allocation63_spill] sm:$0xff] }
 0x57d   : > { %v6490_v44 = vmul.f32 %v6479_v23, %v1521_v49  ;;  %v4523_v49 = vpop.eup %4522 }
 0x57e   : > { %v6502_v4 = vpop.f32.mrf.mxu0  ;;  %v6504_v38 = vpop.f32.mrf.mxu1  ;;  %v6513_v54 = vpack.c.bf16 %v4521_v55, %v4523_v49  ;;  %v7925_v49 = vld [vmem:[#allocation59_spill] sm:$0xff] }
 0x57f   : > { %7915 = vst [vmem:[#allocation20_spill] sm:$0xff] %v6490_v44  ;;  %2184 = vmatpush.bf16.xpose.msrb.mxu2 %v6492_v58 }
 0x581   : > { %v6497_v61 = vpop.f32.mrf.mxu2  ;;  %4186 = vmatmul.msk.bf16.gmra.mxu0 %vm835_vm2, %v7918_v18  ;;  %4202 = vmatmul.msk.bf16.gmra.mxu1 %vm835_vm2, %v7918_v18 }
 0x582   : > { %7916 = vst [vmem:[#allocation49_spill] sm:$0xff] %v6497_v61  ;;  %v6499_v7 = vpop.f32.mrf.mxu3  ;;  %2197 = vmatpush.bf16.xpose.msrb.mxu3 %v6495_v6  ;;  %v7920_v61 = vld [vmem:[#allocation66_spill] sm:$0xff] }
 0x583   : > { %7917 = vst [vmem:[#allocation52_spill] sm:$0xff] %v6499_v7 }
 0x586   : > { %v6517_v44 = vpop.f32.mrf.mxu0  ;;  %v6519_v7 = vpop.f32.mrf.mxu1 }
 0x587   : > { %2185 = vmatpush.bf16.xpose.msrb.mxu2 %v6510_v5 }
 0x58a   : > { %2198 = vmatpush.bf16.xpose.msrb.mxu3 %v6513_v54 }
 0x58c   : > { %v1506_v40 = vpop.f32.mrf.mxu2  ;;  %v1525_v22 = vpop.f32.mrf.mxu3 }
 0x58d   : > { %v1526_v1 = vadd.f32 %v1525_v22, %v1506_v40 }
 0x58e   : > { %2186 = vmatmul.bf16.vlgmr.msrb.gmra.mxu2 %v7829_v51  ;;  %v6528_v18 = vpop.f32.mrf.mxu0  ;;  %v6530_v55 = vpop.f32.mrf.mxu1 }
 0x58f   : > { %2224 = vmatpush.bf16.xpose.msra.mxu2 %v7919_v24  ;;  %v6523_v29 = vmul.f32 %v6479_v23, %v1526_v1  ;;  %7923 = vst [vmem:[#allocation81_spill] sm:$0xff] %v6528_v18  ;;  %v7926_v24 = vld [vmem:[#allocation70_spill] sm:$0xff]  ;;  %v7928_v1 = vld [vmem:[#allocation9_spill] sm:$0xff] }
 0x590   : > { %7924 = vst [vmem:[#allocation78_spill] sm:$0xff] %v6530_v55 }
 0x591   : > { %7921 = vst [vmem:[#allocation77_spill] sm:$0xff] %v6523_v29  ;;  %2199 = vmatmul.bf16.vlgmr.msrb.gmra.mxu3 %v7829_v51  ;;  %4187 = vmatmul.msk.bf16.gmra.mxu0 %vm835_vm2, %v7926_v24 }
 0x592   : > { %2243 = vmatpush.bf16.xpose.msra.mxu3 %v7920_v61  ;;  %4203 = vmatmul.msk.bf16.gmra.mxu1 %vm835_vm2, %v7926_v24  ;;  %v7927_v61 = vld [vmem:[#allocation57_spill] sm:$0xff]  ;;  %v7933_v24 = vld [vmem:[#allocation76_spill] sm:$0xff] }
 0x596   : > { %v6538_v40 = vpop.f32.mrf.mxu0  ;;  %v6540_v22 = vpop.f32.mrf.mxu1 }
 0x597   : > { %2225 = vmatpush.bf16.xpose.msra.mxu2 %v7922_v28  ;;  %v7929_v28 = vld [vmem:[#allocation58_spill] sm:$0xff] }
 0x59a   : > { %2244 = vmatpush.bf16.xpose.msra.mxu3 %v7925_v49  ;;  %v7932_v49 = vld [vmem:[#allocation53_spill] sm:$0xff] }
 0x59e   : > { %v6544_v29 = vpop.f32.mrf.mxu0  ;;  %v6546_v23 = vpop.f32.mrf.mxu1 }
 0x59f   : > { %2226 = vmatpush.bf16.xpose.msra.mxu2 %v7927_v61  ;;  %7930 = vst [vmem:[#allocation74_spill] sm:$0xff] %v6544_v29  ;;  %v2686_v51 = vmax.f32 %v6544_v29, %v6546_v23  ;;  %v7934_v61 = vld [vmem:[#allocation38_spill] sm:$0xff] }
 0x5a0   : > { %7931 = vst [vmem:[#allocation61_spill] sm:$0xff] %v6546_v23  ;;  %v7938_v23 = vld [vmem:[#allocation15_spill] sm:$0xff] }
 0x5a1   : > { %4188 = vmatmul.msk.bf16.gmra.mxu0 %vm835_vm2, %v7933_v24  ;;  %2687 = vmax.xlane.f32.xlu0 %v2686_v51 }
 0x5a2   : > { %2245 = vmatpush.bf16.xpose.msra.mxu3 %v7928_v1  ;;  %4204 = vmatmul.msk.bf16.gmra.mxu1 %vm835_vm2, %v7933_v24  ;;  %v7941_v24 = vld [vmem:[#allocation16_spill] sm:$0xff] }
 0x5a6   : > { %v6556_v1 = vpop.f32.mrf.mxu0 }
 0x5a7   : > { %2227 = vmatpush.bf16.xpose.msra.mxu2 %v7929_v28  ;;  %7935 = vst [vmem:[#allocation71_spill] sm:$0xff] %v6556_v1  ;;  %v6558_v28 = vpop.f32.mrf.mxu1 }
 0x5a8   : > { %7936 = vst [vmem:[#allocation75_spill] sm:$0xff] %v6558_v28 }
 0x5aa   : > { %2246 = vmatpush.bf16.xpose.msra.mxu3 %v7932_v49  ;;  %v2689_v49 = vmax.f32 %v6556_v1, %v6558_v28 }
 0x5ac   : > { %2690 = vmax.xlane.f32.xlu1 %v2689_v49 }
 0x5ae   : > { %v6564_v29 = vpop.f32.mrf.mxu0 }
 0x5af   : > { %2228 = vmatpush.bf16.xpose.msra.mxu2 %v7934_v61  ;;  %7939 = vst [vmem:[#allocation72_spill] sm:$0xff] %v6564_v29  ;;  %v6566_v42 = vpop.f32.mrf.mxu1  ;;  %v7942_v61 = vld [vmem:[#allocation82_spill] sm:$0xff] }
 0x5b0   : > { %7940 = vst [vmem:[#allocation67_spill] sm:$0xff] %v6566_v42  ;;  %v2692_v51 = vmax.f32 %v6564_v29, %v6566_v42  ;;  %v7947_v42 = vld [vmem:[#allocation87_spill] sm:$0xff]  ;;  %v7948_v29 = vld [vmem:[#allocation86_spill] sm:$0xff] }
 0x5b1   : > { %4189 = vmatmul.msk.bf16.gmra.mxu0 %vm835_vm2, %v7942_v61  ;;  %v2608_v20 = vmax.f32 %v7948_v29, %v7947_v42 }
 0x5b2   : > { %2247 = vmatpush.bf16.xpose.msra.mxu3 %v7937_v52  ;;  %v2680_v52 = vmax.f32 %v6528_v18, %v6530_v55  ;;  %4205 = vmatmul.msk.bf16.gmra.mxu1 %vm835_vm2, %v7942_v61  ;;  %v7949_v55 = vld [vmem:[#allocation85_spill] sm:$0xff]  ;;  %v7950_v18 = vld [vmem:[#allocation84_spill] sm:$0xff]  ;;  %v7951_v61 = vld [vmem:[#allocation14_spill] sm:$0xff] }
 0x5b3   : > { %2693 = vmax.xlane.f32.xlu2 %v2692_v51  ;;  %v2605_v27 = vmax.f32 %v7950_v18, %v7949_v55  ;;  %v7952_v51 = vld [vmem:[#allocation29_spill] sm:$0xff]  ;;  %v2683_v55 = vmax.f32 %v6538_v40, %v6540_v22 }
 0x5b4   : > { %2681 = vmax.xlane.f32.xlu1 %v2680_v52  ;;  %v760_v52 = vpack.c.bf16 %v7952_v51, %v7951_v61  ;;  %v7957_v61 = vld [vmem:[#allocation88_spill] sm:$0xff]  ;;  %v2668_v51 = vmax.f32 %v6464_v12, %v6467_v13 }
 0x5b6   : > { %v6578_v49 = vpop.f32.mrf.mxu0 }
 0x5b7   : > { %2229 = vmatpush.bf16.xpose.msra.mxu2 %v7938_v23  ;;  %v7943_v23 = vld [vmem:[#allocation36_spill] sm:$0xff]  ;;  %7944 = vst [vmem:[#allocation65_spill] sm:$0xff] %v6578_v49  ;;  %v6580_v28 = vpop.f32.mrf.mxu1 }
 0x5b8   : > { %7945 = vst [vmem:[#allocation66_spill] sm:$0xff] %v6580_v28  ;;  %v2695_v1 = vmax.f32 %v6578_v49, %v6580_v28 }
 0x5ba   : > { %2248 = vmatpush.bf16.xpose.msra.mxu3 %v7941_v24  ;;  %v7946_v24 = vld [vmem:[#allocation48_spill] sm:$0xff]  ;;  %2696 = vmax.xlane.f32.xlu0 %v2695_v1  ;;  %v2211_v1 = vunpack.c.h.b16 %v760_v52 }
 0x5bb   : > { %2609 = vmax.xlane.f32.xlu2 %v2608_v20 }
 0x5bc   : > { %2606 = vmax.xlane.f32.xlu1 %v2605_v27  ;;  %v7956_v27 = vld [vmem:[#allocation89_spill] sm:$0xff] }
 0x5be   : > { %v6594_v28 = vpop.f32.mrf.mxu0 }
 0x5bf   : > { %2230 = vmatpush.bf16.xpose.msra.mxu2 %v7943_v23  ;;  %v7953_v23 = vld [vmem:[#allocation13_spill] sm:$0xff]  ;;  %7954 = vst [vmem:[#allocation63_spill] sm:$0xff] %v6594_v28  ;;  %v6596_v49 = vpop.f32.mrf.mxu1 }
 0x5c0   : > { %v2208_v10 = vunpack.c.l.b16 %v7953_v23  ;;  %7955 = vst [vmem:[#allocation59_spill] sm:$0xff] %v6596_v49  ;;  %v2209_v20 = vunpack.c.h.b16 %v7953_v23  ;;  %v7961_v23 = vld [vmem:[#allocation22_spill] sm:$0xff] }
 0x5c2   : > { %2249 = vmatpush.bf16.xpose.msra.mxu3 %v7946_v24  ;;  %v2210_v24 = vunpack.c.l.b16 %v760_v52 }
 0x5c3   : > { %2684 = vmax.xlane.f32.xlu2 %v2683_v55 }
 0x5c4   : > { %v6609_v28 = vpack.c.b16 %v2210_v24, %v2208_v10  ;;  %2669 = vmax.xlane.f32.xlu1 %v2668_v51  ;;  %v2674_v10 = vmax.f32 %v6502_v4, %v6504_v38  ;;  %v7962_v24 = vld [vmem:[#allocation21_spill] sm:$0xff]  ;;  %v7965_v51 = vld [vmem:[#allocation31_spill] sm:$0xff] }
 0x5c5   : > { %v2602_v55 = vmax.f32 %v7962_v24, %v7961_v23 }
 0x5c7   : > { %2231 = vmatpush.bf16.xpose.msra.mxu2 %v6370_v43  ;;  %v2611_v43 = vmax.f32 %v7957_v61, %v7956_v27  ;;  %v6620_v52 = vpop.f32.mrf.mxu1 }
 0x5c8   : > { %7960 = vst [vmem:[#allocation57_spill] sm:$0xff] %v6620_v52 }
 0x5c9   : > { %2612 = vmax.xlane.f32.xlu0 %v2611_v43  ;;  %v2665_v43 = vmax.f32 %v6449_v37, %v6452_v31  ;;  %v2671_v31 = vmax.f32 %v6485_v62, %v6487_v35 }
 0x5ca   : > { %2250 = vmatpush.bf16.xpose.msra.mxu3 %v6381_v56  ;;  %v6614_v56 = vpack.c.b16 %v2211_v1, %v2209_v20  ;;  %v7963_v20 = vld [vmem:[#allocation5_spill] sm:$0xff]  ;;  %v7964_v1 = vld [vmem:[#allocation6_spill] sm:$0xff] }
 0x5cb   : > { %2675 = vmax.xlane.f32.xlu2 %v2674_v10  ;;  %v2650_v10 = vmax.f32 %v6336_v39, %v6338_v60 }
 0x5cc   : > { %2666 = vmax.xlane.f32.xlu1 %v2665_v43  ;;  %v7968_v43 = vld [vmem:[#allocation51_spill] sm:$0xff] }
 0x5ce   : > { %2232 = vmatmul.bf16.vlgmr.msra.gmra.mxu2 %v6609_v28 }
 0x5cf   : > { %2262 = vmatpush.bf16.xpose.msrb.mxu2 %v6374_v63  ;;  %v7958_v63 = vld [vmem:[#allocation44_spill] sm:$0xff]  ;;  %v6635_v52 = vpop.f32.mrf.mxu1 }
 0x5d0   : > { %4190 = vmatmul.msk.bf16.gmra.mxu0 %vm835_vm2, %v7958_v63  ;;  %4206 = vmatmul.msk.bf16.gmra.mxu1 %vm835_vm2, %v7958_v63  ;;  %v2212_v63 = vunpack.c.l.b16 %v7965_v51  ;;  %7967 = vst [vmem:[#allocation58_spill] sm:$0xff] %v6635_v52 }
 0x5d1   : > { %2251 = vmatmul.bf16.vlgmr.msra.gmra.mxu3 %v6614_v56  ;;  %2603 = vmax.xlane.f32.xlu0 %v2602_v55  ;;  %v2677_v55 = vmax.f32 %v6517_v44, %v6519_v7 }
 0x5d2   : > { %2281 = vmatpush.bf16.xpose.msrb.mxu3 %v6384_v57  ;;  %v6618_v57 = vpop.f32.mrf.mxu0 }
 0x5d3   : > { %7959 = vst [vmem:[#allocation70_spill] sm:$0xff] %v6618_v57  ;;  %2672 = vmax.xlane.f32.xlu2 %v2671_v31  ;;  %v2662_v31 = vmax.f32 %v6431_v25, %v6434_v30 }
 0x5d4   : > { %2651 = vmax.xlane.f32.xlu1 %v2650_v10  ;;  %v7971_v10 = vld [vmem:[#allocation56_spill] sm:$0xff] }
 0x5d7   : > { %2263 = vmatpush.bf16.xpose.msrb.mxu2 %v6404_v15  ;;  %v762_v15 = vpack.c.bf16 %v7964_v1, %v7963_v20  ;;  %v6658_v1 = vpop.f32.mrf.mxu1 }
 0x5d8   : > { %7970 = vst [vmem:[#allocation76_spill] sm:$0xff] %v6658_v1  ;;  %v2640_v1 = vpop.xlane.xlu0 %2639 }
 0x5d9   : > { %v2214_v49 = vunpack.c.l.b16 %v762_v15  ;;  %v2215_v37 = vunpack.c.h.b16 %v762_v15  ;;  %2678 = vmax.xlane.f32.xlu0 %v2677_v55  ;;  %v2656_v15 = vmax.f32 %v6389_v3, %v6392_v53 }
 0x5da   : > { %2282 = vmatpush.bf16.xpose.msrb.mxu3 %v6412_v2  ;;  %v6633_v57 = vpop.f32.mrf.mxu0  ;;  %v2213_v2 = vunpack.c.h.b16 %v7965_v51  ;;  %v2653_v51 = vmax.f32 %v6358_v32, %v6360_v0 }
 0x5db   : > { %7966 = vst [vmem:[#allocation9_spill] sm:$0xff] %v6633_v57  ;;  %2657 = vmax.xlane.f32.xlu2 %v2656_v15  ;;  %v7976_v57 = vld [vmem:[#allocation19_spill] sm:$0xff] }
 0x5dc   : > { %v6652_v20 = vpack.c.b16 %v2215_v37, %v2213_v2  ;;  %v2646_v37 = vpop.xlane.xlu1 %2645  ;;  %v2649_v2 = vpop.xlane.xlu2 %2648 }
 0x5dd   : > { %v2727_v52 = vsub.f32 %v7976_v57, %v2646_v37 }
 0x5df   : > { %2264 = vmatpush.bf16.xpose.msrb.mxu2 %v6423_v59  ;;  %v6649_v59 = vpack.c.b16 %v2214_v49, %v2212_v63  ;;  %v6668_v49 = vpop.f32.mrf.mxu1  ;;  %v2659_v63 = vmax.f32 %v6417_v19, %v6420_v46 }
 0x5e0   : > { %4191 = vmatmul.msk.bf16.gmra.mxu0 %vm835_vm2, %v7968_v43  ;;  %4207 = vmatmul.msk.bf16.gmra.mxu1 %vm835_vm2, %v7968_v43  ;;  %v7973_v43 = vld [vmem:[#allocation42_spill] sm:$0xff] }
 0x5e1   : > { %2237 = vmatmul.bf16.gmra.mxu2 %v6649_v59  ;;  %2256 = vmatmul.bf16.gmra.mxu3 %v6652_v20  ;;  %v2729_v15 = vsub.f32 %v7973_v43, %v2649_v2 }
 0x5e2   : > { %2283 = vmatpush.bf16.xpose.msrb.mxu3 %v6428_v8  ;;  %v6656_v8 = vpop.f32.mrf.mxu0  ;;  %2663 = vmax.xlane.f32.xlu0 %v2662_v31 }
 0x5e3   : > { %7969 = vst [vmem:[#allocation53_spill] sm:$0xff] %v6656_v8  ;;  %2654 = vmax.xlane.f32.xlu2 %v2653_v51 }
 0x5e4   : > { %v2643_v60 = vpop.xlane.xlu1 %2642 }
 0x5e7   : > { %2265 = vmatpush.bf16.xpose.msrb.mxu2 %v6441_v9  ;;  %v6685_v8 = vpop.f32.mrf.mxu1 }
 0x5e8   : > { %7975 = vst [vmem:[#allocation39_spill] sm:$0xff] %v6685_v8 }
 0x5ea   : > { %2284 = vmatpush.bf16.xpose.msrb.mxu3 %v6446_v47  ;;  %v6666_v9 = vpop.f32.mrf.mxu0  ;;  %2660 = vmax.xlane.f32.xlu0 %v2659_v63  ;;  %v2728_v47 = vsub.f32 %v6320_v33, %v2649_v2  ;;  %v2824_v63 = vmul.f32 1.442695, %v2729_v15  ;;  %v2724_v33 = vsub.f32 %v6298_v41, %v2643_v60  ;;  %v2634_v2 = vpop.xlane.xlu2 %2633  ;;  %v7982_v41 = vld [vmem:[#allocation64_spill] sm:$0xff] }
 0x5ef   : > { %2266 = vmatpush.bf16.xpose.msrb.mxu2 %v6456_v21  ;;  %v7972_v21 = vld [vmem:[#allocation46_spill] sm:$0xff]  ;;  %v6695_v57 = vpop.f32.mrf.mxu1 }
 0x5f0   : > { %4192 = vmatmul.msk.bf16.gmra.mxu0 %vm835_vm2, %v7971_v10  ;;  %4208 = vmatmul.msk.bf16.gmra.mxu1 %vm835_vm2, %v7971_v10  ;;  %v2726_v55 = vsub.f32 %v7972_v21, %v2646_v37  ;;  %v2820_v10 = vmul.f32 1.442695, %v2727_v52  ;;  %7980 = vst [vmem:[#allocation16_spill] sm:$0xff] %v6695_v57  ;;  %v7981_v37 = vld [vmem:[#allocation30_spill] sm:$0xff] }
 0x5f2   : > { %2285 = vmatpush.bf16.xpose.msrb.mxu3 %v6461_v36  ;;  %v6683_v31 = vpop.f32.mrf.mxu0  ;;  %v2822_v36 = vmul.f32 1.442695, %v2728_v47  ;;  %v2818_v51 = vmul.f32 1.442695, %v2726_v55  ;;  %v7978_v47 = vld [vmem:[#allocation32_spill] sm:$0xff]  ;;  %v2723_v55 = vsub.f32 %v7981_v37, %v2640_v1 }
 0x5f3   : > { %7974 = vst [vmem:[#allocation38_spill] sm:$0xff] %v6683_v31  ;;  %v2725_v43 = vsub.f32 %v7978_v47, %v2643_v60  ;;  %v2719_v47 = vsub.f32 %v6262_v14, %v2634_v2 }
 0x5f4   : > { %4524 = vpow2.f32 %v2822_v36 }
 0x5f5   : > { %4526 = vpow2.f32 %v2818_v51  ;;  %v2816_v60 = vmul.f32 1.442695, %v2725_v43  ;;  %v2718_v51 = vsub.f32 %v6260_v16, %v2634_v2  ;;  %v2804_v14 = vmul.f32 1.442695, %v2719_v47 }
 0x5f6   : > { %4528 = vpow2.f32 %v2824_v63  ;;  %v2628_v63 = vpop.xlane.xlu1 %2627 }
 0x5f7   : > { %2267 = vmatpush.bf16.xpose.msrb.mxu2 %v6474_v34  ;;  %v7977_v34 = vld [vmem:[#allocation45_spill] sm:$0xff]  ;;  %4530 = vpow2.f32 %v2820_v10  ;;  %v2802_v16 = vmul.f32 1.442695, %v2718_v51  ;;  %v2715_v47 = vsub.f32 %v6232_v17, %v2628_v63 }
 0x5f8   : > { %v2722_v21 = vsub.f32 %v7977_v34, %v2640_v1  ;;  %v2812_v1 = vmul.f32 1.442695, %v2723_v55  ;;  %v7987_v55 = vld [vmem:[#allocation47_spill] sm:$0xff] }
 0x5fa   : > { %2286 = vmatpush.bf16.xpose.msrb.mxu3 %v6481_v50  ;;  %v6693_v39 = vpop.f32.mrf.mxu0  ;;  %v2814_v50 = vmul.f32 1.442695, %v2724_v33  ;;  %v4525_v52 = vpop.eup %4524  ;;  %v2810_v15 = vmul.f32 1.442695, %v2722_v21 }
 0x5fb   : > { %7979 = vst [vmem:[#allocation15_spill] sm:$0xff] %v6693_v39  ;;  %v4527_v36 = vpop.eup %4526 }
 0x5fc   : > { %4532 = vpow2.f32 %v2814_v50  ;;  %v4529_v33 = vpop.eup %4528  ;;  %v6704_v10 = vpack.c.bf16 %v4525_v52, %v4527_v36  ;;  %v6712_v50 = vpop.f32.mrf.mxu1 }
 0x5fd   : > { %4534 = vpow2.f32 %v2810_v15  ;;  %v4531_v21 = vpop.eup %4530  ;;  %7985 = vst [vmem:[#allocation36_spill] sm:$0xff] %v6712_v50  ;;  %v2631_v52 = vpop.xlane.xlu2 %2630 }
 0x5fe   : > { %4536 = vpow2.f32 %v2816_v60  ;;  %v6714_v37 = vpack.c.bf16 %v4529_v33, %v4531_v21  ;;  %v2716_v60 = vsub.f32 %v6250_v45, %v2631_v52  ;;  %v2625_v33 = vpop.xlane.xlu1 %2624 }
 0x5ff   : > { %2268 = vmatpush.bf16.xpose.msrb.mxu2 %v6492_v58  ;;  %v2637_v58 = vpop.xlane.xlu0 %2636  ;;  %4538 = vpow2.f32 %v2812_v1  ;;  %v2717_v1 = vsub.f32 %v6252_v26, %v2631_v52  ;;  %v2712_v17 = vsub.f32 %v6220_v48, %v2625_v33 }
 0x600   : > { %4193 = vmatmul.msk.bf16.gmra.mxu0 %vm835_vm2, %v7982_v41  ;;  %4209 = vmatmul.msk.bf16.gmra.mxu1 %vm835_vm2, %v7982_v41  ;;  %7986 = vst [vmem:[#allocation48_spill] sm:$0xff] %v6714_v37  ;;  %v2721_v41 = vsub.f32 %v7987_v55, %v2637_v58  ;;  %4540 = vpow2.f32 %v2802_v16  ;;  %v2798_v45 = vmul.f32 1.442695, %v2716_v60 }
 0x602   : > { %2287 = vmatpush.bf16.xpose.msrb.mxu3 %v6495_v6  ;;  %v7983_v6 = vld [vmem:[#allocation54_spill] sm:$0xff]  ;;  %v6710_v43 = vpop.f32.mrf.mxu0 }
 0x603   : > { %v2720_v34 = vsub.f32 %v7983_v6, %v2637_v58  ;;  %7984 = vst [vmem:[#allocation82_spill] sm:$0xff] %v6710_v43  ;;  %v2808_v6 = vmul.f32 1.442695, %v2721_v41  ;;  %v2714_v58 = vsub.f32 %v6230_v11, %v2628_v63  ;;  %v7991_v11 = vld [vmem:[#allocation69_spill] sm:$0xff]  ;;  %v2800_v41 = vmul.f32 1.442695, %v2717_v1 }
 0x604   : > { %v6728_v21 = vpop.f32.mrf.mxu1 }
 0x605   : > { %v2806_v15 = vmul.f32 1.442695, %v2720_v34  ;;  %7989 = vst [vmem:[#allocation86_spill] sm:$0xff] %v6728_v21  ;;  %v2794_v55 = vmul.f32 1.442695, %v2714_v58 }
 0x607   : > { %2269 = vmatpush.bf16.xpose.msrb.mxu2 %v6510_v5  ;;  %v4533_v5 = vpop.eup %4532  ;;  %4542 = vpow2.f32 %v2806_v15  ;;  %v2622_v26 = vpop.xlane.xlu0 %2621  ;;  %v2796_v15 = vmul.f32 1.442695, %v2715_v47  ;;  %v7998_v47 = vld [vmem:[#allocation62_spill] sm:$0xff] }
 0x608   : > { %v4535_v2 = vpop.eup %4534  ;;  %4544 = vpow2.f32 %v2804_v14 }
 0x609   : > { %v4537_v36 = vpop.eup %4536  ;;  %v6721_v51 = vpack.c.bf16 %v4533_v5, %v4535_v2  ;;  %4546 = vpow2.f32 %v2808_v6  ;;  %v6739_v5 = vpop.f32.mrf.mxu2  ;;  %v7995_v2 = vld [vmem:[#allocation80_spill] sm:$0xff] }
 0x60a   : > { %2288 = vmatpush.bf16.xpose.msrb.mxu3 %v6513_v54  ;;  %v4539_v54 = vpop.eup %4538  ;;  %v6726_v34 = vpop.f32.mrf.mxu0  ;;  %7992 = vst [vmem:[#allocation14_spill] sm:$0xff] %v6739_v5  ;;  %4548 = vpow2.f32 %v2798_v45  ;;  %v2710_v60 = vsub.f32 %v7995_v2, %v2622_v26  ;;  %v7996_v6 = vld [vmem:[#allocation60_spill] sm:$0xff]  ;;  %v2790_v45 = vmul.f32 1.442695, %v2712_v17  ;;  %v8000_v5 = vld [vmem:[#allocation90_spill] sm:$0xff] }
 0x60b   : > { %7988 = vst [vmem:[#allocation87_spill] sm:$0xff] %v6721_v51  ;;  %v4541_v16 = vpop.eup %4540  ;;  %4550 = vpow2.f32 %v2794_v55  ;;  %v2713_v58 = vsub.f32 %v7996_v6, %v2625_v33  ;;  %v7999_v33 = vld [vmem:[#allocation17_spill] sm:$0xff] }
 0x60c   : > { %4552 = vpow2.f32 %v2800_v41  ;;  %v6751_v1 = vpop.f32.mrf.mxu1  ;;  %v2786_v55 = vmul.f32 1.442695, %v2710_v60  ;;  %v8002_v60 = vld [vmem:[#allocation68_spill] sm:$0xff] }
 0x60d   : > { %v4543_v52 = vpop.eup %4542  ;;  %4554 = vpow2.f32 %v2796_v15  ;;  %v2792_v41 = vmul.f32 1.442695, %v2713_v58 }
 0x60e   : > { %2270 = vmatmul.bf16.vlgmr.msrb.gmra.mxu2 %v6609_v28  ;;  %v6731_v28 = vpack.c.bf16 %v4537_v36, %v4539_v54  ;;  %v4545_v63 = vpop.eup %4544  ;;  %v6744_v14 = vpack.c.bf16 %v4543_v52, %v4541_v16  ;;  %v2711_v16 = vsub.f32 %v7998_v47, %v2622_v26  ;;  %v2616_v52 = vpop.xlane.xlu1 %2615  ;;  %4556 = vpow2.f32 %v2790_v45 }
 0x60f   : > { %2922 = vmatpush.bf16.xpose.msra.mxu2 %v6704_v10  ;;  %v4547_v36 = vpop.eup %4546  ;;  %4558 = vpow2.f32 %v2786_v55 }
 0x610   : > { %7990 = vst [vmem:[#allocation84_spill] sm:$0xff] %v6731_v28  ;;  %4194 = vmatmul.msk.bf16.gmra.mxu0 %vm835_vm2, %v7991_v11  ;;  %4210 = vmatmul.msk.bf16.gmra.mxu1 %vm835_vm2, %v7991_v11  ;;  %v2619_v11 = vpop.xlane.xlu2 %2618  ;;  %v6753_v48 = vpack.c.bf16 %v4547_v36, %v4545_v63  ;;  %v4549_v2 = vpop.eup %4548  ;;  %v2788_v63 = vmul.f32 1.442695, %v2711_v16  ;;  %4560 = vpow2.f32 %v2792_v41 }
 0x611   : > { %2289 = vmatmul.bf16.vlgmr.msrb.gmra.mxu3 %v6614_v56  ;;  %v6741_v56 = vpop.f32.mrf.mxu3  ;;  %7994 = vst [vmem:[#allocation13_spill] sm:$0xff] %v6744_v14  ;;  %v2708_v6 = vsub.f32 %v7999_v33, %v2619_v11  ;;  %v2709_v36 = vsub.f32 %v8002_v60, %v2619_v11  ;;  %v8003_v33 = vld [vmem:[#allocation91_spill] sm:$0xff] }
 0x612   : > { %2935 = vmatpush.bf16.xpose.msra.mxu3 %v6714_v37  ;;  %7993 = vst [vmem:[#allocation29_spill] sm:$0xff] %v6741_v56  ;;  %v6749_v54 = vpop.f32.mrf.mxu0  ;;  %v4551_v56 = vpop.eup %4550  ;;  %v2707_v45 = vsub.f32 %v8003_v33, %v2616_v52  ;;  %4562 = vpow2.f32 %v2788_v63 }
 0x613   : > { %7997 = vst [vmem:[#allocation89_spill] sm:$0xff] %v6753_v48  ;;  %v6760_v26 = vpack.c.bf16 %v4549_v2, %v4551_v56  ;;  %v2782_v47 = vmul.f32 1.442695, %v2708_v6  ;;  %v2784_v11 = vmul.f32 1.442695, %v2709_v36 }
 0x615   : > { %8001 = vst [vmem:[#allocation88_spill] sm:$0xff] %v6760_v26  ;;  %4564 = vpow2.f32 %v2782_v47 }
 0x617   : > { %2923 = vmatpush.bf16.xpose.msra.mxu2 %v6721_v51  ;;  %v4553_v51 = vpop.eup %4552 }
 0x618   : > { %v4555_v58 = vpop.eup %4554 }
 0x619   : > { %v2174_v17 = vpop.f32.mrf.mxu3  ;;  %v4557_v56 = vpop.eup %4556 }
 0x61a   : > { %2936 = vmatpush.bf16.xpose.msra.mxu3 %v6731_v28  ;;  %v2161_v28 = vpop.f32.mrf.mxu2  ;;  %v4559_v2 = vpop.eup %4558 }
 0x61b   : > { %v6762_v15 = vadd.f32 %v2174_v17, %v2161_v28  ;;  %v8005_v28 = vld [vmem:[#allocation73_spill] sm:$0xff] }
 0x61e   : > { %2275 = vmatmul.bf16.gmra.mxu2 %v6649_v59  ;;  %v6772_v59 = vpack.c.bf16 %v4553_v51, %v4555_v58  ;;  %v6779_v51 = vpack.c.bf16 %v4557_v56, %v4559_v2 }
 0x61f   : > { %2924 = vmatpush.bf16.xpose.msra.mxu2 %v6744_v14  ;;  %v2706_v14 = vsub.f32 %v8000_v5, %v2616_v52  ;;  %v6767_v5 = vpop.f32.mrf.mxu0  ;;  %v2780_v52 = vmul.f32 1.442695, %v2707_v45 }
 0x620   : > { %8004 = vst [vmem:[#allocation44_spill] sm:$0xff] %v6772_v59  ;;  %4195 = vmatmul.msk.bf16.gmra.mxu0 %vm835_vm2, %v8005_v28  ;;  %4211 = vmatmul.msk.bf16.gmra.mxu1 %vm835_vm2, %v8005_v28 }
 0x621   : > { %v2778_v16 = vmul.f32 1.442695, %v2706_v14  ;;  %2294 = vmatmul.bf16.gmra.mxu3 %v6652_v20  ;;  %v2176_v55 = vpop.f32.mrf.mxu3  ;;  %v4561_v20 = vpop.eup %4560  ;;  %8006 = vst [vmem:[#allocation22_spill] sm:$0xff] %v6779_v51 }
 0x622   : > { %2937 = vmatpush.bf16.xpose.msra.mxu3 %v6753_v48  ;;  %v6769_v48 = vpop.f32.mrf.mxu1  ;;  %v2163_v14 = vpop.f32.mrf.mxu2 }
 0x623   : > { %4566 = vpow2.f32 %v2778_v16  ;;  %v4563_v41 = vpop.eup %4562  ;;  %v8014_v14 = vld [vmem:[#allocation79_spill] sm:$0xff]  ;;  %v6804_v55 = vpop.xlane.xlu1 %2690 }
 0x624   : > { %4568 = vpow2.f32 %v2784_v11  ;;  %v6786_v63 = vpack.c.bf16 %v4561_v20, %v4563_v41  ;;  %v4565_v60 = vpop.eup %4564 }
 0x625   : > { %4570 = vpow2.f32 %v2780_v52 }
 0x626   : > { %8009 = vst [vmem:[#allocation6_spill] sm:$0xff] %v6786_v63 }
 0x627   : > { %2925 = vmatpush.bf16.xpose.msra.mxu2 %v6760_v26  ;;  %v6782_v6 = vpop.f32.mrf.mxu0 }
 0x628   : > { %8007 = vst [vmem:[#allocation21_spill] sm:$0xff] %v6782_v6 }
 0x629   : > { %v4567_v36 = vpop.eup %4566  ;;  %v2200_v33 = vpop.f32.mrf.mxu3 }
 0x62a   : > { %2938 = vmatpush.bf16.xpose.msra.mxu3 %v6772_v59  ;;  %v6784_v17 = vpop.f32.mrf.mxu1  ;;  %v4569_v58 = vpop.eup %4568  ;;  %v6789_v16 = vpack.c.bf16 %v4565_v60, %v4567_v36 }
 0x62b   : > { %8008 = vst [vmem:[#allocation5_spill] sm:$0xff] %v6784_v17  ;;  %v2187_v47 = vpop.f32.mrf.mxu2  ;;  %v4571_v45 = vpop.eup %4570 }
 0x62c   : > { %8010 = vst [vmem:[#allocation31_spill] sm:$0xff] %v6789_v16  ;;  %v6796_v11 = vadd.f32 %v2200_v33, %v2187_v47  ;;  %v6798_v52 = vpack.c.bf16 %v4569_v58, %v4571_v45  ;;  %v6809_v60 = vpop.xlane.xlu0 %2687  ;;  %v6811_v36 = vpop.xlane.xlu2 %2693  ;;  %v3405_v33 = vmax.f32 %v6782_v6, %v6784_v17 }
 0x62d   : > { %v6819_v45 = vpop.xlane.xlu1 %2681 }
 0x62e   : > { %8013 = vst [vmem:[#allocation46_spill] sm:$0xff] %v6798_v52 }
 0x62f   : > { %2926 = vmatpush.bf16.xpose.msra.mxu2 %v6779_v51  ;;  %v6792_v28 = vpop.f32.mrf.mxu0 }
 0x630   : > { %8011 = vst [vmem:[#allocation51_spill] sm:$0xff] %v6792_v28  ;;  %4196 = vmatmul.msk.bf16.gmra.mxu0 %vm835_vm2, %v8014_v14  ;;  %4212 = vmatmul.msk.bf16.gmra.mxu1 %vm835_vm2, %v8014_v14 }
 0x631   : > { %v2202_v41 = vpop.f32.mrf.mxu3 }
 0x632   : > { %2939 = vmatpush.bf16.xpose.msra.mxu3 %v6786_v63  ;;  %v6794_v56 = vpop.f32.mrf.mxu1  ;;  %v3390_v41 = vmax.f32 %v6693_v39, %v6695_v57 }
 0x633   : > { %8012 = vst [vmem:[#allocation56_spill] sm:$0xff] %v6794_v56  ;;  %v3408_v2 = vmax.f32 %v6792_v28, %v6794_v56  ;;  %v2189_v20 = vpop.f32.mrf.mxu2 }
 0x634   : > { %v2697_v56 = vpop.xlane.xlu0 %2696  ;;  %v2610_v28 = vpop.xlane.xlu2 %2609 }
 0x635   : > { %3409 = vmax.xlane.f32.xlu2 %v3408_v2  ;;  %v2702_v17 = vsub.f32 %v7948_v29, %v2610_v28 }
 0x637   : > { %2927 = vmatpush.bf16.xpose.msra.mxu2 %v6789_v16  ;;  %v6813_v58 = vpop.f32.mrf.mxu0  ;;  %v2770_v6 = vmul.f32 1.442695, %v2702_v17  ;;  %v2607_v16 = vpop.xlane.xlu1 %2606 }
 0x638   : > { %8015 = vst [vmem:[#allocation42_spill] sm:$0xff] %v6813_v58 }
 0x639   : > { %4572 = vpow2.f32 %v2770_v6 }
 0x63a   : > { %2940 = vmatpush.bf16.xpose.msra.mxu3 %v6798_v52  ;;  %v6815_v47 = vpop.f32.mrf.mxu1  ;;  %v8019_v52 = vld [vmem:[#allocation83_spill] sm:$0xff] }
 0x63b   : > { %8016 = vst [vmem:[#allocation19_spill] sm:$0xff] %v6815_v47 }
 0x63c   : > { %v2613_v63 = vpop.xlane.xlu0 %2612 }
 0x63d   : > { %3406 = vmax.xlane.f32.xlu2 %v3405_v33  ;;  %v2703_v33 = vsub.f32 %v7947_v42, %v2610_v28  ;;  %v2704_v57 = vsub.f32 %v7957_v61, %v2613_v63  ;;  %v2705_v39 = vsub.f32 %v7956_v27, %v2613_v63  ;;  %v8021_v42 = vld [vmem:[#allocation65_spill] sm:$0xff]  ;;  %v2700_v61 = vsub.f32 %v7950_v18, %v2607_v16 }
 0x63e   : > { %v2760_v28 = vsub.f32 %v8021_v42, %v2697_v56  ;;  %v8023_v63 = vld [vmem:[#allocation85_spill] sm:$0xff]  ;;  %v8024_v42 = vld [vmem:[#allocation67_spill] sm:$0xff] }
 0x63f   : > { %v6821_v14 = vpop.f32.mrf.mxu0  ;;  %v2772_v51 = vmul.f32 1.442695, %v2703_v33  ;;  %v2776_v33 = vmul.f32 1.442695, %v2705_v39  ;;  %v2701_v26 = vsub.f32 %v8023_v63, %v2607_v16 }
 0x640   : > { %8017 = vst [vmem:[#allocation45_spill] sm:$0xff] %v6821_v14  ;;  %4197 = vmatmul.msk.bf16.gmra.mxu0 %vm835_vm2, %v8019_v52  ;;  %4213 = vmatmul.msk.bf16.gmra.mxu1 %vm835_vm2, %v8019_v52  ;;  %v3411_v52 = vmax.f32 %v6813_v58, %v6815_v47  ;;  %v2886_v37 = vmul.f32 1.442695, %v2760_v28  ;;  %v2759_v58 = vsub.f32 %v8024_v42, %v6811_v36 }
 0x641   : > { %4574 = vpow2.f32 %v2772_v51  ;;  %v2768_v6 = vmul.f32 1.442695, %v2701_v26 }
 0x642   : > { %v6823_v2 = vpop.f32.mrf.mxu1 }
 0x643   : > { %8018 = vst [vmem:[#allocation32_spill] sm:$0xff] %v6823_v2  ;;  %v3414_v20 = vmax.f32 %v6821_v14, %v6823_v2  ;;  %v8020_v2 = vld [vmem:[#allocation72_spill] sm:$0xff] }
 0x644   : > { %v2758_v14 = vsub.f32 %v8020_v2, %v6811_v36  ;;  %v2774_v2 = vmul.f32 1.442695, %v2704_v57  ;;  %v2766_v57 = vmul.f32 1.442695, %v2700_v61  ;;  %v2604_v39 = vpop.xlane.xlu0 %2603  ;;  %v3402_v36 = vmax.f32 %v6767_v5, %v6769_v48 }
 0x645   : > { %3415 = vmax.xlane.f32.xlu0 %v3414_v20  ;;  %3391 = vmax.xlane.f32.xlu2 %v3390_v41  ;;  %v8022_v20 = vld [vmem:[#allocation66_spill] sm:$0xff]  ;;  %v2698_v18 = vsub.f32 %v7962_v24, %v2604_v39  ;;  %v2884_v24 = vmul.f32 1.442695, %v2759_v58 }
 0x646   : > { %v2761_v41 = vsub.f32 %v8022_v20, %v2697_v56  ;;  %v2882_v27 = vmul.f32 1.442695, %v2758_v14  ;;  %4576 = vpow2.f32 %v2774_v2  ;;  %v2699_v56 = vsub.f32 %v7961_v23, %v2604_v39  ;;  %v4573_v14 = vpop.eup %4572  ;;  %v8025_v20 = vld [vmem:[#allocation71_spill] sm:$0xff]  ;;  %v2685_v2 = vpop.xlane.xlu2 %2684  ;;  %v8027_v58 = vld [vmem:[#allocation74_spill] sm:$0xff]  ;;  %v8028_v39 = vld [vmem:[#allocation61_spill] sm:$0xff] }
 0x647   : > { %v6839_v59 = vpop.f32.mrf.mxu0  ;;  %4578 = vpow2.f32 %v2776_v33  ;;  %v2762_v28 = vmul.f32 1.442695, %v2698_v18  ;;  %v2754_v42 = vsub.f32 %v8027_v58, %v6809_v60  ;;  %v2752_v58 = vsub.f32 %v6538_v40, %v2685_v2 }
 0x648   : > { %v2888_v47 = vmul.f32 1.442695, %v2761_v41  ;;  %4580 = vrcp.f32 %v6762_v15  ;;  %v4575_v15 = vpop.eup %4574  ;;  %v2764_v26 = vmul.f32 1.442695, %v2699_v56  ;;  %v2756_v41 = vsub.f32 %v8025_v20, %v6804_v55 }
 0x649   : > { %4582 = vpow2.f32 %v2882_v27 }
 0x64a   : > { %v6841_v29 = vpop.f32.mrf.mxu1  ;;  %4584 = vpow2.f32 %v2886_v37  ;;  %v8026_v37 = vld [vmem:[#allocation75_spill] sm:$0xff]  ;;  %v2878_v56 = vmul.f32 1.442695, %v2756_v41 }
 0x64b   : > { %v3417_v17 = vmax.f32 %v6839_v59, %v6841_v29  ;;  %4586 = vpow2.f32 %v2888_v47  ;;  %v2757_v27 = vsub.f32 %v8026_v37, %v6804_v55 }
 0x64c   : > { %4588 = vpow2.f32 %v2766_v57 }
 0x64d   : > { %3412 = vmax.xlane.f32.xlu0 %v3411_v52  ;;  %3418 = vmax.xlane.f32.xlu1 %v3417_v17  ;;  %v3396_v52 = vmax.f32 %v6726_v34, %v6728_v21  ;;  %v4577_v17 = vpop.eup %4576  ;;  %4590 = vpow2.f32 %v2768_v6  ;;  %v2755_v6 = vsub.f32 %v8028_v39, %v6809_v60  ;;  %v2874_v60 = vmul.f32 1.442695, %v2754_v42  ;;  %v8030_v42 = vld [vmem:[#allocation81_spill] sm:$0xff] }
 0x64e   : > { %v4579_v23 = vpop.eup %4578  ;;  %v6866_v33 = vpack.c.bf16 %v4577_v17, %v4573_v14  ;;  %4592 = vpow2.f32 %v2762_v28  ;;  %v2880_v28 = vmul.f32 1.442695, %v2757_v27  ;;  %v2753_v27 = vsub.f32 %v6540_v22, %v2685_v2 }
 0x64f   : > { %v6856_v51 = vpop.f32.mrf.mxu0  ;;  %v4581_v61 = vpop.eup %4580  ;;  %v6870_v47 = vpack.c.bf16 %v4579_v23, %v4575_v15  ;;  %4594 = vpow2.f32 %v2764_v26  ;;  %v3399_v15 = vmax.f32 %v6749_v54, %v6751_v1  ;;  %v2876_v20 = vmul.f32 1.442695, %v2755_v6 }
 0x650   : > { %v4583_v63 = vpop.eup %4582  ;;  %2928 = vmatpush.bf16.xpose.msra.mxu2 %v6866_v33  ;;  %4596 = vpow2.f32 %v2884_v24  ;;  %v6886_v24 = vperm.slane %v4581_v61, 0  ;;  %v2750_v6 = vsub.f32 %v8030_v42, %v6819_v45  ;;  %v2870_v2 = vmul.f32 1.442695, %v2752_v58 }
 0x651   : > { %v4585_v57 = vpop.eup %4584  ;;  %2941 = vmatpush.bf16.xpose.msra.mxu3 %v6870_v47  ;;  %v2233_v55 = vpop.f32.mrf.mxu2  ;;  %4598 = vpow2.f32 %v2878_v56  ;;  %v8035_v42 = vmov 1065369472  }
 0x652   : > { %v6858_v16 = vpop.f32.mrf.mxu1  ;;  %v4587_v18 = vpop.eup %4586  ;;  %8029 = vst [vmem:[#allocation30_spill] sm:$0xff] %v6886_v24  ;;  %4600 = vpow2.f32 %v2880_v28  ;;  %v6894_v61 = vpack.c.bf16 %v4585_v57, %v4583_v63 }
 0x653   : > { %4602 = vpow2.f32 %v2874_v60 }
 0x654   : > { %v2252_v41 = vpop.f32.mrf.mxu3  ;;  %4604 = vpow2.f32 %v2876_v20 }
 0x655   : > { %3397 = vmax.xlane.f32.xlu0 %v3396_v52  ;;  %3403 = vmax.xlane.f32.xlu1 %v3402_v36  ;;  %v4589_v52 = vpop.eup %4588  ;;  %v3393_v36 = vmax.f32 %v6710_v43, %v6712_v50  ;;  %v2253_v39 = vadd.f32 %v2252_v41, %v2233_v55  ;;  %v8032_v55 = vld [vmem:[#allocation78_spill] sm:$0xff]  ;;  %4606 = vpow2.f32 %v2870_v2 }
 0x656   : > { %v4591_v17 = vpop.eup %4590  ;;  %v2751_v22 = vsub.f32 %v8032_v55, %v6819_v45 }
 0x657   : > { %v6878_v14 = vpop.f32.mrf.mxu0  ;;  %v4593_v23 = vpop.eup %4592  ;;  %v6899_v56 = vmul.f32 %v6886_v24, %v2253_v39 }
 0x658   : > { %v4595_v37 = vpop.eup %4594  ;;  %v6889_v50 = vpack.c.bf16 %v4589_v52, %v4593_v23  ;;  %v3384_v52 = vmax.f32 %v6666_v9, %v6668_v49  ;;  %v2868_v23 = vmul.f32 1.442695, %v2751_v22  ;;  %v2670_v22 = vpop.xlane.xlu1 %2669 }
 0x659   : > { %v4597_v43 = vpop.eup %4596  ;;  %v6892_v21 = vpack.c.bf16 %v4591_v17, %v4595_v37  ;;  %8031 = vst [vmem:[#allocation64_spill] sm:$0xff] %v6899_v56  ;;  %v6909_v63 = vpop.f32.mrf.mxu2  ;;  %v2866_v17 = vmul.f32 1.442695, %v2750_v6 }
 0x65a   : > { %v6884_v26 = vpop.f32.mrf.mxu1  ;;  %2929 = vmatpush.bf16.xpose.msra.mxu2 %v6889_v50  ;;  %v6902_v40 = vpack.c.bf16 %v4587_v18, %v4597_v43  ;;  %8033 = vst [vmem:[#allocation54_spill] sm:$0xff] %v6909_v63  ;;  %v3387_v43 = vmax.f32 %v6683_v31, %v6685_v8  ;;  %v2872_v18 = vmul.f32 1.442695, %v2753_v27  ;;  %v4599_v28 = vpop.eup %4598 }
 0x65b   : > { %2942 = vmatpush.bf16.xpose.msra.mxu3 %v6892_v21  ;;  %v4601_v60 = vpop.eup %4600 }
 0x65c   : > { %v6919_v20 = vpop.f32.mrf.mxu3  ;;  %v4603_v41 = vpop.eup %4602  ;;  %4608 = vpow2.f32 %v2872_v18 }
 0x65d   : > { %3394 = vmax.xlane.f32.xlu0 %v3393_v36  ;;  %3400 = vmax.xlane.f32.xlu1 %v3399_v15  ;;  %v2676_v36 = vpop.xlane.xlu2 %2675  ;;  %v2679_v15 = vpop.xlane.xlu0 %2678  ;;  %8034 = vst [vmem:[#allocation47_spill] sm:$0xff] %v6919_v20  ;;  %v6923_v27 = vpack.c.bf16 %v4599_v28, %v4603_v41  ;;  %4610 = vpow2.f32 %v2866_v17 }
 0x65e   : > { %v2748_v37 = vsub.f32 %v6517_v44, %v2679_v15  ;;  %v4605_v58 = vpop.eup %4604  ;;  %v2749_v39 = vsub.f32 %v6519_v7, %v2679_v15  ;;  %v2746_v6 = vsub.f32 %v6502_v4, %v2676_v36  ;;  %4612 = vpow2.f32 %v2868_v23 }
 0x65f   : > { %v6911_v57 = vpop.f32.mrf.mxu0  ;;  %v6927_v55 = vpack.c.bf16 %v4601_v60, %v4605_v58  ;;  %v2747_v2 = vsub.f32 %v6504_v38, %v2676_v36  ;;  %v4607_v4 = vpop.eup %4606 }
 0x660   : > { %v2858_v28 = vmul.f32 1.442695, %v2746_v6 }
 0x661   : > { %2930 = vmatmul.bf16.vlgmr.msra.gmra.mxu2 %v8035_v42  ;;  %v2860_v60 = vmul.f32 1.442695, %v2747_v2  ;;  %v2743_v2 = vsub.f32 %v6467_v13, %v2670_v22 }
 0x662   : > { %2948 = vmatpush.bf16.xpose.msrb.mxu2 %v6894_v61  ;;  %v6917_v45 = vpop.f32.mrf.mxu1  ;;  %2943 = vmatmul.bf16.vlgmr.msra.gmra.mxu3 %v8035_v42  ;;  %v4609_v17 = vpop.eup %4608 }
 0x663   : > { %2961 = vmatpush.bf16.xpose.msrb.mxu3 %v6902_v40  ;;  %v4611_v41 = vpop.eup %4610 }
 0x664   : > { %v2238_v18 = vpop.f32.mrf.mxu2  ;;  %v2257_v23 = vpop.f32.mrf.mxu3  ;;  %v6939_v56 = vpack.c.bf16 %v4607_v4, %v4611_v41 }
 0x665   : > { %3385 = vmax.xlane.f32.xlu0 %v3384_v52  ;;  %3388 = vmax.xlane.f32.xlu1 %v3387_v43  ;;  %v2673_v44 = vpop.xlane.xlu2 %2672  ;;  %v2862_v52 = vmul.f32 1.442695, %v2748_v37  ;;  %v2864_v43 = vmul.f32 1.442695, %v2749_v39  ;;  %v2258_v36 = vadd.f32 %v2257_v23, %v2238_v18  ;;  %v4613_v58 = vpop.eup %4612  ;;  %v2742_v39 = vsub.f32 %v6464_v12, %v2670_v22 }
 0x666   : > { %v2744_v38 = vsub.f32 %v6485_v62, %v2673_v44  ;;  %v2745_v37 = vsub.f32 %v6487_v35, %v2673_v44  ;;  %v6945_v6 = vpack.c.bf16 %v4609_v17, %v4613_v58  ;;  %v2664_v62 = vpop.xlane.xlu0 %2663  ;;  %v2667_v17 = vpop.xlane.xlu1 %2666 }
 0x667   : > { %v6933_v7 = vpop.f32.mrf.mxu0  ;;  %4614 = vpow2.f32 %v2862_v52  ;;  %v6943_v20 = vmul.f32 %v6886_v24, %v2258_v36  ;;  %v2850_v18 = vmul.f32 1.442695, %v2742_v39  ;;  %v2738_v13 = vsub.f32 %v6431_v25, %v2664_v62  ;;  %v8040_v24 = vld [vmem:[#allocation34_spill] sm:$0xff] }
 0x668   : > { %4616 = vpow2.f32 %v2864_v43  ;;  %v2854_v52 = vmul.f32 1.442695, %v2744_v38  ;;  %v2856_v44 = vmul.f32 1.442695, %v2745_v37  ;;  %v8037_v38 = vld [vmem:[#allocation43_spill] sm:$0xff]  ;;  %v8038_v37 = vld [vmem:[#allocation50_spill] sm:$0xff] }
 0x669   : > { %4618 = vpow2.f32 %v2858_v28  ;;  %8036 = vst [vmem:[#allocation69_spill] sm:$0xff] %v6943_v20  ;;  %v2852_v28 = vmul.f32 1.442695, %v2743_v2  ;;  %v2740_v36 = vsub.f32 %v8037_v38, %v2667_v17  ;;  %v2741_v39 = vsub.f32 %v8038_v37, %v2667_v17 }
 0x66a   : > { %2949 = vmatpush.bf16.xpose.msrb.mxu2 %v6923_v27  ;;  %v6935_v15 = vpop.f32.mrf.mxu1  ;;  %4620 = vpow2.f32 %v2860_v60  ;;  %v2739_v60 = vsub.f32 %v6434_v30, %v2664_v62 }
 0x66b   : > { %2962 = vmatpush.bf16.xpose.msrb.mxu3 %v6927_v55  ;;  %4622 = vpow2.f32 %v2854_v52  ;;  %v2842_v52 = vmul.f32 1.442695, %v2738_v13 }
 0x66c   : > { %4624 = vpow2.f32 %v2856_v44  ;;  %v2844_v44 = vmul.f32 1.442695, %v2739_v60 }
 0x66d   : > { %v4615_v12 = vpop.eup %4614  ;;  %4626 = vpow2.f32 %v2850_v18  ;;  %v2658_v2 = vpop.xlane.xlu2 %2657  ;;  %v2846_v18 = vmul.f32 1.442695, %v2740_v36 }
 0x66e   : > { %v4617_v4 = vpop.eup %4616  ;;  %4628 = vpow2.f32 %v2852_v28  ;;  %v2661_v30 = vpop.xlane.xlu0 %2660  ;;  %v2734_v60 = vsub.f32 %v6389_v3, %v2658_v2  ;;  %v2735_v36 = vsub.f32 %v6392_v53, %v2658_v2 }
 0x66f   : > { %v6950_v35 = vpop.f32.mrf.mxu0  ;;  %v4619_v23 = vpop.eup %4618  ;;  %4630 = vpow2.f32 %v2842_v52  ;;  %v2736_v28 = vsub.f32 %v6417_v19, %v2661_v30  ;;  %v2737_v13 = vsub.f32 %v6420_v46, %v2661_v30 }
 0x670   : > { %v4621_v22 = vpop.eup %4620  ;;  %v6956_v41 = vpack.c.bf16 %v4615_v12, %v4619_v23  ;;  %4632 = vpow2.f32 %v2844_v44  ;;  %v2652_v3 = vpop.xlane.xlu1 %2651 }
 0x671   : > { %v6959_v58 = vpack.c.bf16 %v4617_v4, %v4621_v22  ;;  %v4623_v12 = vpop.eup %4622  ;;  %v2848_v4 = vmul.f32 1.442695, %v2741_v39  ;;  %4634 = vpow2.f32 %v2846_v18  ;;  %v2838_v39 = vmul.f32 1.442695, %v2736_v28 }
 0x672   : > { %2950 = vmatpush.bf16.xpose.msrb.mxu2 %v6939_v56  ;;  %v6952_v43 = vpop.f32.mrf.mxu1  ;;  %v4625_v23 = vpop.eup %4624  ;;  %v2840_v44 = vmul.f32 1.442695, %v2737_v13 }
 0x673   : > { %2963 = vmatpush.bf16.xpose.msrb.mxu3 %v6945_v6  ;;  %v4627_v22 = vpop.eup %4626  ;;  %4636 = vpow2.f32 %v2848_v4 }
 0x674   : > { %v4629_v17 = vpop.eup %4628  ;;  %v6970_v38 = vpack.c.bf16 %v4623_v12, %v4627_v22  ;;  %v2834_v12 = vmul.f32 1.442695, %v2734_v60  ;;  %4638 = vpow2.f32 %v2838_v39  ;;  %v2731_v60 = vsub.f32 %v8040_v24, %v2652_v3 }
 0x675   : > { %v6973_v37 = vpack.c.bf16 %v4625_v23, %v4629_v17  ;;  %v2655_v52 = vpop.xlane.xlu2 %2654  ;;  %v4631_v30 = vpop.eup %4630  ;;  %v2836_v23 = vmul.f32 1.442695, %v2735_v36  ;;  %4640 = vpow2.f32 %v2840_v44  ;;  %v8039_v17 = vld [vmem:[#allocation33_spill] sm:$0xff] }
 0x676   : > { %v4633_v18 = vpop.eup %4632  ;;  %v2732_v4 = vsub.f32 %v6358_v32, %v2655_v52  ;;  %v2733_v2 = vsub.f32 %v6360_v0, %v2655_v52  ;;  %v2730_v20 = vsub.f32 %v8039_v17, %v2652_v3  ;;  %4642 = vpow2.f32 %v2834_v12  ;;  %v6994_v0 = vpop.f32.mrf.mxu2 }
 0x677   : > { %v6964_v25 = vpop.f32.mrf.mxu0  ;;  %v4635_v22 = vpop.eup %4634  ;;  %4644 = vpow2.f32 %v2836_v23  ;;  %8041 = vst [vmem:[#allocation80_spill] sm:$0xff] %v6994_v0  ;;  %v8054_v0 = vld [vmem:[#allocation89_spill] sm:$0xff] }
 0x678   : > { %v6984_v28 = vpack.c.bf16 %v4635_v22, %v4631_v30  ;;  %v2830_v36 = vmul.f32 1.442695, %v2732_v4  ;;  %v2832_v39 = vmul.f32 1.442695, %v2733_v2  ;;  %4646 = vrcp.f32 %v6796_v11  ;;  %v6999_v3 = vpop.f32.mrf.mxu3 }
 0x679   : > { %v4637_v53 = vpop.eup %4636  ;;  %v2826_v30 = vmul.f32 1.442695, %v2730_v20  ;;  %8042 = vst [vmem:[#allocation60_spill] sm:$0xff] %v6999_v3 }
 0x67a   : > { %2951 = vmatpush.bf16.xpose.msrb.mxu2 %v6956_v41  ;;  %v6966_v62 = vpop.f32.mrf.mxu1  ;;  %v6987_v13 = vpack.c.bf16 %v4637_v53, %v4633_v18  ;;  %v4639_v44 = vpop.eup %4638  ;;  %v2828_v18 = vmul.f32 1.442695, %v2731_v60  ;;  %4648 = vpow2.f32 %v2830_v36 }
 0x67b   : > { %2964 = vmatpush.bf16.xpose.msrb.mxu3 %v6959_v58  ;;  %v4641_v12 = vpop.eup %4640  ;;  %4650 = vpow2.f32 %v2832_v39 }
 0x67c   : > { %v4643_v24 = vpop.eup %4642  ;;  %4652 = vpow2.f32 %v2826_v30 }
 0x67d   : > { %v4645_v23 = vpop.eup %4644  ;;  %v7001_v22 = vpack.c.bf16 %v4639_v44, %v4643_v24  ;;  %4654 = vpow2.f32 %v2828_v18 }
 0x67e   : > { %v7003_v4 = vpack.c.bf16 %v4641_v12, %v4645_v23  ;;  %v4647_v53 = vpop.eup %4646 }
 0x67f   : > { %v6978_v19 = vpop.f32.mrf.mxu0  ;;  %v7011_v36 = vperm.slane %v4647_v53, 0  ;;  %v8045_v53 = vld [vmem:[#allocation48_spill] sm:$0xff] }
 0x680   : > { %v4649_v17 = vpop.eup %4648 }
 0x681   : > { %v4651_v60 = vpop.eup %4650  ;;  %8043 = vst [vmem:[#allocation62_spill] sm:$0xff] %v7011_v36 }
 0x682   : > { %2952 = vmatpush.bf16.xpose.msrb.mxu2 %v6970_v38  ;;  %v6980_v46 = vpop.f32.mrf.mxu1  ;;  %v4653_v39 = vpop.eup %4652 }
 0x683   : > { %2965 = vmatpush.bf16.xpose.msrb.mxu3 %v6973_v37  ;;  %v4655_v30 = vpop.eup %4654  ;;  %v7013_v24 = vpack.c.bf16 %v4649_v17, %v4653_v39 }
 0x684   : > { %v7015_v18 = vpack.c.bf16 %v4651_v60, %v4655_v30  ;;  %v8048_v60 = vld [vmem:[#allocation87_spill] sm:$0xff] }
 0x687   : > { %v6992_v32 = vpop.f32.mrf.mxu0 }
 0x68a   : > { %2953 = vmatpush.bf16.xpose.msrb.mxu2 %v6984_v28  ;;  %v6996_v52 = vpop.f32.mrf.mxu1 }
 0x68b   : > { %2966 = vmatpush.bf16.xpose.msrb.mxu3 %v6987_v13 }
 0x68f   : > { %v7007_v11 = vpop.f32.mrf.mxu0 }
 0x691   : > { %v2271_v2 = vpop.f32.mrf.mxu2 }
 0x692   : > { %2954 = vmatpush.bf16.xpose.msrb.mxu2 %v7001_v22  ;;  %v7009_v20 = vpop.f32.mrf.mxu1 }
 0x693   : > { %2967 = vmatpush.bf16.xpose.msrb.mxu3 %v7003_v4 }
 0x694   : > { %v2290_v44 = vpop.f32.mrf.mxu3 }
 0x695   : > { %v2291_v12 = vadd.f32 %v2290_v44, %v2271_v2  ;;  %v8050_v44 = vld [vmem:[#allocation84_spill] sm:$0xff] }
 0x697   : > { %v7018_v23 = vmul.f32 %v7011_v36, %v2291_v12  ;;  %v7023_v63 = vpop.f32.mrf.mxu0 }
 0x699   : > { %8044 = vst [vmem:[#allocation17_spill] sm:$0xff] %v7018_v23  ;;  %v7028_v2 = vpop.f32.mrf.mxu2 }
 0x69a   : > { %2955 = vmatpush.bf16.xpose.msrb.mxu2 %v7013_v24  ;;  %v7026_v3 = vpop.f32.mrf.mxu1  ;;  %8046 = vst [vmem:[#allocation90_spill] sm:$0xff] %v7028_v2  ;;  %v8053_v2 = vld [vmem:[#allocation13_spill] sm:$0xff] }
 0x69b   : > { %2968 = vmatpush.bf16.xpose.msrb.mxu3 %v7015_v18 }
 0x69c   : > { %v7030_v17 = vpop.f32.mrf.mxu3 }
 0x69d   : > { %8047 = vst [vmem:[#allocation68_spill] sm:$0xff] %v7030_v17 }
 0x69f   : > { %v7035_v39 = vpop.f32.mrf.mxu0 }
 0x6a0   : > { %8049 = vst [vmem:[#allocation91_spill] sm:$0xff] %v7035_v39 }
 0x6a1   : > { %2956 = vmatmul.bf16.vlgmr.msrb.gmra.mxu2 %v8035_v42  ;;  %v2276_v30 = vpop.f32.mrf.mxu2 }
 0x6a2   : > { %2994 = vmatpush.bf16.xpose.msra.mxu2 %v6704_v10  ;;  %2969 = vmatmul.bf16.vlgmr.msrb.gmra.mxu3 %v8035_v42  ;;  %v7038_v10 = vpop.f32.mrf.mxu1 }
 0x6a3   : > { %3013 = vmatpush.bf16.xpose.msra.mxu3 %v8045_v53  ;;  %8051 = vst [vmem:[#allocation73_spill] sm:$0xff] %v7038_v10 }
 0x6a4   : > { %v2295_v12 = vpop.f32.mrf.mxu3 }
 0x6a5   : > { %v2296_v53 = vadd.f32 %v2295_v12, %v2276_v30  ;;  %v8059_v12 = vld [vmem:[#allocation22_spill] sm:$0xff] }
 0x6a7   : > { %v7041_v23 = vmul.f32 %v7011_v36, %v2296_v53  ;;  %v7044_v17 = vpop.f32.mrf.mxu0  ;;  %v8061_v53 = vld [vmem:[#allocation6_spill] sm:$0xff] }
 0x6a8   : > { %v8065_v36 = vld [vmem:[#allocation46_spill] sm:$0xff] }
 0x6a9   : > { %8052 = vst [vmem:[#allocation79_spill] sm:$0xff] %v7041_v23  ;;  %v8063_v23 = vld [vmem:[#allocation31_spill] sm:$0xff] }
 0x6aa   : > { %2995 = vmatpush.bf16.xpose.msra.mxu2 %v8048_v60  ;;  %v7047_v42 = vpop.f32.mrf.mxu1  ;;  %v8055_v60 = vld [vmem:[#allocation88_spill] sm:$0xff] }
 0x6ab   : > { %3014 = vmatpush.bf16.xpose.msra.mxu3 %v8050_v44  ;;  %v8057_v44 = vld [vmem:[#allocation44_spill] sm:$0xff] }
 0x6af   : > { %v7050_v8 = vpop.f32.mrf.mxu0 }
 0x6b0   : > { %8056 = vst [vmem:[#allocation83_spill] sm:$0xff] %v7050_v8 }
 0x6b2   : > { %2996 = vmatpush.bf16.xpose.msra.mxu2 %v8053_v2  ;;  %v7053_v31 = vpop.f32.mrf.mxu1 }
 0x6b3   : > { %3015 = vmatpush.bf16.xpose.msra.mxu3 %v8054_v0  ;;  %8058 = vst [vmem:[#allocation72_spill] sm:$0xff] %v7053_v31  ;;  %v3456_v30 = vmax.f32 %v7050_v8, %v7053_v31 }
 0x6b5   : > { %3457 = vmax.xlane.f32.xlu2 %v3456_v30  ;;  %v3450_v30 = vmax.f32 %v7035_v39, %v7038_v10  ;;  %v8071_v10 = vld [vmem:[#allocation58_spill] sm:$0xff]  ;;  %v8072_v39 = vld [vmem:[#allocation9_spill] sm:$0xff] }
 0x6b7   : > { %v7058_v2 = vpop.f32.mrf.mxu0 }
 0x6b8   : > { %8060 = vst [vmem:[#allocation65_spill] sm:$0xff] %v7058_v2 }
 0x6ba   : > { %2997 = vmatpush.bf16.xpose.msra.mxu2 %v8055_v60  ;;  %v7061_v0 = vpop.f32.mrf.mxu1 }
 0x6bb   : > { %3016 = vmatpush.bf16.xpose.msra.mxu3 %v8057_v44  ;;  %8062 = vst [vmem:[#allocation66_spill] sm:$0xff] %v7061_v0  ;;  %v3459_v60 = vmax.f32 %v7058_v2, %v7061_v0  ;;  %v3378_v2 = vmax.f32 %v8072_v39, %v8071_v10 }
 0x6bd   : > { %3460 = vmax.xlane.f32.xlu0 %v3459_v60  ;;  %v8069_v60 = vld [vmem:[#allocation57_spill] sm:$0xff] }
 0x6bf   : > { %v7066_v44 = vpop.f32.mrf.mxu0 }
 0x6c0   : > { %8064 = vst [vmem:[#allocation85_spill] sm:$0xff] %v7066_v44 }
 0x6c2   : > { %2998 = vmatpush.bf16.xpose.msra.mxu2 %v8059_v12  ;;  %v7069_v31 = vpop.f32.mrf.mxu1 }
 0x6c3   : > { %3017 = vmatpush.bf16.xpose.msra.mxu3 %v8061_v53  ;;  %8066 = vst [vmem:[#allocation67_spill] sm:$0xff] %v7069_v31  ;;  %v3462_v12 = vmax.f32 %v7066_v44, %v7069_v31 }
 0x6c5   : > { %3451 = vmax.xlane.f32.xlu0 %v3450_v30  ;;  %3463 = vmax.xlane.f32.xlu1 %v3462_v12  ;;  %v8073_v30 = vld [vmem:[#allocation26_spill] sm:$0xff]  ;;  %v8074_v12 = vld [vmem:[#allocation27_spill] sm:$0xff] }
 0x6c7   : > { %v7076_v53 = vpop.f32.mrf.mxu0 }
 0x6c8   : > { %8067 = vst [vmem:[#allocation71_spill] sm:$0xff] %v7076_v53 }
 0x6ca   : > { %2999 = vmatpush.bf16.xpose.msra.mxu2 %v8063_v23  ;;  %v7079_v23 = vpop.f32.mrf.mxu1 }
 0x6cb   : > { %3018 = vmatpush.bf16.xpose.msra.mxu3 %v8065_v36  ;;  %8068 = vst [vmem:[#allocation75_spill] sm:$0xff] %v7079_v23  ;;  %v8070_v36 = vld [vmem:[#allocation70_spill] sm:$0xff]  ;;  %v3465_v0 = vmax.f32 %v7076_v53, %v7079_v23  ;;  %v8076_v23 = vld [vmem:[#allocation76_spill] sm:$0xff]  ;;  %v8077_v53 = vld [vmem:[#allocation53_spill] sm:$0xff] }
 0x6cc   : > { %v3375_v8 = vmax.f32 %v8070_v36, %v8069_v60 }
 0x6cd   : > { %3466 = vmax.xlane.f32.xlu2 %v3465_v0  ;;  %3379 = vmax.xlane.f32.xlu1 %v3378_v2  ;;  %v3381_v0 = vmax.f32 %v8077_v53, %v8076_v23 }
 0x6ce   : > { %3376 = vmax.xlane.f32.xlu0 %v3375_v8  ;;  %v3438_v8 = vmax.f32 %v6978_v19, %v6980_v46 }
 0x6d2   : > { %3000 = vmatpush.bf16.xpose.msra.mxu2 %v6866_v33  ;;  %v764_v33 = vpack.c.bf16 %v8074_v12, %v8073_v30  ;;  %v8079_v30 = vld [vmem:[#allocation63_spill] sm:$0xff] }
 0x6d3   : > { %3019 = vmatpush.bf16.xpose.msra.mxu3 %v6870_v47  ;;  %v8075_v47 = vld [vmem:[#allocation25_spill] sm:$0xff] }
 0x6d4   : > { %v2978_v31 = vunpack.c.l.b16 %v8075_v47  ;;  %v2980_v44 = vunpack.c.l.b16 %v764_v33  ;;  %v2979_v60 = vunpack.c.h.b16 %v8075_v47  ;;  %v2981_v36 = vunpack.c.h.b16 %v764_v33  ;;  %v8082_v33 = vld [vmem:[#allocation28_spill] sm:$0xff] }
 0x6d5   : > { %3382 = vmax.xlane.f32.xlu2 %v3381_v0  ;;  %v2982_v47 = vunpack.c.l.b16 %v8082_v33  ;;  %v2983_v0 = vunpack.c.h.b16 %v8082_v33 }
 0x6d6   : > { %3439 = vmax.xlane.f32.xlu0 %v3438_v8  ;;  %v7101_v2 = vpack.c.b16 %v2980_v44, %v2978_v31  ;;  %v3444_v31 = vmax.f32 %v7007_v11, %v7009_v20  ;;  %v8080_v44 = vld [vmem:[#allocation7_spill] sm:$0xff] }
 0x6da   : > { %3001 = vmatpush.bf16.xpose.msra.mxu2 %v6889_v50  ;;  %v3453_v50 = vmax.f32 %v7044_v17, %v7047_v42 }
 0x6db   : > { %3020 = vmatpush.bf16.xpose.msra.mxu3 %v6892_v21  ;;  %v7103_v21 = vpack.c.b16 %v2981_v36, %v2979_v60  ;;  %v8081_v60 = vld [vmem:[#allocation8_spill] sm:$0xff] }
 0x6dc   : > { %3454 = vmax.xlane.f32.xlu1 %v3453_v50  ;;  %v766_v36 = vpack.c.bf16 %v8081_v60, %v8080_v44  ;;  %v3447_v50 = vmax.f32 %v7023_v63, %v7026_v3  ;;  %v3416_v44 = vpop.xlane.xlu0 %3415  ;;  %v3429_v60 = vmax.f32 %v6933_v7, %v6935_v15 }
 0x6de   : > { %v2985_v8 = vunpack.c.h.b16 %v766_v36 }
 0x6e1   : > { %3002 = vmatmul.bf16.vlgmr.msra.gmra.mxu2 %v7101_v2 }
 0x6e2   : > { %3032 = vmatpush.bf16.xpose.msrb.mxu2 %v6894_v61  ;;  %3021 = vmatmul.bf16.vlgmr.msra.gmra.mxu3 %v7103_v21  ;;  %v8078_v61 = vld [vmem:[#allocation59_spill] sm:$0xff] }
 0x6e3   : > { %3051 = vmatpush.bf16.xpose.msrb.mxu3 %v6902_v40  ;;  %v3372_v12 = vmax.f32 %v8079_v30, %v8078_v61  ;;  %v3435_v40 = vmax.f32 %v6964_v25, %v6966_v62 }
 0x6e4   : > { %3445 = vmax.xlane.f32.xlu1 %v3444_v31  ;;  %v3432_v31 = vmax.f32 %v6950_v35, %v6952_v43 }
 0x6e5   : > { %3373 = vmax.xlane.f32.xlu2 %v3372_v12  ;;  %3436 = vmax.xlane.f32.xlu0 %v3435_v40  ;;  %v3441_v12 = vmax.f32 %v6992_v32, %v6996_v52 }
 0x6ea   : > { %3033 = vmatpush.bf16.xpose.msrb.mxu2 %v6923_v27  ;;  %v2984_v27 = vunpack.c.l.b16 %v766_v36  ;;  %v3419_v36 = vpop.xlane.xlu1 %3418 }
 0x6eb   : > { %3052 = vmatpush.bf16.xpose.msrb.mxu3 %v6927_v55  ;;  %v3420_v55 = vmax.f32 %v6856_v51, %v6858_v16  ;;  %v3499_v33 = vsub.f32 %v6841_v29, %v3419_v36  ;;  %v8087_v29 = vld [vmem:[#allocation51_spill] sm:$0xff] }
 0x6ec   : > { %3442 = vmax.xlane.f32.xlu1 %v3441_v12  ;;  %v7127_v40 = vpack.c.b16 %v2984_v27, %v2982_v47  ;;  %v8083_v47 = vld [vmem:[#allocation45_spill] sm:$0xff] }
 0x6ed   : > { %3448 = vmax.xlane.f32.xlu2 %v3447_v50  ;;  %3421 = vmax.xlane.f32.xlu0 %v3420_v55  ;;  %v3496_v27 = vsub.f32 %v8083_v47, %v3416_v44  ;;  %v3410_v55 = vpop.xlane.xlu2 %3409  ;;  %v3594_v50 = vmul.f32 1.442695, %v3499_v33 }
 0x6ef   : > { %v3588_v12 = vmul.f32 1.442695, %v3496_v27 }
 0x6f1   : > { %3007 = vmatmul.bf16.gmra.mxu2 %v7127_v40 }
 0x6f2   : > { %3034 = vmatpush.bf16.xpose.msrb.mxu2 %v6939_v56  ;;  %v7129_v56 = vpack.c.b16 %v2985_v8, %v2983_v0  ;;  %v3413_v8 = vpop.xlane.xlu0 %3412 }
 0x6f3   : > { %3053 = vmatpush.bf16.xpose.msrb.mxu3 %v6945_v6  ;;  %v3426_v6 = vmax.f32 %v6911_v57, %v6917_v45 }
 0x6f4   : > { %3026 = vmatmul.bf16.gmra.mxu3 %v7129_v56 }
 0x6f5   : > { %3433 = vmax.xlane.f32.xlu2 %v3432_v31  ;;  %3427 = vmax.xlane.f32.xlu1 %v3426_v6  ;;  %v8085_v6 = vld [vmem:[#allocation42_spill] sm:$0xff] }
 0x6fa   : > { %3035 = vmatpush.bf16.xpose.msrb.mxu2 %v6956_v41  ;;  %v3423_v41 = vmax.f32 %v6878_v14, %v6884_v26 }
 0x6fb   : > { %3054 = vmatpush.bf16.xpose.msrb.mxu3 %v6959_v58  ;;  %v3498_v58 = vsub.f32 %v6839_v59, %v3419_v36  ;;  %v8086_v59 = vld [vmem:[#allocation19_spill] sm:$0xff]  ;;  %v3492_v36 = vsub.f32 %v8087_v29, %v3410_v55  ;;  %v8092_v29 = vld [vmem:[#allocation5_spill] sm:$0xff] }
 0x6fd   : > { %3430 = vmax.xlane.f32.xlu2 %v3429_v60  ;;  %3424 = vmax.xlane.f32.xlu1 %v3423_v41  ;;  %v3494_v60 = vsub.f32 %v8085_v6, %v3413_v8  ;;  %v3495_v41 = vsub.f32 %v8086_v59, %v3413_v8  ;;  %v3580_v27 = vmul.f32 1.442695, %v3492_v36  ;;  %v3407_v8 = vpop.xlane.xlu2 %3406  ;;  %v7165_v59 = vpop.f32.mrf.mxu2 }
 0x6fe   : > { %8090 = vst [vmem:[#allocation74_spill] sm:$0xff] %v7165_v59 }
 0x6ff   : > { %v3586_v33 = vmul.f32 1.442695, %v3495_v41  ;;  %v7167_v41 = vpop.f32.mrf.mxu3 }
 0x700   : > { %8091 = vst [vmem:[#allocation61_spill] sm:$0xff] %v7167_v41  ;;  %v8105_v41 = vld [vmem:[#allocation70_spill] sm:$0xff] }
 0x702   : > { %3036 = vmatpush.bf16.xpose.msrb.mxu2 %v6970_v38  ;;  %v8084_v38 = vld [vmem:[#allocation32_spill] sm:$0xff] }
 0x703   : > { %3055 = vmatpush.bf16.xpose.msrb.mxu3 %v6973_v37  ;;  %v3497_v0 = vsub.f32 %v8084_v38, %v3416_v44  ;;  %v3592_v37 = vmul.f32 1.442695, %v3498_v58  ;;  %v3584_v58 = vmul.f32 1.442695, %v3494_v60  ;;  %v3398_v38 = vpop.xlane.xlu0 %3397 }
 0x705   : > { %v3590_v31 = vmul.f32 1.442695, %v3497_v0  ;;  %4656 = vpow2.f32 %v3592_v37 }
 0x706   : > { %4658 = vpow2.f32 %v3594_v50 }
 0x707   : > { %4660 = vpow2.f32 %v3588_v12 }
 0x708   : > { %4662 = vpow2.f32 %v3590_v31 }
 0x709   : > { %4664 = vpow2.f32 %v3584_v58 }
 0x70a   : > { %3037 = vmatpush.bf16.xpose.msrb.mxu2 %v6984_v28  ;;  %v8088_v28 = vld [vmem:[#allocation56_spill] sm:$0xff]  ;;  %4666 = vpow2.f32 %v3586_v33 }
 0x70b   : > { %3056 = vmatpush.bf16.xpose.msrb.mxu3 %v6987_v13  ;;  %v3493_v44 = vsub.f32 %v8088_v28, %v3410_v55  ;;  %v3404_v13 = vpop.xlane.xlu1 %3403  ;;  %v4657_v47 = vpop.eup %4656  ;;  %4668 = vpow2.f32 %v3580_v27 }
 0x70c   : > { %v4659_v0 = vpop.eup %4658  ;;  %v3488_v12 = vsub.f32 %v6767_v5, %v3404_v13  ;;  %v3491_v5 = vsub.f32 %v8092_v29, %v3407_v8 }
 0x70d   : > { %v3582_v37 = vmul.f32 1.442695, %v3493_v44  ;;  %v4661_v50 = vpop.eup %4660 }
 0x70e   : > { %v4663_v6 = vpop.eup %4662  ;;  %v7159_v55 = vpack.c.bf16 %v4657_v47, %v4661_v50  ;;  %v3578_v58 = vmul.f32 1.442695, %v3491_v5  ;;  %v3395_v47 = vpop.xlane.xlu0 %3394 }
 0x70f   : > { %v7163_v60 = vpack.c.bf16 %v4659_v0, %v4663_v6  ;;  %4670 = vpow2.f32 %v3582_v37  ;;  %v4665_v44 = vpop.eup %4664  ;;  %v3392_v5 = vpop.xlane.xlu2 %3391 }
 0x712   : > { %3038 = vmatpush.bf16.xpose.msrb.mxu2 %v7001_v22  ;;  %v3489_v22 = vsub.f32 %v6769_v48, %v3404_v13  ;;  %v3572_v48 = vmul.f32 1.442695, %v3488_v12  ;;  %v4667_v13 = vpop.eup %4666  ;;  %v8093_v12 = vld [vmem:[#allocation86_spill] sm:$0xff] }
 0x713   : > { %3057 = vmatpush.bf16.xpose.msrb.mxu3 %v7003_v4  ;;  %v8089_v4 = vld [vmem:[#allocation21_spill] sm:$0xff]  ;;  %v3401_v28 = vpop.xlane.xlu1 %3400  ;;  %v4669_v33 = vpop.eup %4668  ;;  %v3485_v6 = vsub.f32 %v8093_v12, %v3398_v38 }
 0x714   : > { %v3490_v31 = vsub.f32 %v8089_v4, %v3407_v8  ;;  %v3574_v36 = vmul.f32 1.442695, %v3489_v22  ;;  %4672 = vpow2.f32 %v3572_v48  ;;  %v3486_v27 = vsub.f32 %v6749_v54, %v3401_v28  ;;  %v2931_v54 = vpop.f32.mrf.mxu2  ;;  %v2944_v22 = vpop.f32.mrf.mxu3 }
 0x715   : > { %v4671_v0 = vpop.eup %4670  ;;  %v7176_v37 = vpack.c.bf16 %v4665_v44, %v4669_v33  ;;  %v3484_v8 = vsub.f32 %v6726_v34, %v3398_v38  ;;  %v3566_v34 = vmul.f32 1.442695, %v3485_v6  ;;  %v8095_v44 = vld [vmem:[#allocation36_spill] sm:$0xff] }
 0x716   : > { %4674 = vpow2.f32 %v3574_v36  ;;  %v7180_v50 = vpack.c.bf16 %v4667_v13, %v4671_v0  ;;  %v3568_v4 = vmul.f32 1.442695, %v3486_v27  ;;  %v3483_v38 = vsub.f32 %v8095_v44, %v3395_v47  ;;  %v8096_v13 = vld [vmem:[#allocation15_spill] sm:$0xff]  ;;  %v3386_v33 = vpop.xlane.xlu0 %3385  ;;  %v8097_v0 = vld [vmem:[#allocation16_spill] sm:$0xff] }
 0x71a   : > { %3039 = vmatpush.bf16.xpose.msrb.mxu2 %v7013_v24  ;;  %v3576_v24 = vmul.f32 1.442695, %v3490_v31  ;;  %v3564_v31 = vmul.f32 1.442695, %v3484_v8 }
 0x71b   : > { %3058 = vmatpush.bf16.xpose.msrb.mxu3 %v7015_v18  ;;  %v3487_v18 = vsub.f32 %v6751_v1, %v3401_v28 }
 0x71c   : > { %4676 = vpow2.f32 %v3576_v24  ;;  %v2933_v8 = vpop.f32.mrf.mxu2  ;;  %v2946_v12 = vpop.f32.mrf.mxu3 }
 0x71d   : > { %4678 = vpow2.f32 %v3578_v58  ;;  %v3570_v1 = vmul.f32 1.442695, %v3487_v18  ;;  %v3480_v58 = vsub.f32 %v8096_v13, %v3392_v5  ;;  %v3481_v18 = vsub.f32 %v8097_v0, %v3392_v5 }
 0x71e   : > { %4680 = vpow2.f32 %v3568_v4  ;;  %v3562_v4 = vmul.f32 1.442695, %v3483_v38  ;;  %v3477_v5 = vsub.f32 %v6668_v49, %v3386_v33 }
 0x71f   : > { %4682 = vpow2.f32 %v3570_v1  ;;  %v3389_v1 = vpop.xlane.xlu1 %3388 }
 0x720   : > { %4684 = vpow2.f32 %v3564_v31  ;;  %v3476_v31 = vsub.f32 %v6666_v9, %v3386_v33  ;;  %v3550_v49 = vmul.f32 1.442695, %v3477_v5 }
 0x721   : > { %3040 = vmatmul.bf16.vlgmr.msrb.gmra.mxu2 %v7101_v2  ;;  %v4673_v2 = vpop.eup %4672  ;;  %4686 = vpow2.f32 %v3566_v34 }
 0x722   : > { %3692 = vmatpush.bf16.xpose.msra.mxu2 %v7159_v55  ;;  %3059 = vmatmul.bf16.vlgmr.msrb.gmra.mxu3 %v7103_v21  ;;  %v4675_v29 = vpop.eup %4674  ;;  %v8094_v21 = vld [vmem:[#allocation82_spill] sm:$0xff] }
 0x723   : > { %3705 = vmatpush.bf16.xpose.msra.mxu3 %v7163_v60  ;;  %v4677_v48 = vpop.eup %4676  ;;  %v3482_v36 = vsub.f32 %v8094_v21, %v3395_v47  ;;  %v7195_v47 = vadd.f32 %v2944_v22, %v2931_v54  ;;  %v3558_v21 = vmul.f32 1.442695, %v3481_v18  ;;  %v3548_v22 = vmul.f32 1.442695, %v3476_v31 }
 0x724   : > { %v4679_v28 = vpop.eup %4678  ;;  %v7187_v24 = vpack.c.bf16 %v4677_v48, %v4673_v2  ;;  %v3556_v48 = vmul.f32 1.442695, %v3480_v58 }
 0x725   : > { %v7190_v27 = vpack.c.bf16 %v4679_v28, %v4675_v29  ;;  %v3560_v6 = vmul.f32 1.442695, %v3482_v36  ;;  %v4681_v2 = vpop.eup %4680  ;;  %v8098_v28 = vld [vmem:[#allocation38_spill] sm:$0xff]  ;;  %v8099_v36 = vld [vmem:[#allocation39_spill] sm:$0xff]  ;;  %v2970_v31 = vpop.f32.mrf.mxu3 }
 0x726   : > { %v4683_v29 = vpop.eup %4682  ;;  %v3478_v44 = vsub.f32 %v8098_v28, %v3389_v1  ;;  %v3479_v0 = vsub.f32 %v8099_v36, %v3389_v1 }
 0x727   : > { %v4685_v34 = vpop.eup %4684  ;;  %4688 = vpow2.f32 %v3560_v6 }
 0x728   : > { %v4687_v13 = vpop.eup %4686  ;;  %4690 = vpow2.f32 %v3562_v4  ;;  %v7202_v54 = vpack.c.bf16 %v4681_v2, %v4685_v34  ;;  %v3552_v38 = vmul.f32 1.442695, %v3478_v44  ;;  %v3554_v58 = vmul.f32 1.442695, %v3479_v0 }
 0x729   : > { %4692 = vpow2.f32 %v3556_v48  ;;  %v7205_v9 = vpack.c.bf16 %v4683_v29, %v4687_v13  ;;  %v2957_v48 = vpop.f32.mrf.mxu2  ;;  %v7225_v13 = vpop.xlane.xlu2 %3457 }
 0x72a   : > { %3693 = vmatpush.bf16.xpose.msra.mxu2 %v7176_v37  ;;  %4694 = vpow2.f32 %v3558_v21  ;;  %v7219_v5 = vadd.f32 %v2970_v31, %v2957_v48 }
 0x72b   : > { %3706 = vmatpush.bf16.xpose.msra.mxu3 %v7180_v50  ;;  %4696 = vpow2.f32 %v3548_v22 }
 0x72c   : > { %4698 = vpow2.f32 %v3550_v49 }
 0x72d   : > { %v4689_v33 = vpop.eup %4688  ;;  %4700 = vpow2.f32 %v3552_v38  ;;  %v2972_v44 = vpop.f32.mrf.mxu3 }
 0x72e   : > { %v4691_v18 = vpop.eup %4690  ;;  %4702 = vpow2.f32 %v3554_v58 }
 0x730   : > { %v7222_v34 = vpop.xlane.xlu0 %3460 }
 0x731   : > { %3045 = vmatmul.bf16.gmra.mxu2 %v7127_v40  ;;  %v4693_v40 = vpop.eup %4692  ;;  %v2959_v28 = vpop.f32.mrf.mxu2 }
 0x732   : > { %3694 = vmatpush.bf16.xpose.msra.mxu2 %v7187_v24  ;;  %3064 = vmatmul.bf16.gmra.mxu3 %v7129_v56  ;;  %v4695_v8 = vpop.eup %4694  ;;  %v7209_v12 = vpack.c.bf16 %v4689_v33, %v4693_v40  ;;  %v8104_v28 = vld [vmem:[#allocation75_spill] sm:$0xff] }
 0x733   : > { %3707 = vmatpush.bf16.xpose.msra.mxu3 %v7190_v27  ;;  %v7211_v56 = vpack.c.bf16 %v4691_v18, %v4695_v8  ;;  %v4697_v6 = vpop.eup %4696  ;;  %v8102_v18 = vld [vmem:[#allocation85_spill] sm:$0xff] }
 0x734   : > { %v4699_v4 = vpop.eup %4698 }
 0x735   : > { %v4701_v1 = vpop.eup %4700 }
 0x736   : > { %v4703_v2 = vpop.eup %4702  ;;  %v7215_v29 = vpack.c.bf16 %v4701_v1, %v4697_v6  ;;  %v8103_v1 = vld [vmem:[#allocation71_spill] sm:$0xff] }
 0x737   : > { %v7217_v21 = vpack.c.bf16 %v4703_v2, %v4699_v4 }
 0x738   : > { %8100 = vst [vmem:[#allocation81_spill] sm:$0xff] %v7215_v29  ;;  %v3464_v36 = vpop.xlane.xlu1 %3463  ;;  %v7227_v0 = vpop.xlane.xlu0 %3451 }
 0x739   : > { %8101 = vst [vmem:[#allocation78_spill] sm:$0xff] %v7217_v21  ;;  %v3528_v40 = vsub.f32 %v8102_v18, %v3464_v36 }
 0x73a   : > { %3695 = vmatpush.bf16.xpose.msra.mxu2 %v7202_v54 }
 0x73b   : > { %3708 = vmatpush.bf16.xpose.msra.mxu3 %v7205_v9 }
 0x740   : > { %v3467_v22 = vpop.xlane.xlu2 %3466  ;;  %v3380_v49 = vpop.xlane.xlu1 %3379 }
 0x741   : > { %v3472_v38 = vsub.f32 %v8072_v39, %v3380_v49  ;;  %v3473_v58 = vsub.f32 %v8071_v10, %v3380_v49  ;;  %v3377_v8 = vpop.xlane.xlu0 %3376  ;;  %v3530_v2 = vsub.f32 %v8103_v1, %v3467_v22  ;;  %v3531_v44 = vsub.f32 %v8104_v28, %v3467_v22  ;;  %v8106_v49 = vld [vmem:[#allocation57_spill] sm:$0xff]  ;;  %v8107_v1 = vld [vmem:[#allocation67_spill] sm:$0xff] }
 0x742   : > { %3696 = vmatpush.bf16.xpose.msra.mxu2 %v7209_v12  ;;  %v3470_v59 = vsub.f32 %v8105_v41, %v3377_v8  ;;  %v3652_v10 = vmul.f32 1.442695, %v3528_v40 }
 0x743   : > { %3709 = vmatpush.bf16.xpose.msra.mxu3 %v7211_v56  ;;  %v3540_v33 = vmul.f32 1.442695, %v3472_v38  ;;  %v3542_v6 = vmul.f32 1.442695, %v3473_v58  ;;  %v3471_v38 = vsub.f32 %v8106_v49, %v3377_v8  ;;  %v3656_v18 = vmul.f32 1.442695, %v3530_v2 }
 0x744   : > { %v3658_v58 = vmul.f32 1.442695, %v3531_v44 }
 0x745   : > { %4704 = vpow2.f32 %v3540_v33 }
 0x746   : > { %4706 = vpow2.f32 %v3542_v6  ;;  %v8108_v6 = vld [vmem:[#allocation65_spill] sm:$0xff] }
 0x748   : > { %v3383_v4 = vpop.xlane.xlu2 %3382 }
 0x749   : > { %v3474_v48 = vsub.f32 %v8077_v53, %v3383_v4  ;;  %v3475_v31 = vsub.f32 %v8076_v23, %v3383_v4  ;;  %v3536_v53 = vmul.f32 1.442695, %v3470_v59  ;;  %v3538_v23 = vmul.f32 1.442695, %v3471_v38  ;;  %v8111_v38 = vld [vmem:[#allocation72_spill] sm:$0xff] }
 0x74a   : > { %3697 = vmatpush.bf16.xpose.msra.mxu2 %v7215_v29  ;;  %v3529_v29 = vsub.f32 %v8107_v1, %v3464_v36  ;;  %v3526_v4 = vsub.f32 %v8108_v6, %v7222_v34 }
 0x74b   : > { %3710 = vmatpush.bf16.xpose.msra.mxu3 %v7217_v21  ;;  %v3544_v39 = vmul.f32 1.442695, %v3474_v48  ;;  %v3546_v21 = vmul.f32 1.442695, %v3475_v31  ;;  %v4705_v41 = vpop.eup %4704  ;;  %v8109_v48 = vld [vmem:[#allocation66_spill] sm:$0xff] }
 0x74c   : > { %v4707_v8 = vpop.eup %4706  ;;  %v3654_v2 = vmul.f32 1.442695, %v3529_v29  ;;  %v3527_v31 = vsub.f32 %v8109_v48, %v7222_v34  ;;  %v3648_v34 = vmul.f32 1.442695, %v3526_v4 }
 0x74d   : > { %4708 = vpow2.f32 %v3544_v39 }
 0x74e   : > { %4710 = vpow2.f32 %v3546_v21  ;;  %v3650_v1 = vmul.f32 1.442695, %v3527_v31  ;;  %v8112_v31 = vld [vmem:[#allocation91_spill] sm:$0xff] }
 0x74f   : > { %4712 = vrcp.f32 %v7195_v47  ;;  %v3455_v44 = vpop.xlane.xlu1 %3454 }
 0x750   : > { %4714 = vpow2.f32 %v3652_v10  ;;  %v8110_v10 = vld [vmem:[#allocation83_spill] sm:$0xff] }
 0x751   : > { %4716 = vpow2.f32 %v3656_v18  ;;  %v3524_v49 = vsub.f32 %v8110_v10, %v7225_v13  ;;  %v3525_v18 = vsub.f32 %v8111_v38, %v7225_v13  ;;  %v3520_v10 = vsub.f32 %v8112_v31, %v7227_v0 }
 0x752   : > { %4718 = vpow2.f32 %v3658_v58 }
 0x753   : > { %v4709_v21 = vpop.eup %4708  ;;  %4720 = vpow2.f32 %v3536_v53 }
 0x754   : > { %v4711_v59 = vpop.eup %4710  ;;  %4722 = vpow2.f32 %v3538_v23  ;;  %v7246_v28 = vpack.c.bf16 %v4709_v21, %v4705_v41  ;;  %v3522_v21 = vsub.f32 %v7044_v17, %v3455_v44  ;;  %v8113_v17 = vld [vmem:[#allocation73_spill] sm:$0xff] }
 0x756   : > { %3698 = vmatpush.bf16.xpose.msra.mxu2 %v7246_v28 }
 0x757   : > { %v3446_v38 = vpop.xlane.xlu1 %3445 }
 0x758   : > { %v3374_v22 = vpop.xlane.xlu2 %3373 }
 0x759   : > { %v3468_v33 = vsub.f32 %v8079_v30, %v3374_v22  ;;  %v3469_v40 = vsub.f32 %v8078_v61, %v3374_v22  ;;  %v4713_v30 = vpop.eup %4712  ;;  %v7248_v61 = vpack.c.bf16 %v4711_v59, %v4707_v8  ;;  %v3644_v22 = vmul.f32 1.442695, %v3524_v49 }
 0x75a   : > { %v4715_v39 = vpop.eup %4714  ;;  %v7256_v6 = vperm.slane %v4713_v30, 0  ;;  %v3521_v49 = vsub.f32 %v8113_v17, %v7227_v0 }
 0x75b   : > { %v3532_v36 = vmul.f32 1.442695, %v3468_v33  ;;  %v3534_v47 = vmul.f32 1.442695, %v3469_v40  ;;  %v4717_v29 = vpop.eup %4716  ;;  %3711 = vmatpush.bf16.xpose.msra.mxu3 %v7248_v61  ;;  %v3646_v33 = vmul.f32 1.442695, %v3525_v18 }
 0x75c   : > { %v4719_v58 = vpop.eup %4718  ;;  %v7264_v48 = vpack.c.bf16 %v4717_v29, %v4715_v39 }
 0x75d   : > { %4724 = vpow2.f32 %v3532_v36  ;;  %v4721_v53 = vpop.eup %4720  ;;  %v3523_v36 = vsub.f32 %v7047_v42, %v3455_v44  ;;  %v3640_v44 = vmul.f32 1.442695, %v3522_v21  ;;  %v8114_v21 = vmov 1065369472  }
 0x75e   : > { %4726 = vpow2.f32 %v3534_v47  ;;  %v4723_v23 = vpop.eup %4722 }
 0x75f   : > { %4728 = vpow2.f32 %v3654_v2  ;;  %v3642_v29 = vmul.f32 1.442695, %v3523_v36 }
 0x760   : > { %4730 = vpow2.f32 %v3648_v34  ;;  %v3449_v18 = vpop.xlane.xlu2 %3448 }
 0x761   : > { %4732 = vpow2.f32 %v3650_v1  ;;  %v3638_v1 = vmul.f32 1.442695, %v3521_v49  ;;  %v3518_v0 = vsub.f32 %v7023_v63, %v3449_v18  ;;  %v3517_v63 = vsub.f32 %v7009_v20, %v3446_v38 }
 0x762   : > { %4734 = vpow2.f32 %v3644_v22 }
 0x763   : > { %v4725_v41 = vpop.eup %4724  ;;  %4736 = vpow2.f32 %v3646_v33  ;;  %v3519_v33 = vsub.f32 %v7026_v3, %v3449_v18  ;;  %v3632_v3 = vmul.f32 1.442695, %v3518_v0 }
 0x764   : > { %v3003_v40 = vpop.f32.mrf.mxu2  ;;  %v4727_v8 = vpop.eup %4726  ;;  %v7259_v4 = vpack.c.bf16 %v4721_v53, %v4725_v41  ;;  %4738 = vpow2.f32 %v3640_v44  ;;  %v3630_v44 = vmul.f32 1.442695, %v3517_v63 }
 0x765   : > { %v3022_v13 = vpop.f32.mrf.mxu3  ;;  %v4729_v2 = vpop.eup %4728  ;;  %v7262_v59 = vpack.c.bf16 %v4723_v23, %v4727_v8  ;;  %4740 = vpow2.f32 %v3642_v29  ;;  %v3634_v31 = vmul.f32 1.442695, %v3519_v33 }
 0x766   : > { %v3023_v47 = vadd.f32 %v3022_v13, %v3003_v40  ;;  %3699 = vmatpush.bf16.xpose.msra.mxu2 %v7259_v4  ;;  %v7269_v30 = vpack.c.bf16 %v4719_v58, %v4729_v2  ;;  %v4731_v39 = vpop.eup %4730  ;;  %v3636_v58 = vmul.f32 1.442695, %v3520_v10  ;;  %v3516_v13 = vsub.f32 %v7007_v11, %v3446_v38  ;;  %v3443_v10 = vpop.xlane.xlu1 %3442 }
 0x767   : > { %3712 = vmatpush.bf16.xpose.msra.mxu3 %v7262_v59  ;;  %v4733_v34 = vpop.eup %4732  ;;  %v3514_v20 = vsub.f32 %v6992_v32, %v3443_v10 }
 0x768   : > { %v7274_v42 = vmul.f32 %v7256_v6, %v3023_v47  ;;  %v4735_v23 = vpop.eup %4734  ;;  %4742 = vpow2.f32 %v3636_v58  ;;  %v3440_v47 = vpop.xlane.xlu0 %3439  ;;  %v3628_v11 = vmul.f32 1.442695, %v3516_v13 }
 0x769   : > { %v4737_v41 = vpop.eup %4736  ;;  %v7281_v8 = vpack.c.bf16 %v4731_v39, %v4735_v23  ;;  %4744 = vpow2.f32 %v3638_v1  ;;  %v3513_v0 = vsub.f32 %v6980_v46, %v3440_v47  ;;  %v3624_v32 = vmul.f32 1.442695, %v3514_v20 }
 0x76a   : > { %v7285_v2 = vpack.c.bf16 %v4733_v34, %v4737_v41  ;;  %v4739_v17 = vpop.eup %4738  ;;  %4746 = vpow2.f32 %v3632_v3  ;;  %v3515_v34 = vsub.f32 %v6996_v52, %v3443_v10 }
 0x76b   : > { %v4741_v49 = vpop.eup %4740  ;;  %4748 = vpow2.f32 %v3634_v31 }
 0x76c   : > { %v3005_v53 = vpop.f32.mrf.mxu2  ;;  %4750 = vpow2.f32 %v3628_v11  ;;  %v3626_v52 = vmul.f32 1.442695, %v3515_v34 }
 0x76d   : > { %v3024_v22 = vpop.f32.mrf.mxu3  ;;  %3700 = vmatmul.bf16.vlgmr.msra.gmra.mxu2 %v8114_v21  ;;  %4752 = vpow2.f32 %v3630_v44 }
 0x76e   : > { %3718 = vmatpush.bf16.xpose.msrb.mxu2 %v7264_v48  ;;  %v3025_v40 = vadd.f32 %v3024_v22, %v3005_v53  ;;  %3713 = vmatmul.bf16.vlgmr.msra.gmra.mxu3 %v8114_v21  ;;  %v4743_v29 = vpop.eup %4742  ;;  %v3512_v53 = vsub.f32 %v6978_v19, %v3440_v47  ;;  %v3434_v22 = vpop.xlane.xlu2 %3433  ;;  %v3622_v19 = vmul.f32 1.442695, %v3513_v0  ;;  %4754 = vpow2.f32 %v3624_v32 }
 0x76f   : > { %3731 = vmatpush.bf16.xpose.msrb.mxu3 %v7269_v30  ;;  %v4745_v18 = vpop.eup %4744  ;;  %v7296_v1 = vpack.c.bf16 %v4739_v17, %v4743_v29  ;;  %v3508_v46 = vsub.f32 %v6950_v35, %v3434_v22  ;;  %4756 = vpow2.f32 %v3626_v52  ;;  %v3509_v17 = vsub.f32 %v6952_v43, %v3434_v22  ;;  %v3428_v20 = vpop.xlane.xlu1 %3427 }
 0x770   : > { %v7290_v36 = vmul.f32 %v7256_v6, %v3025_v40  ;;  %v7299_v23 = vpack.c.bf16 %v4741_v49, %v4745_v18  ;;  %v4747_v33 = vpop.eup %4746  ;;  %v3620_v40 = vmul.f32 1.442695, %v3512_v53  ;;  %v3437_v63 = vpop.xlane.xlu0 %3436  ;;  %v3504_v52 = vsub.f32 %v6911_v57, %v3428_v20 }
 0x771   : > { %v4749_v13 = vpop.eup %4748  ;;  %v3510_v44 = vsub.f32 %v6964_v25, %v3437_v63  ;;  %v3511_v29 = vsub.f32 %v6966_v62, %v3437_v63  ;;  %v3612_v35 = vmul.f32 1.442695, %v3508_v46  ;;  %v3614_v43 = vmul.f32 1.442695, %v3509_v17 }
 0x772   : > { %v4751_v31 = vpop.eup %4750  ;;  %4758 = vpow2.f32 %v3620_v40  ;;  %v3505_v40 = vsub.f32 %v6917_v45, %v3428_v20 }
 0x773   : > { %v4753_v10 = vpop.eup %4752  ;;  %v7309_v49 = vpack.c.bf16 %v4747_v33, %v4751_v31  ;;  %4760 = vpow2.f32 %v3622_v19  ;;  %v3618_v25 = vmul.f32 1.442695, %v3511_v29 }
 0x774   : > { %v3008_v39 = vpop.f32.mrf.mxu2  ;;  %v4755_v34 = vpop.eup %4754  ;;  %4762 = vpow2.f32 %v3612_v35  ;;  %v3606_v46 = vmul.f32 1.442695, %v3505_v40 }
 0x775   : > { %v4757_v53 = vpop.eup %4756  ;;  %4764 = vpow2.f32 %v3614_v43 }
 0x776   : > { %3719 = vmatpush.bf16.xpose.msrb.mxu2 %v7281_v8  ;;  %v3431_v18 = vpop.xlane.xlu2 %3430 }
 0x777   : > { %3732 = vmatpush.bf16.xpose.msrb.mxu3 %v7285_v2  ;;  %v3027_v38 = vpop.f32.mrf.mxu3  ;;  %v3506_v22 = vsub.f32 %v6933_v7, %v3431_v18  ;;  %v3425_v19 = vpop.xlane.xlu1 %3424 }
 0x778   : > { %v3028_v58 = vadd.f32 %v3027_v38, %v3008_v39  ;;  %v7312_v39 = vpack.c.bf16 %v4749_v13, %v4753_v10  ;;  %v4759_v0 = vpop.eup %4758  ;;  %v3422_v31 = vpop.xlane.xlu0 %3421  ;;  %v3502_v57 = vsub.f32 %v6878_v14, %v3425_v19  ;;  %v3503_v45 = vsub.f32 %v6884_v26, %v3425_v19 }
 0x779   : > { %v4761_v62 = vpop.eup %4760  ;;  %v7322_v32 = vpack.c.bf16 %v4755_v34, %v4759_v0  ;;  %v3608_v13 = vmul.f32 1.442695, %v3506_v22  ;;  %v3501_v29 = vsub.f32 %v6858_v16, %v3422_v31 }
 0x77a   : > { %v7303_v41 = vmul.f32 %v7256_v6, %v3028_v58  ;;  %v3616_v58 = vmul.f32 1.442695, %v3510_v44  ;;  %v7325_v33 = vpack.c.bf16 %v4757_v53, %v4761_v62  ;;  %v4763_v63 = vpop.eup %4762  ;;  %v3600_v20 = vmul.f32 1.442695, %v3502_v57 }
 0x77b   : > { %v3602_v14 = vmul.f32 1.442695, %v3503_v45  ;;  %v3598_v26 = vmul.f32 1.442695, %v3501_v29 }
 0x77c   : > { %v3010_v3 = vpop.f32.mrf.mxu2  ;;  %4766 = vpow2.f32 %v3616_v58 }
 0x77d   : > { %4768 = vpow2.f32 %v3618_v25 }
 0x77e   : > { %3720 = vmatpush.bf16.xpose.msrb.mxu2 %v7296_v1  ;;  %4770 = vpow2.f32 %v3608_v13 }
 0x77f   : > { %3733 = vmatpush.bf16.xpose.msrb.mxu3 %v7299_v23  ;;  %v3029_v47 = vpop.f32.mrf.mxu3 }
 0x780   : > { %v3030_v11 = vadd.f32 %v3029_v47, %v3010_v3  ;;  %v3604_v3 = vmul.f32 1.442695, %v3504_v52 }
 0x782   : > { %v7316_v38 = vmul.f32 %v7256_v6, %v3030_v11  ;;  %v3507_v6 = vsub.f32 %v6935_v15, %v3431_v18  ;;  %v4765_v15 = vpop.eup %4764  ;;  %v3500_v11 = vsub.f32 %v6856_v51, %v3422_v31 }
 0x783   : > { %v4767_v47 = vpop.eup %4766 }
 0x784   : > { %v3610_v7 = vmul.f32 1.442695, %v3507_v6  ;;  %v4769_v10 = vpop.eup %4768  ;;  %v7332_v17 = vpack.c.bf16 %v4767_v47, %v4763_v63  ;;  %v3596_v43 = vmul.f32 1.442695, %v3500_v11  ;;  %v8122_v11 = vld [vmem:[#allocation24_spill] sm:$0xff] }
 0x785   : > { %v7335_v44 = vpack.c.bf16 %v4769_v10, %v4765_v15  ;;  %v4771_v35 = vpop.eup %4770 }
 0x786   : > { %3721 = vmatpush.bf16.xpose.msrb.mxu2 %v7309_v49  ;;  %4772 = vpow2.f32 %v3610_v7 }
 0x787   : > { %3734 = vmatpush.bf16.xpose.msrb.mxu3 %v7312_v39  ;;  %4774 = vpow2.f32 %v3604_v3 }
 0x788   : > { %4776 = vpow2.f32 %v3606_v46 }
 0x789   : > { %4778 = vrcp.f32 %v7219_v5 }
 0x78a   : > { %4780 = vpow2.f32 %v3600_v20 }
 0x78b   : > { %4782 = vpow2.f32 %v3602_v14 }
 0x78c   : > { %v4773_v18 = vpop.eup %4772  ;;  %4784 = vpow2.f32 %v3596_v43 }
 0x78d   : > { %v4775_v34 = vpop.eup %4774  ;;  %4786 = vpow2.f32 %v3598_v26 }
 0x78e   : > { %3722 = vmatpush.bf16.xpose.msrb.mxu2 %v7322_v32  ;;  %v4777_v51 = vpop.eup %4776  ;;  %v7341_v58 = vpack.c.bf16 %v4771_v35, %v4775_v34 }
 0x78f   : > { %3735 = vmatpush.bf16.xpose.msrb.mxu3 %v7325_v33  ;;  %v7343_v16 = vpack.c.bf16 %v4773_v18, %v4777_v51  ;;  %v4779_v53 = vpop.eup %4778 }
 0x790   : > { %v4781_v25 = vpop.eup %4780  ;;  %v7349_v40 = vperm.slane %v4779_v53, 0 }
 0x791   : > { %v4783_v0 = vpop.eup %4782 }
 0x792   : > { %v4785_v22 = vpop.eup %4784 }
 0x793   : > { %v4787_v62 = vpop.eup %4786  ;;  %v7347_v52 = vpack.c.bf16 %v4781_v25, %v4785_v22 }
 0x794   : > { %v7351_v7 = vpack.c.bf16 %v4783_v0, %v4787_v62 }
 0x796   : > { %3723 = vmatpush.bf16.xpose.msrb.mxu2 %v7332_v17 }
 0x797   : > { %3736 = vmatpush.bf16.xpose.msrb.mxu3 %v7335_v44 }
 0x79e   : > { %3724 = vmatpush.bf16.xpose.msrb.mxu2 %v7341_v58 }
 0x79f   : > { %3737 = vmatpush.bf16.xpose.msrb.mxu3 %v7343_v16 }
 0x7a4   : > { %v3041_v5 = vpop.f32.mrf.mxu2 }
 0x7a5   : > { %v3060_v6 = vpop.f32.mrf.mxu3 }
 0x7a6   : > { %v3061_v13 = vadd.f32 %v3060_v6, %v3041_v5  ;;  %3725 = vmatpush.bf16.xpose.msrb.mxu2 %v7347_v52 }
 0x7a7   : > { %3738 = vmatpush.bf16.xpose.msrb.mxu3 %v7351_v7 }
 0x7a8   : > { %v7355_v19 = vmul.f32 %v7349_v40, %v3061_v13 }
 0x7ac   : > { %v3043_v63 = vpop.f32.mrf.mxu2 }
 0x7ad   : > { %v3062_v3 = vpop.f32.mrf.mxu3  ;;  %3726 = vmatmul.bf16.vlgmr.msrb.gmra.mxu2 %v8114_v21 }
 0x7ae   : > { %3764 = vmatpush.bf16.xpose.msra.mxu2 %v7159_v55  ;;  %v3063_v15 = vadd.f32 %v3062_v3, %v3043_v63  ;;  %3739 = vmatmul.bf16.vlgmr.msrb.gmra.mxu3 %v8114_v21 }
 0x7af   : > { %3783 = vmatpush.bf16.xpose.msra.mxu3 %v7163_v60  ;;  %v8115_v60 = vld [vmem:[#allocation81_spill] sm:$0xff] }
 0x7b0   : > { %v7363_v31 = vmul.f32 %v7349_v40, %v3063_v15  ;;  %v8123_v15 = vld [vmem:[#allocation80_spill] sm:$0xff] }
 0x7b4   : > { %v3046_v46 = vpop.f32.mrf.mxu2 }
 0x7b5   : > { %v3065_v47 = vpop.f32.mrf.mxu3 }
 0x7b6   : > { %3765 = vmatpush.bf16.xpose.msra.mxu2 %v7176_v37  ;;  %v3066_v57 = vadd.f32 %v3065_v47, %v3046_v46  ;;  %v8116_v37 = vld [vmem:[#allocation78_spill] sm:$0xff]  ;;  %v8124_v46 = vld [vmem:[#allocation60_spill] sm:$0xff] }
 0x7b7   : > { %3784 = vmatpush.bf16.xpose.msra.mxu3 %v7180_v50  ;;  %v8117_v50 = vld [vmem:[#allocation40_spill] sm:$0xff]  ;;  %v2260_v47 = vadd.f32 %v8124_v46, %v8123_v15 }
 0x7b8   : > { %v7368_v55 = vmul.f32 %v7349_v40, %v3066_v57  ;;  %v8125_v57 = vld [vmem:[#allocation54_spill] sm:$0xff] }
 0x7be   : > { %3766 = vmatpush.bf16.xpose.msra.mxu2 %v7187_v24  ;;  %v8118_v24 = vld [vmem:[#allocation41_spill] sm:$0xff] }
 0x7bf   : > { %3785 = vmatpush.bf16.xpose.msra.mxu3 %v7190_v27  ;;  %v768_v21 = vpack.c.bf16 %v8118_v24, %v8117_v50  ;;  %v8119_v27 = vld [vmem:[#allocation37_spill] sm:$0xff]  ;;  %v8127_v50 = vld [vmem:[#allocation30_spill] sm:$0xff] }
 0x7c0   : > { %v2310_v24 = vmul.f32 %v8127_v50, %v2260_v47 }
 0x7c6   : > { %3767 = vmatpush.bf16.xpose.msra.mxu2 %v7202_v54  ;;  %v3748_v54 = vunpack.c.l.b16 %v8119_v27 }
 0x7c7   : > { %3786 = vmatpush.bf16.xpose.msra.mxu3 %v7205_v9  ;;  %v3750_v9 = vunpack.c.l.b16 %v768_v21 }
 0x7ce   : > { %3768 = vmatpush.bf16.xpose.msra.mxu2 %v7209_v12  ;;  %v3749_v12 = vunpack.c.h.b16 %v8119_v27  ;;  %v8128_v27 = vld [vmem:[#allocation69_spill] sm:$0xff] }
 0x7cf   : > { %3787 = vmatpush.bf16.xpose.msra.mxu3 %v7211_v56  ;;  %v3751_v56 = vunpack.c.h.b16 %v768_v21 }
 0x7d1   : > { %v3757_v10 = vpack.c.b16 %v3751_v56, %v3749_v12  ;;  %v8132_v12 = vld [vmem:[#allocation11_spill] sm:$0xff]  ;;  %v8133_v56 = vld [vmem:[#allocation12_spill] sm:$0xff] }
 0x7d6   : > { %3769 = vmatpush.bf16.xpose.msra.mxu2 %v8115_v60  ;;  %v8126_v60 = vld [vmem:[#allocation47_spill] sm:$0xff] }
 0x7d7   : > { %3788 = vmatpush.bf16.xpose.msra.mxu3 %v8116_v37  ;;  %v2255_v37 = vadd.f32 %v8126_v60, %v8125_v57 }
 0x7d9   : > { %v2306_v21 = vmul.f32 %v8127_v50, %v2255_v37 }
 0x7de   : > { %3770 = vmatpush.bf16.xpose.msra.mxu2 %v7246_v28  ;;  %v3756_v28 = vpack.c.b16 %v3750_v9, %v3748_v54  ;;  %v8130_v54 = vld [vmem:[#allocation35_spill] sm:$0xff] }
 0x7df   : > { %3789 = vmatpush.bf16.xpose.msra.mxu3 %v7248_v61  ;;  %v8120_v61 = vld [vmem:[#allocation23_spill] sm:$0xff] }
 0x7e6   : > { %3771 = vmatpush.bf16.xpose.msra.mxu2 %v7259_v4  ;;  %v8121_v4 = vld [vmem:[#allocation18_spill] sm:$0xff] }
 0x7e7   : > { %3790 = vmatpush.bf16.xpose.msra.mxu3 %v7262_v59  ;;  %v770_v45 = vpack.c.bf16 %v8121_v4, %v8120_v61  ;;  %v3752_v59 = vunpack.c.l.b16 %v8122_v11 }
 0x7e9   : > { %v3754_v29 = vunpack.c.l.b16 %v770_v45  ;;  %v3755_v20 = vunpack.c.h.b16 %v770_v45 }
 0x7ed   : > { %3772 = vmatmul.bf16.vlgmr.msra.gmra.mxu2 %v3756_v28 }
 0x7ee   : > { %3802 = vmatpush.bf16.xpose.msrb.mxu2 %v7264_v48  ;;  %3791 = vmatmul.bf16.vlgmr.msra.gmra.mxu3 %v3757_v10  ;;  %v3753_v48 = vunpack.c.h.b16 %v8122_v11 }
 0x7ef   : > { %3821 = vmatpush.bf16.xpose.msrb.mxu3 %v7269_v30  ;;  %v3758_v30 = vpack.c.b16 %v3754_v29, %v3752_v59 }
 0x7f0   : > { %v3759_v14 = vpack.c.b16 %v3755_v20, %v3753_v48 }
 0x7f6   : > { %3803 = vmatpush.bf16.xpose.msrb.mxu2 %v7281_v8  ;;  %v7399_v8 = vpop.f32.mrf.mxu2 }
 0x7f7   : > { %3822 = vmatpush.bf16.xpose.msrb.mxu3 %v7285_v2  ;;  %v7401_v2 = vpop.f32.mrf.mxu3 }
 0x7fd   : > { %3777 = vmatmul.bf16.gmra.mxu2 %v3758_v30 }
 0x7fe   : > { %3804 = vmatpush.bf16.xpose.msrb.mxu2 %v7296_v1  ;;  %3796 = vmatmul.bf16.gmra.mxu3 %v3759_v14  ;;  %v3701_v1 = vpop.f32.mrf.mxu2 }
 0x7ff   : > { %3823 = vmatpush.bf16.xpose.msrb.mxu3 %v7299_v23  ;;  %v3714_v23 = vpop.f32.mrf.mxu3 }
 0x800   : > { %v3715_v35 = vadd.f32 %v3714_v23, %v3701_v1  ;;  %v3853_v1 = vld [vmem:[%s7490_s3] sm:$0xf] }
 0x802   : > { %4788 = vrcp.f32 %v3715_v35 }
 0x806   : > { %3805 = vmatpush.bf16.xpose.msrb.mxu2 %v7309_v49  ;;  %v3703_v49 = vpop.f32.mrf.mxu2 }
 0x807   : > { %3824 = vmatpush.bf16.xpose.msrb.mxu3 %v7312_v39  ;;  %v3716_v39 = vpop.f32.mrf.mxu3  ;;  %v4857_v49 = vmov 0  }
 0x808   : > { %v4789_v53 = vpop.eup %4788  ;;  %4262 = vset.pattern.permute.xlu2 %v4857_v49  ;;  %4263 = vset.pattern.permute.xlu0 %v4857_v49  ;;  %v3068_v39 = vadd.f32 %v7401_v2, %v7399_v8  ;;  %v8139_v2 = vld [vmem:[#allocation14_spill] sm:$0xff] }
 0x809   : > { %v3842_v22 = vperm.slane %v4789_v53, 0  ;;  %3856 = vperm.xlu2 %4262, %v3853_v1  }
 0x80e   : > { %3806 = vmatpush.bf16.xpose.msrb.mxu2 %v7322_v32 }
 0x80f   : > { %3825 = vmatpush.bf16.xpose.msrb.mxu3 %v7325_v33 }
 0x816   : > { %3807 = vmatpush.bf16.xpose.msrb.mxu2 %v7332_v17 }
 0x817   : > { %3826 = vmatpush.bf16.xpose.msrb.mxu3 %v7335_v44 }
 0x81e   : > { %3808 = vmatpush.bf16.xpose.msrb.mxu2 %v7341_v58 }
 0x81f   : > { %3827 = vmatpush.bf16.xpose.msrb.mxu3 %v7343_v16 }
 0x826   : > { %3809 = vmatpush.bf16.xpose.msrb.mxu2 %v7347_v52 }
 0x827   : > { %3828 = vmatpush.bf16.xpose.msrb.mxu3 %v7351_v7 }
 0x82d   : > { %3810 = vmatmul.bf16.vlgmr.msrb.gmra.mxu2 %v3756_v28 }
 0x82e   : > { %3829 = vmatmul.bf16.vlgmr.msrb.gmra.mxu3 %v3757_v10 }
 0x830   : > { %v3727_v32 = vpop.f32.mrf.mxu2 }
 0x831   : > { %v3740_v33 = vpop.f32.mrf.mxu3 }
 0x832   : > { %v3741_v17 = vadd.f32 %v3740_v33, %v3727_v32 }
 0x834   : > { %4790 = vrcp.f32 %v3741_v17  ;;  %v3081_v17 = vmul.f32 %v7349_v40, %v3068_v39  ;;  %v8140_v40 = vld [vmem:[#allocation29_spill] sm:$0xff] }
 0x838   : > { %v3729_v44 = vpop.f32.mrf.mxu2 }
 0x839   : > { %v3742_v43 = vpop.f32.mrf.mxu3  ;;  %v8134_v44 = vld [vmem:[#allocation74_spill] sm:$0xff] }
 0x83a   : > { %v4791_v4 = vpop.eup %4790  ;;  %v8135_v43 = vld [vmem:[#allocation61_spill] sm:$0xff] }
 0x83b   : > { %v3843_v59 = vperm.slane %v4791_v4, 0 }
 0x83d   : > { %3815 = vmatmul.bf16.gmra.mxu2 %v3758_v30 }
 0x83e   : > { %3834 = vmatmul.bf16.gmra.mxu3 %v3759_v14  ;;  %v3852_v14 = vld [vmem:[%s7489_s2] sm:$0xf] }
 0x870   : > { %v3773_v18 = vpop.f32.mrf.mxu2 }
 0x871   : > { %v3792_v26 = vpop.f32.mrf.mxu3 }
 0x872   : > { %v3793_v13 = vadd.f32 %v3792_v26, %v3773_v18  ;;  %v2298_v18 = vadd.f32 %v8135_v43, %v8134_v44  ;;  %v8136_v26 = vld [vmem:[#allocation90_spill] sm:$0xff] }
 0x874   : > { %v3844_v3 = vmul.f32 %v3842_v22, %v3793_v13  ;;  %v3857_v13 = vpop.permute.xlu2 %3856 }
 0x878   : > { %v3775_v34 = vpop.f32.mrf.mxu2 }
 0x879   : > { %v3794_v51 = vpop.f32.mrf.mxu3 }
 0x87a   : > { %v3795_v6 = vadd.f32 %v3794_v51, %v3775_v34  ;;  %v8137_v34 = vld [vmem:[#allocation68_spill] sm:$0xff] }
 0x87b   : > { %v2293_v51 = vadd.f32 %v8137_v34, %v8136_v26 }
 0x87c   : > { %v3846_v63 = vmul.f32 %v3842_v22, %v3795_v6  ;;  %v8146_v6 = vld [vmem:[#allocation77_spill] sm:$0xff] }
 0x880   : > { %v3778_v58 = vpop.f32.mrf.mxu2 }
 0x881   : > { %v3797_v16 = vpop.f32.mrf.mxu3 }
 0x882   : > { %v3798_v5 = vadd.f32 %v3797_v16, %v3778_v58  ;;  %v8138_v58 = vld [vmem:[#allocation62_spill] sm:$0xff]  ;;  %v1528_v16 = vadd.f32 %v8140_v40, %v8139_v2 }
 0x883   : > { %v2311_v8 = vmul.f32 %v8138_v58, %v2298_v18  ;;  %v2307_v53 = vmul.f32 %v8138_v58, %v2293_v51 }
 0x884   : > { %v3848_v7 = vmul.f32 %v3842_v22, %v3798_v5 }
 0x888   : > { %v3780_v25 = vpop.f32.mrf.mxu2 }
 0x889   : > { %v3799_v0 = vpop.f32.mrf.mxu3 }
 0x88a   : > { %v3800_v62 = vadd.f32 %v3799_v0, %v3780_v25  ;;  %v8141_v25 = vld [vmem:[#allocation79_spill] sm:$0xff] }
 0x88c   : > { %v3850_v52 = vmul.f32 %v3842_v22, %v3800_v62  ;;  %v8144_v22 = vld [vmem:[#allocation55_spill] sm:$0xff]  ;;  %v8145_v62 = vld [vmem:[#allocation17_spill] sm:$0xff] }
 0x88d   : > { %v1541_v5 = vmul.f32 %v8144_v22, %v1528_v16 }
 0x88e   : > { %3859 = vmatpush.msrb.mxu0 %v3850_v52  ;;  %v8147_v52 = vld [vmem:[#allocation20_spill] sm:$0xff] }
 0x890   : > { %3860 = vmatpush.msrb.mxu0 %v3848_v7 }
 0x892   : > { %3861 = vmatpush.msrb.mxu0 %v3846_v63 }
 0x894   : > { %3862 = vmatpush.msrb.mxu0 %v3844_v3 }
 0x896   : > { %3863 = vmatpush.msrb.mxu0 %v7316_v38  ;;  %v8129_v38 = vld [vmem:[#allocation64_spill] sm:$0xff] }
 0x898   : > { %3864 = vmatpush.msrb.mxu0 %v7303_v41  ;;  %v8131_v41 = vld [vmem:[#allocation10_spill] sm:$0xff] }
 0x89a   : > { %3865 = vmatpush.msrb.mxu0 %v7290_v36 }
 0x89c   : > { %3866 = vmatpush.msrb.mxu0 %v7274_v42 }
 0x89e   : > { %3867 = vmatpush.msrb.mxu0 %v2310_v24 }
 0x8a0   : > { %3868 = vmatpush.msrb.mxu0 %v8128_v27 }
 0x8a2   : > { %3869 = vmatpush.msrb.mxu0 %v2306_v21 }
 0x8a4   : > { %3870 = vmatpush.msrb.mxu0 %v8129_v38 }
 0x8a6   : > { %3871 = vmatpush.msrb.mxu0 %v8130_v54 }
 0x8a8   : > { %3872 = vmatpush.msrb.mxu0 %v8131_v41 }
 0x8aa   : > { %3873 = vmatpush.msrb.mxu0 %v8132_v12 }
 0x8ac   : > { %3874 = vmatpush.msrb.mxu0 %v8133_v56 }
 0x8ad   : > { %3875 = vmatmul.f32.vlgmr.msrb.gmra.mxu0 %v3852_v14 }
 0x8b0   : > { %v3811_v36 = vpop.f32.mrf.mxu2 }
 0x8b1   : > { %v3830_v9 = vpop.f32.mrf.mxu3 }
 0x8b2   : > { %v3831_v23 = vadd.f32 %v3830_v9, %v3811_v36 }
 0x8b4   : > { %v3845_v33 = vmul.f32 %v3843_v59, %v3831_v23 }
 0x8b8   : > { %v3813_v28 = vpop.f32.mrf.mxu2 }
 0x8b9   : > { %v3832_v42 = vpop.f32.mrf.mxu3 }
 0x8ba   : > { %v3833_v20 = vadd.f32 %v3832_v42, %v3813_v28 }
 0x8bc   : > { %v3847_v32 = vmul.f32 %v3843_v59, %v3833_v20 }
 0x8c0   : > { %v3816_v10 = vpop.f32.mrf.mxu2 }
 0x8c1   : > { %v3835_v61 = vpop.f32.mrf.mxu3 }
 0x8c2   : > { %v3836_v29 = vadd.f32 %v3835_v61, %v3816_v10 }
 0x8c4   : > { %v3849_v35 = vmul.f32 %v3843_v59, %v3836_v29 }
 0x8c8   : > { %v3818_v45 = vpop.f32.mrf.mxu2 }
 0x8c9   : > { %v3837_v11 = vpop.f32.mrf.mxu3 }
 0x8ca   : > { %v3838_v48 = vadd.f32 %v3837_v11, %v3818_v45 }
 0x8cc   : > { %v3851_v30 = vmul.f32 %v3843_v59, %v3838_v48 }
 0x8ce   : > { %3879 = vmatpush.msrb.mxu1 %v3851_v30 }
 0x8d0   : > { %3880 = vmatpush.msrb.mxu1 %v3849_v35 }
 0x8d2   : > { %3881 = vmatpush.msrb.mxu1 %v3847_v32 }
 0x8d4   : > { %3882 = vmatpush.msrb.mxu1 %v3845_v33 }
 0x8d6   : > { %3883 = vmatpush.msrb.mxu1 %v3081_v17 }
 0x8d8   : > { %3884 = vmatpush.msrb.mxu1 %v7368_v55  ;;  %v8142_v55 = vld [vmem:[#allocation49_spill] sm:$0xff] }
 0x8da   : > { %3885 = vmatpush.msrb.mxu1 %v7363_v31  ;;  %v8143_v31 = vld [vmem:[#allocation52_spill] sm:$0xff] }
 0x8db   : > { %v1523_v0 = vadd.f32 %v8143_v31, %v8142_v55 }
 0x8dc   : > { %3886 = vmatpush.msrb.mxu1 %v7355_v19 }
 0x8dd   : > { %v1537_v19 = vmul.f32 %v8144_v22, %v1523_v0 }
 0x8de   : > { %3887 = vmatpush.msrb.mxu1 %v2311_v8 }
 0x8e0   : > { %3888 = vmatpush.msrb.mxu1 %v8141_v25 }
 0x8e2   : > { %3889 = vmatpush.msrb.mxu1 %v2307_v53 }
 0x8e4   : > { %3890 = vmatpush.msrb.mxu1 %v8145_v62 }
 0x8e6   : > { %3891 = vmatpush.msrb.mxu1 %v1541_v5 }
 0x8e8   : > { %3892 = vmatpush.msrb.mxu1 %v8146_v6 }
 0x8ea   : > { %3893 = vmatpush.msrb.mxu1 %v1537_v19 }
 0x8ec   : > { %3894 = vmatpush.msrb.mxu1 %v8147_v52 }
 0x8ed   : > { %3895 = vmatmul.f32.vlgmr.msrb.gmra.mxu1 %v3852_v14 }
 0x92a   : > { %v3876_v63 = vpop.f32.mrf.mxu0 }
 0x92b   : > { %v3877_v46 = vadd.f32 %v3876_v63, %v3857_v13 }
 0x96a   : > { %v3896_v7 = vpop.f32.mrf.mxu1 }
 0x96b   : > { %v3897_v3 = vadd.f32 %v3896_v7, %v3857_v13 }
 0x96d   : > { %v3901_v15 = vrot.slane %v3897_v3, 4 }
 0x96f   : > { %v3902_v47 = vsel %vm396_vm0, %v3877_v46, %v3901_v15 }
 0x970   : > { %3904 = vst [vmem:[%s190_s10] sm:$0xff] %v3902_v47 }
 0x971   : > { %4819 = shalt.err (!%p4816_p3)
}
 0x972   : > { %4221 = dma.vmem_to_hbm [thread:$0]  (%p4921_p5), %s3920_s11, 128, %s3922_s12, %s3906_s19  }
 0x973 PF: > { %p4227_p4 = scmp.ge.s32.totalorder %s4854_s18, 2  ;;  %s3933_s29 = sand.u32 1, %s4842_s15  }
 0x974   : > { %s3934_s30 = scalar_lea.sflag [#allocation3], %s3933_s29 }
 0x975   : > { %p4224_p7 = pnand %p4227_p4, %p4925_p6 }
 0x977   : > { %p4225_p8 = pneg %p4224_p7 }
 0x979   : > { %4837 = dma.done.wait (%p4225_p8), %s3934_s30, 128  }
 0x97a   : > { %4839 = vsyncadd (%p4225_p8), %s3934_s30, 4294967168  ;;  %p14_p9 = scmp.ge.s32.totalorder %s4908_s21, 4   ;;  %s8148_s15 = smov %s4846_s16 }
 0x97b   : > { %s8149_s16 = smov %s4850_s17  ;;  %s8150_s17 = smov %s4919_s24 }
 0x97c   : > { %s8151_s18 = smov %s4908_s21  ;;  %16 = sbr.rel (!%p14_p9) target bundleno = 3 (0x3), region = 71 }
 0x981   :  { %3940 = vsyncpa [#allocation3], 1 }
 0x982   :  { %3942 = vsyncpa [#allocation3 + $0x1], 1 }

</bundles_post_ra>
